<compile_context>
chip_gen: v7x
topology: tpu7x:2x2x1
jax: 0.10.0
libtpu: 0.0.40
codegen_flags: <defaults>
</compile_context>

<pallas_src>
import jax
import jax.numpy as jnp
from jax import lax
from jax.experimental import pallas as pl
from jax.experimental.pallas import tpu as pltpu

HIDDEN = 768 * 2          # 1536
NUM_CLASSES = 2
_MAX_BATCH_BLOCK = 256    # batch tile for large B; keeps worst-case VMEM small


def _head_kernel(x_ref, w1q_ref, s1_ref, b1_ref, w2t_ref, b2_ref, o_ref):
    # dense: (bb, 1536) @ (1536, 1536).  W1 arrives as int8; int8 -> bf16 is an
    # exact convert, the MXU accumulates in f32, and the per-output-channel
    # dequant scale is applied to the small (bb, 1536) result afterwards.
    x_bf = x_ref[...].astype(jnp.bfloat16)
    w1_bf = w1q_ref[...].astype(jnp.bfloat16)
    acc = jnp.dot(x_bf, w1_bf, preferred_element_type=jnp.float32)
    # per-channel dequant + bias add (VPU) + tanh (EUP), all in f32.
    h = jnp.tanh(acc * s1_ref[...] + b1_ref[...])
    # out_proj with lane-dense (2, 1536) weight: contract the last dims of
    # both.  N=2 underfills the MXU but the kernel is HBM-bound, so padding
    # W2 would be a pure HBM-traffic regression.
    out = lax.dot_general(
        h.astype(jnp.bfloat16), w2t_ref[...],
        dimension_numbers=(((1,), (1,)), ((), ())),
        preferred_element_type=jnp.float32,
    )
    o_ref[...] = (out + b2_ref[...]).astype(o_ref.dtype)


def prepare_params(w1, b1, w2, b2):
    """One-time conversion of f32 parameters into the kernel storage format.

    Call at parameter-load time, NOT per forward call, so the cast/transpose/
    quantization never runs in the hot path.

    Weights are (in_features, out_features): the head computes x @ W + b,
    i.e. w1 == dense.weight.T and w2 == out_proj.weight.T of the PyTorch
    module.
    """
    w1 = w1.astype(jnp.float32)
    # Symmetric per-output-channel int8 quantization of W1.
    amax = jnp.max(jnp.abs(w1), axis=0)                       # (1536,)
    w1_scale = jnp.maximum(amax, 1e-30) / 127.0               # (1536,)
    w1_q = jnp.clip(jnp.round(w1 / w1_scale), -127, 127).astype(jnp.int8)
    return dict(
        w1_q=w1_q,                                                   # (1536,1536) int8
        w1_scale=w1_scale.reshape(1, HIDDEN).astype(jnp.float32),    # (1,1536) f32
        b1=b1.reshape(1, HIDDEN).astype(jnp.float32),                # (1,1536) f32
        w2t=w2.T.astype(jnp.bfloat16),                               # (2,1536) bf16, lane-dense
        b2=b2.reshape(1, NUM_CLASSES).astype(jnp.float32),           # (1,2) f32
    )


@jax.jit
def roberta_classification_head(x, params):
    """x: (B, 1536); params: output of prepare_params(). Returns (B, 2) in x.dtype."""
    B, D = x.shape
    assert D == HIDDEN

    # Single block at small B; batch-axis grid for large B so the f32 x tile
    # stays small (matters for v7x's smaller scoped VMEM) and the grid can be
    # megacore-sharded.  W1's index_map is constant so its int8 block is
    # fetched once and stays resident across batch tiles.
    block_b = B if B <= _MAX_BATCH_BLOCK else _MAX_BATCH_BLOCK
    grid = (pl.cdiv(B, block_b),)

    w1_q = params["w1_q"]
    w1_scale = params["w1_scale"]
    b1 = params["b1"]
    w2t = params["w2t"]
    b2 = params["b2"]

    cost = pl.CostEstimate(
        flops=2 * B * HIDDEN * HIDDEN + 2 * B * HIDDEN * NUM_CLASSES,
        transcendentals=B * HIDDEN,
        bytes_accessed=(x.size * x.dtype.itemsize
                        + w1_q.size * 1 + w1_scale.size * 4
                        + b1.size * 4 + w2t.size * 2 + b2.size * 4
                        + B * NUM_CLASSES * x.dtype.itemsize),
    )

    return pl.pallas_call(
        _head_kernel,
        out_shape=jax.ShapeDtypeStruct((B, NUM_CLASSES), x.dtype),
        grid=grid,
        in_specs=[
            pl.BlockSpec((block_b, HIDDEN), lambda i: (i, 0)),      # x: tiled over B
            pl.BlockSpec((HIDDEN, HIDDEN), lambda i: (0, 0)),       # W1 int8: VMEM-resident
            pl.BlockSpec((1, HIDDEN), lambda i: (0, 0)),            # W1 per-channel scales
            pl.BlockSpec((1, HIDDEN), lambda i: (0, 0)),            # b1
            pl.BlockSpec((NUM_CLASSES, HIDDEN), lambda i: (0, 0)),  # W2^T (lane-dense)
            pl.BlockSpec((1, NUM_CLASSES), lambda i: (0, 0)),       # b2
        ],
        out_specs=pl.BlockSpec((block_b, NUM_CLASSES), lambda i: (i, 0)),
        compiler_params=pltpu.CompilerParams(
            dimension_semantics=("parallel",),
            # int8 W1 (2.4 MiB, double-buffered) + in-kernel bf16 dequant copy
            # (4.7 MiB) + a <=256-row x/h tile: ~10-15 MiB, safely under 32 MiB
            # on every generation (v7x physical VMEM is 64 MiB).
            vmem_limit_bytes=32 * 1024 * 1024,
        ),
        cost_estimate=cost,
    )(x, w1_q, w1_scale, b1, w2t, b2)


def _reference(x, w1, b1, w2, b2):
    h = jnp.tanh(x @ w1 + b1)
    return h @ w2 + b2


if __name__ == "__main__":
    key = jax.random.PRNGKey(0)
    k_x, k_w1, k_b1, k_w2, k_b2 = jax.random.split(key, 5)

    B = 8  # small batch
    # Deterministic synthetic parameters (shapes from the module __init__).
    x = jax.random.normal(k_x, (B, HIDDEN), dtype=jnp.float32)
    w1 = jax.random.normal(k_w1, (HIDDEN, HIDDEN), dtype=jnp.float32) * 0.02
    b1 = jax.random.normal(k_b1, (HIDDEN,), dtype=jnp.float32) * 0.02
    w2 = jax.random.normal(k_w2, (HIDDEN, NUM_CLASSES), dtype=jnp.float32) * 0.02
    b2 = jax.random.normal(k_b2, (NUM_CLASSES,), dtype=jnp.float32) * 0.02

    # One-time parameter prep (hoisted out of the per-call hot path).
    params = jax.block_until_ready(prepare_params(w1, b1, w2, b2))

    out = roberta_classification_head(x, params)
    jax.block_until_ready(out)

    ref = _reference(x, w1, b1, w2, b2)
    assert out.shape == (B, NUM_CLASSES), out.shape
    # W1 is streamed as per-channel int8 and activations/W2 as bf16, so the
    # tolerance vs. the f32 reference is relaxed accordingly (observed logit
    # error is O(1e-2) on O(0.5) logits).
    assert jnp.allclose(out, ref, atol=5e-2, rtol=5e-2), "mismatch vs reference"

    print("KERNEL_OK")
</pallas_src>

<mosaic_0001>
module attributes {stable_mosaic.version = 11 : i64} {
  func.func @_head_kernel(%arg0: i32, %arg1: memref<8x1536xf32, #tpu.memory_space<vmem>>, %arg2: memref<1536x1536xi8, #tpu.memory_space<vmem>>, %arg3: memref<1x1536xf32, #tpu.memory_space<vmem>>, %arg4: memref<1x1536xf32, #tpu.memory_space<vmem>>, %arg5: memref<2x1536xbf16, #tpu.memory_space<vmem>>, %arg6: memref<1x2xf32, #tpu.memory_space<vmem>>, %arg7: memref<8x2xf32, #tpu.memory_space<vmem>>) attributes {dimension_semantics = [#tpu.dimension_semantics<parallel>], iteration_bounds = array<i64: 1>, scalar_prefetch = 0 : i64, scratch_operands = 0 : i64, tpu.core_type = #tpu.core_type<tc>, window_params = [{transform_indices = @transform_0, window_bounds = array<i64: 8, 1536>}, {pipeline_mode = #tpu.pipeline_mode<synchronous>, transform_indices = @transform_1, window_bounds = array<i64: 1536, 1536>}, {pipeline_mode = #tpu.pipeline_mode<synchronous>, transform_indices = @transform_2, window_bounds = array<i64: 1, 1536>}, {pipeline_mode = #tpu.pipeline_mode<synchronous>, transform_indices = @transform_3, window_bounds = array<i64: 1, 1536>}, {pipeline_mode = #tpu.pipeline_mode<synchronous>, transform_indices = @transform_4, window_bounds = array<i64: 2, 1536>}, {pipeline_mode = #tpu.pipeline_mode<synchronous>, transform_indices = @transform_5, window_bounds = array<i64: 1, 2>}, {transform_indices = @transform_6, window_bounds = array<i64: 8, 2>}]} {
    %c0 = arith.constant 0 : index
    %c0_0 = arith.constant 0 : index
    %0 = vector.load %arg1[%c0, %c0_0] : memref<8x1536xf32, #tpu.memory_space<vmem>>, vector<8x1536xf32>
    %1 = arith.truncf %0 : vector<8x1536xf32> to vector<8x1536xbf16>
    %c0_1 = arith.constant 0 : index
    %c0_2 = arith.constant 0 : index
    %2 = vector.load %arg2[%c0_1, %c0_2] : memref<1536x1536xi8, #tpu.memory_space<vmem>>, vector<1536x1536xi8>
    %3 = arith.sitofp %2 : vector<1536x1536xi8> to vector<1536x1536xbf16>
    %cst = arith.constant dense<0.000000e+00> : vector<8x1536xf32>
    %4 = tpu.matmul %1, %3, %cst {dimension_numbers = #tpu.dot_dimension_numbers<[1], [0], [0], [1], [0, 0, 1, 1], [], []>} : vector<8x1536xbf16>, vector<1536x1536xbf16>, vector<8x1536xf32> -> vector<8x1536xf32>
    %c0_3 = arith.constant 0 : index
    %c0_4 = arith.constant 0 : index
    %5 = vector.load %arg3[%c0_3, %c0_4] : memref<1x1536xf32, #tpu.memory_space<vmem>>, vector<1x1536xf32>
    %6 = vector.broadcast %5 : vector<1x1536xf32> to vector<8x1536xf32>
    %7 = arith.mulf %4, %6 : vector<8x1536xf32>
    %c0_5 = arith.constant 0 : index
    %c0_6 = arith.constant 0 : index
    %8 = vector.load %arg4[%c0_5, %c0_6] : memref<1x1536xf32, #tpu.memory_space<vmem>>, vector<1x1536xf32>
    %9 = vector.broadcast %8 : vector<1x1536xf32> to vector<8x1536xf32>
    %10 = arith.addf %7, %9 : vector<8x1536xf32>
    %11 = math.tanh %10 : vector<8x1536xf32>
    %12 = arith.truncf %11 : vector<8x1536xf32> to vector<8x1536xbf16>
    %c0_7 = arith.constant 0 : index
    %c0_8 = arith.constant 0 : index
    %13 = vector.load %arg5[%c0_7, %c0_8] : memref<2x1536xbf16, #tpu.memory_space<vmem>>, vector<2x1536xbf16>
    %cst_9 = arith.constant dense<0.000000e+00> : vector<8x2xf32>
    %14 = tpu.matmul %12, %13, %cst_9 {dimension_numbers = #tpu.dot_dimension_numbers<[1], [1], [0], [0], [0, 0, 1, 0], [], []>} : vector<8x1536xbf16>, vector<2x1536xbf16>, vector<8x2xf32> -> vector<8x2xf32>
    %c0_10 = arith.constant 0 : index
    %c0_11 = arith.constant 0 : index
    %15 = vector.load %arg6[%c0_10, %c0_11] : memref<1x2xf32, #tpu.memory_space<vmem>>, vector<1x2xf32>
    %16 = vector.broadcast %15 : vector<1x2xf32> to vector<8x2xf32>
    %17 = arith.addf %14, %16 : vector<8x2xf32>
    %c0_12 = arith.constant 0 : index
    %c0_13 = arith.constant 0 : index
    %18 = vector.load %arg7[%c0_12, %c0_13] : memref<8x2xf32, #tpu.memory_space<vmem>>, vector<8x2xf32>
    tpu.vector_store %arg7[%c0_12, %c0_13], %17 {strides = array<i32>} : memref<8x2xf32, #tpu.memory_space<vmem>>, vector<8x2xf32>,
    return
  }
  func.func @transform_0(%arg0: i32) -> (i32, i32) {
    %c0_i32 = arith.constant 0 : i32
    %c0_i32_0 = arith.constant 0 : i32
    return %arg0, %c0_i32 : i32, i32
  }
  func.func @transform_1(%arg0: i32) -> (i32, i32) {
    %c0_i32 = arith.constant 0 : i32
    %c0_i32_0 = arith.constant 0 : i32
    %c0_i32_1 = arith.constant 0 : i32
    return %c0_i32, %c0_i32_0 : i32, i32
  }
  func.func @transform_2(%arg0: i32) -> (i32, i32) {
    %c0_i32 = arith.constant 0 : i32
    %c0_i32_0 = arith.constant 0 : i32
    %c0_i32_1 = arith.constant 0 : i32
    return %c0_i32, %c0_i32_0 : i32, i32
  }
  func.func @transform_3(%arg0: i32) -> (i32, i32) {
    %c0_i32 = arith.constant 0 : i32
    %c0_i32_0 = arith.constant 0 : i32
    %c0_i32_1 = arith.constant 0 : i32
    return %c0_i32, %c0_i32_0 : i32, i32
  }
  func.func @transform_4(%arg0: i32) -> (i32, i32) {
    %c0_i32 = arith.constant 0 : i32
    %c0_i32_0 = arith.constant 0 : i32
    %c0_i32_1 = arith.constant 0 : i32
    return %c0_i32, %c0_i32_0 : i32, i32
  }
  func.func @transform_5(%arg0: i32) -> (i32, i32) {
    %c0_i32 = arith.constant 0 : i32
    %c0_i32_0 = arith.constant 0 : i32
    %c0_i32_1 = arith.constant 0 : i32
    return %c0_i32, %c0_i32_0 : i32, i32
  }
  func.func @transform_6(%arg0: i32) -> (i32, i32) {
    %c0_i32 = arith.constant 0 : i32
    %c0_i32_0 = arith.constant 0 : i32
    return %arg0, %c0_i32 : i32, i32
  }
}

</mosaic_0001>

<bundles_post_ra>
// kernel: roberta_classification_head.1
= control target key start
LH: loop header
LB: loop body
LE: loop exit
PB: predicated region body
PF: predicated region fallthrough
CT: control target
= control target key end

     0   :  { %11 = vsyncpa [#allocation3], 0  ;;  %s4464_s0 = inlined_call_operand.hbm [shape: f32[8,1536], index: 0, kind: input, shape index: {}]   ;;  %s4465_s1 = inlined_call_operand.hbm [shape: s8[1536,1536], index: 1, kind: input, shape index: {}]   ;;  %s4466_s2 = inlined_call_operand.hbm [shape: f32[1,1536], index: 2, kind: input, shape index: {}]   ;;  %s4467_s3 = inlined_call_operand.hbm [shape: f32[1,1536], index: 3, kind: input, shape index: {}]   ;;  %s4468_s4 = inlined_call_operand.hbm [shape: bf16[2,1536], index: 4, kind: input, shape index: {}]   ;;  %s4469_s5 = inlined_call_operand.hbm [shape: f32[1,2], index: 5, kind: input, shape index: {}]   ;;  %s4470_s6 = inlined_call_operand.vmem [shape: f32[8,2], index: 6, kind: output, shape index: {}]  }
   0x1   :  { %12 = vsyncpa [#allocation5], 0 }
   0x2   :  { %13 = vsyncpa [#allocation8], 0 }
   0x3   :  { %14 = vsyncpa [#allocation11], 0  ;;  %s4160_s21 = smov [#allocation4]   ;;  %s4020_s25 = scalar_lea.hbm %s4465_s1, 73728 }
   0x4   :  { %s30_s22 = sshll.u32 %s4160_s21, 4  ;;  %p4021_p0 = scmp.ne.s32.totalorder %s4465_s1, %s4020_s25  ;;  %s31_s22 = int_to_ptr.vmem [resolvable:$true] %s30_s22 }
   0x5   :  { %p4024_p1 = scmp.lt.u32.totalorder %s4020_s25, %s4465_s1 }
   0x7   :  { %p4026_p2 = pnand %p4024_p1, %p4021_p0 }
   0x9   :  { %4029 = shalt.err (!%p4026_p2)
}
   0xa   :  { %s4030_s30 = scalar_lea.vmem %s31_s22, 73728  ;;  %p4035_p4 = scmp.lt.s32.totalorder %s31_s22, %s31_s22 }
   0xb   :  { %p4031_p3 = scmp.ne.s32.totalorder %s31_s22, %s4030_s30  ;;  %p4036_p5 = scmp.lt.s32.totalorder %s4030_s30, %s4030_s30 }
   0xd   :  { %p4037_p6 = por %p4036_p5, %p4035_p4 }
   0xf   :  { %p4038_p7 = pnand %p4037_p6, %p4031_p3 }
  0x11   :  { %4041 = shalt.err (!%p4038_p7)
}
  0x12   :  { %s4161_s7 = smov 1536   ;;  %s4162_s8 = smov 96  }
  0x13   :  { %36 = dma.hbm_to_vmem [thread:$0]  %s4465_s1, 73728, %s31_s22, [#allocation5], %s4161_s7, %s4161_s7, %s4162_s8  }
  0x14   :  { %s4163_s11 = smov [#allocation7]   ;;  %s4164_s13 = smov [#allocation2]  }
  0x15   :  { %s53_s12 = sshll.u32 %s4163_s11, 4  ;;  %s21_s14 = sshll.u32 %s4164_s13, 4  ;;  %s54_s12 = int_to_ptr.vmem [resolvable:$true] %s53_s12  ;;  %s22_s14 = int_to_ptr.vmem [resolvable:$true] %s21_s14 }
  0x16   :  { %s4042_s17 = scalar_lea.hbm %s4467_s3, 192 }
  0x17   :  { %p4043_p8 = scmp.ne.s32.totalorder %s4467_s3, %s4042_s17  ;;  %p4046_p9 = scmp.lt.u32.totalorder %s4042_s17, %s4467_s3 }
  0x19   :  { %p4048_p10 = pnand %p4046_p9, %p4043_p8 }
  0x1b   :  { %4051 = shalt.err (!%p4048_p10)
}
  0x1c   :  { %s4052_s1 = scalar_lea.vmem %s54_s12, 192  ;;  %p4057_p12 = scmp.lt.s32.totalorder %s54_s12, %s54_s12 }
  0x1d   :  { %p4053_p11 = scmp.ne.s32.totalorder %s54_s12, %s4052_s1  ;;  %p4058_p13 = scmp.lt.s32.totalorder %s4052_s1, %s4052_s1 }
  0x1f   :  { %p4059_p0 = por %p4058_p13, %p4057_p12 }
  0x21   :  { %p4060_p1 = pnand %p4059_p0, %p4053_p11 }
  0x23   :  { %4063 = shalt.err (!%p4060_p1)
}
  0x24   :  { %56 = dma.hbm_to_vmem [thread:$0]  %s4467_s3, 192, %s54_s12, [#allocation8]  }
  0x25   :  { %s4064_s26 = scalar_lea.hbm %s4464_s0, 1536 }
  0x26   :  { %p4065_p2 = scmp.ne.s32.totalorder %s4464_s0, %s4064_s26  ;;  %p4068_p3 = scmp.lt.u32.totalorder %s4064_s26, %s4464_s0 }
  0x28   :  { %p4070_p4 = pnand %p4068_p3, %p4065_p2 }
  0x2a   :  { %4073 = shalt.err (!%p4070_p4)
}
  0x2b   :  { %s4074_s7 = scalar_lea.vmem %s22_s14, 1536  ;;  %p4079_p6 = scmp.lt.s32.totalorder %s22_s14, %s22_s14 }
  0x2c   :  { %p4075_p5 = scmp.ne.s32.totalorder %s22_s14, %s4074_s7  ;;  %p4080_p7 = scmp.lt.s32.totalorder %s4074_s7, %s4074_s7 }
  0x2e   :  { %p4081_p8 = por %p4080_p7, %p4079_p6 }
  0x30   :  { %p4082_p9 = pnand %p4081_p8, %p4075_p5 }
  0x32   :  { %4085 = shalt.err (!%p4082_p9)
}
  0x33   :  { %24 = dma.hbm_to_vmem [thread:$0]  %s4464_s0, 1536, %s22_s14, [#allocation3]  }
  0x34   :  { %s4165_s9 = smov [#allocation6]   ;;  %s4166_s11 = smov [#allocation9]  }
  0x35   :  { %s43_s10 = sshll.u32 %s4165_s9, 4  ;;  %s63_s12 = sshll.u32 %s4166_s11, 4  ;;  %s44_s10 = int_to_ptr.vmem [resolvable:$true] %s43_s10  ;;  %s64_s12 = int_to_ptr.vmem [resolvable:$true] %s63_s12 }
  0x36   :  { %s4086_s16 = scalar_lea.hbm %s4466_s2, 192 }
  0x37   :  { %p4087_p10 = scmp.ne.s32.totalorder %s4466_s2, %s4086_s16  ;;  %p4090_p11 = scmp.lt.u32.totalorder %s4086_s16, %s4466_s2 }
  0x39   :  { %p4092_p12 = pnand %p4090_p11, %p4087_p10 }
  0x3b   :  { %4095 = shalt.err (!%p4092_p12)
}
  0x3c   :  { %s4096_s0 = scalar_lea.vmem %s44_s10, 192  ;;  %p4101_p0 = scmp.lt.s32.totalorder %s44_s10, %s44_s10 }
  0x3d   :  { %p4097_p13 = scmp.ne.s32.totalorder %s44_s10, %s4096_s0  ;;  %p4102_p1 = scmp.lt.s32.totalorder %s4096_s0, %s4096_s0 }
  0x3f   :  { %p4103_p2 = por %p4102_p1, %p4101_p0 }
  0x41   :  { %p4104_p3 = pnand %p4103_p2, %p4097_p13 }
  0x43   :  { %4107 = shalt.err (!%p4104_p3)
}
  0x44   :  { %46 = dma.hbm_to_vmem [thread:$0]  %s4466_s2, 192, %s44_s10, [#allocation5]  }
  0x45   :  { %s4108_s23 = scalar_lea.hbm %s4468_s4, 192 }
  0x46   :  { %p4109_p4 = scmp.ne.s32.totalorder %s4468_s4, %s4108_s23  ;;  %p4112_p5 = scmp.lt.u32.totalorder %s4108_s23, %s4468_s4 }
  0x48   :  { %p4114_p6 = pnand %p4112_p5, %p4109_p4 }
  0x4a   :  { %4117 = shalt.err (!%p4114_p6)
}
  0x4b   :  { %s4118_s28 = scalar_lea.vmem %s64_s12, 192  ;;  %p4123_p8 = scmp.lt.s32.totalorder %s64_s12, %s64_s12 }
  0x4c   :  { %p4119_p7 = scmp.ne.s32.totalorder %s64_s12, %s4118_s28  ;;  %p4124_p9 = scmp.lt.s32.totalorder %s4118_s28, %s4118_s28 }
  0x4e   :  { %p4125_p10 = por %p4124_p9, %p4123_p8 }
  0x50   :  { %p4126_p11 = pnand %p4125_p10, %p4119_p7 }
  0x52   :  { %4129 = shalt.err (!%p4126_p11)
}
  0x53   :  { %66 = dma.hbm_to_vmem [thread:$0]  %s4468_s4, 192, %s64_s12, [#allocation8]  }
  0x54   :  { %s4167_s30 = smov [#allocation10]   ;;  %s4130_s9 = scalar_lea.hbm %s4469_s5, 16 }
  0x55   :  { %s73_s7 = sshll.u32 %s4167_s30, 4  ;;  %p4131_p12 = scmp.ne.s32.totalorder %s4469_s5, %s4130_s9  ;;  %s74_s7 = int_to_ptr.vmem [resolvable:$true] %s73_s7 }
  0x56   :  { %p4134_p13 = scmp.lt.u32.totalorder %s4130_s9, %s4469_s5 }
  0x58   :  { %p4136_p0 = pnand %p4134_p13, %p4131_p12 }
  0x5a   :  { %4139 = shalt.err (!%p4136_p0)
}
  0x5b   :  { %s4140_s16 = scalar_lea.vmem %s74_s7, 16  ;;  %s4144_s4 = scalar_lea.vmem %s74_s7, 32 }
  0x5c   :  { %p4141_p1 = scmp.ne.s32.totalorder %s74_s7, %s4140_s16  ;;  %p4145_p2 = scmp.lt.s32.totalorder %s74_s7, %s74_s7 }
  0x5d   :  { %p4146_p3 = scmp.lt.s32.totalorder %s4144_s4, %s4140_s16 }
  0x5f   :  { %p4147_p4 = por %p4146_p3, %p4145_p2 }
  0x61   :  { %p4148_p5 = pnand %p4147_p4, %p4141_p1 }
  0x63   :  { %4151 = shalt.err (!%p4148_p5)
}
  0x64   :  { %76 = dma.hbm_to_vmem [thread:$0]  %s4469_s5, 16, %s74_s7, [#allocation11]  }
  0x65   :  { %4152 = dma.done.wait [#allocation3], 1536  }
  0x66   :  { %4153 = vsyncadd [#allocation3], 4294965760 }
  0x67   :  { %4154 = dma.done.wait [#allocation5], 73920  }
  0x68   :  { %4155 = vsyncadd [#allocation5], 4294893376 }
  0x69   :  { %4156 = dma.done.wait [#allocation8], 384  }
  0x6a   :  { %4157 = vsyncadd [#allocation8], 4294966912 }
  0x6b   :  { %4158 = dma.done.wait [#allocation11], 16  }
  0x6c   :  { %4159 = vsyncadd [#allocation11], 4294967280  ;;  %v121_v0 = vld [vmem:[#allocation4 + $0x8] sm:$0xff]  ;;  %v123_v1 = vld [vmem:[#allocation4 + $0x18] sm:$0xff]  ;;  %vm3836_vm0 = vcmask 15360  }
  0x6d   :  { %v120_v2 = vld [vmem:[#allocation4] sm:$0xff]  ;;  %v697_v3 = vunpack.c.l.s8.bf16 %v121_v0  ;;  %v709_v4 = vunpack.c.h.s8.bf16 %v121_v0  ;;  %v699_v5 = vunpack.c.l.s8.bf16 %v123_v1  ;;  %v711_v6 = vunpack.c.h.s8.bf16 %v123_v1  ;;  %v122_v7 = vld [vmem:[#allocation4 + $0x10] sm:$0xff]  ;;  %v133_v10 = vld [vmem:[#allocation4 + $0x68] sm:$0xff] }
  0x6e   :  { %v696_v8 = vunpack.c.l.s8.bf16 %v120_v2  ;;  %v698_v9 = vunpack.c.l.s8.bf16 %v122_v7  ;;  %v135_v11 = vld [vmem:[#allocation4 + $0x78] sm:$0xff]  ;;  %v708_v12 = vunpack.c.h.s8.bf16 %v120_v2  ;;  %v710_v13 = vunpack.c.h.s8.bf16 %v122_v7  ;;  %v132_v16 = vld [vmem:[#allocation4 + $0x60] sm:$0xff]  ;;  %v134_v17 = vld [vmem:[#allocation4 + $0x70] sm:$0xff] }
  0x6f   :  { %1848 = vmatprep.subr.bf16.mxu0 %v697_v3  ;;  %2094 = vmatprep.subr.bf16.mxu1 %v699_v5  ;;  %v721_v14 = vunpack.c.l.s8.bf16 %v133_v10  ;;  %v723_v15 = vunpack.c.l.s8.bf16 %v135_v11  ;;  %v720_v18 = vunpack.c.l.s8.bf16 %v132_v16  ;;  %v722_v19 = vunpack.c.l.s8.bf16 %v134_v17  ;;  %v145_v22 = vld [vmem:[#allocation4 + $0xc8] sm:$0xff]  ;;  %v147_v23 = vld [vmem:[#allocation4 + $0xd8] sm:$0xff]  ;;  %v144_v28 = vld [vmem:[#allocation4 + $0xc0] sm:$0xff] }
  0x70   :  { %1849 = vmatpush1.bf16.msra.mxu0 %v696_v8  ;;  %2095 = vmatpush1.bf16.msra.mxu1 %v698_v9  ;;  %v733_v20 = vunpack.c.h.s8.bf16 %v133_v10  ;;  %v735_v21 = vunpack.c.h.s8.bf16 %v135_v11  ;;  %v732_v24 = vunpack.c.h.s8.bf16 %v132_v16  ;;  %v734_v25 = vunpack.c.h.s8.bf16 %v134_v17  ;;  %v146_v29 = vld [vmem:[#allocation4 + $0xd0] sm:$0xff]  ;;  %v97_v30 = vld [vmem:[#allocation2 + $0x8] sm:$0xff]  ;;  %v159_v37 = vld [vmem:[#allocation4 + $0x138] sm:$0xff] }
  0x71   :  { %1850 = vmatprep.subr.bf16.mxu0 %v709_v4  ;;  %2096 = vmatprep.subr.bf16.mxu1 %v711_v6  ;;  %v745_v26 = vunpack.c.l.s8.bf16 %v145_v22  ;;  %v747_v27 = vunpack.c.l.s8.bf16 %v147_v23  ;;  %v744_v31 = vunpack.c.l.s8.bf16 %v144_v28  ;;  %v746_v32 = vunpack.c.l.s8.bf16 %v146_v29  ;;  %v157_v36 = vld [vmem:[#allocation4 + $0x128] sm:$0xff]  ;;  %v156_v42 = vld [vmem:[#allocation4 + $0x120] sm:$0xff]  ;;  %v158_v43 = vld [vmem:[#allocation4 + $0x130] sm:$0xff] }
  0x72   :  { %v757_v33 = vunpack.c.h.s8.bf16 %v145_v22  ;;  %v759_v34 = vunpack.c.h.s8.bf16 %v147_v23  ;;  %v4276_v35 = vpack.c.bf16 %v97_v30, %v97_v30  ;;  %v756_v38 = vunpack.c.h.s8.bf16 %v144_v28  ;;  %v169_v48 = vld [vmem:[#allocation4 + $0x188] sm:$0xff]  ;;  %v171_v49 = vld [vmem:[#allocation4 + $0x198] sm:$0xff]  ;;  %v168_v54 = vld [vmem:[#allocation4 + $0x180] sm:$0xff] }
  0x73   :  { %v758_v39 = vunpack.c.h.s8.bf16 %v146_v29  ;;  %v769_v40 = vunpack.c.l.s8.bf16 %v157_v36  ;;  %v771_v41 = vunpack.c.l.s8.bf16 %v159_v37  ;;  %v768_v44 = vunpack.c.l.s8.bf16 %v156_v42  ;;  %v170_v55 = vld [vmem:[#allocation4 + $0x190] sm:$0xff]  ;;  %v181_v60 = vld [vmem:[#allocation4 + $0x1e8] sm:$0xff]  ;;  %v183_v61 = vld [vmem:[#allocation4 + $0x1f8] sm:$0xff] }
  0x74   :  { %1851 = vmatpush1.bf16.msra.mxu0 %v708_v12  ;;  %2097 = vmatpush1.bf16.msra.mxu1 %v710_v13  ;;  %v770_v45 = vunpack.c.l.s8.bf16 %v158_v43  ;;  %v781_v46 = vunpack.c.h.s8.bf16 %v157_v36  ;;  %v783_v47 = vunpack.c.h.s8.bf16 %v159_v37  ;;  %v780_v50 = vunpack.c.h.s8.bf16 %v156_v42  ;;  %v180_v2 = vld [vmem:[#allocation4 + $0x1e0] sm:$0xff]  ;;  %v182_v3 = vld [vmem:[#allocation4 + $0x1f0] sm:$0xff]  ;;  %v193_v8 = vld [vmem:[#allocation4 + $0x248] sm:$0xff] }
  0x75   :  { %1852 = vmatprep.subr.bf16.mxu0 %v721_v14  ;;  %2098 = vmatprep.subr.bf16.mxu1 %v723_v15  ;;  %v782_v51 = vunpack.c.h.s8.bf16 %v158_v43  ;;  %v793_v52 = vunpack.c.l.s8.bf16 %v169_v48  ;;  %v795_v53 = vunpack.c.l.s8.bf16 %v171_v49  ;;  %v792_v56 = vunpack.c.l.s8.bf16 %v168_v54  ;;  %v195_v9 = vld [vmem:[#allocation4 + $0x258] sm:$0xff]  ;;  %v192_v14 = vld [vmem:[#allocation4 + $0x240] sm:$0xff]  ;;  %v194_v15 = vld [vmem:[#allocation4 + $0x250] sm:$0xff] }
  0x76   :  { %1880 = vmatprep.mubr.bf16.mxu0 %v4276_v35  ;;  %2126 = vmatprep.mubr.bf16.mxu1 %v4276_v35  ;;  %v794_v57 = vunpack.c.l.s8.bf16 %v170_v55  ;;  %v805_v58 = vunpack.c.h.s8.bf16 %v169_v48  ;;  %v807_v59 = vunpack.c.h.s8.bf16 %v171_v49  ;;  %v804_v62 = vunpack.c.h.s8.bf16 %v168_v54  ;;  %v96_v37 = vld [vmem:[#allocation2] sm:$0xff]  ;;  %v99_v43 = vld [vmem:[#allocation2 + $0x18] sm:$0xff]  ;;  %v229_v48 = vld [vmem:[#allocation4 + $0x368] sm:$0xff] }
  0x77   :  { %v806_v63 = vunpack.c.h.s8.bf16 %v170_v55  ;;  %v817_v0 = vunpack.c.l.s8.bf16 %v181_v60  ;;  %v819_v1 = vunpack.c.l.s8.bf16 %v183_v61  ;;  %v816_v4 = vunpack.c.l.s8.bf16 %v180_v2  ;;  %v231_v49 = vld [vmem:[#allocation4 + $0x378] sm:$0xff]  ;;  %v228_v55 = vld [vmem:[#allocation4 + $0x360] sm:$0xff] }
  0x78   :  { %1853 = vmatpush1.bf16.msra.mxu0 %v720_v18  ;;  %2099 = vmatpush1.bf16.msra.mxu1 %v722_v19  ;;  %v818_v5 = vunpack.c.l.s8.bf16 %v182_v3  ;;  %v829_v6 = vunpack.c.h.s8.bf16 %v181_v60  ;;  %v831_v7 = vunpack.c.h.s8.bf16 %v183_v61  ;;  %v828_v10 = vunpack.c.h.s8.bf16 %v180_v2  ;;  %v241_v61 = vld [vmem:[#allocation4 + $0x3c8] sm:$0xff] }
  0x79   :  { %1854 = vmatprep.subr.bf16.mxu0 %v733_v20  ;;  %2100 = vmatprep.subr.bf16.mxu1 %v735_v21  ;;  %v830_v11 = vunpack.c.h.s8.bf16 %v182_v3  ;;  %v841_v12 = vunpack.c.l.s8.bf16 %v193_v8  ;;  %v843_v13 = vunpack.c.l.s8.bf16 %v195_v9  ;;  %v840_v16 = vunpack.c.l.s8.bf16 %v192_v14  ;;  %v205_v20 = vld [vmem:[#allocation4 + $0x2a8] sm:$0xff]  ;;  %v207_v21 = vld [vmem:[#allocation4 + $0x2b8] sm:$0xff]  ;;  %v240_v3 = vld [vmem:[#allocation4 + $0x3c0] sm:$0xff] }
  0x7a   :  { %v842_v17 = vunpack.c.l.s8.bf16 %v194_v15  ;;  %v853_v18 = vunpack.c.h.s8.bf16 %v193_v8  ;;  %v855_v19 = vunpack.c.h.s8.bf16 %v195_v9  ;;  %v852_v22 = vunpack.c.h.s8.bf16 %v192_v14  ;;  %v253_v9 = vld [vmem:[#allocation4 + $0x428] sm:$0xff] }
  0x7b   :  { %v854_v23 = vunpack.c.h.s8.bf16 %v194_v15  ;;  %v877_v30 = vunpack.c.h.s8.bf16 %v205_v20  ;;  %v4280_v42 = vpack.c.bf16 %v96_v37, %v96_v37  ;;  %v915_v54 = vunpack.c.l.s8.bf16 %v231_v49  ;;  %v252_v15 = vld [vmem:[#allocation4 + $0x420] sm:$0xff] }
  0x7c   :  { %1855 = vmatpush1.bf16.msra.mxu0 %v732_v24  ;;  %2101 = vmatpush1.bf16.msra.mxu1 %v734_v25  ;;  %v865_v24 = vunpack.c.l.s8.bf16 %v205_v20  ;;  %v867_v25 = vunpack.c.l.s8.bf16 %v207_v21  ;;  %v927_v60 = vunpack.c.h.s8.bf16 %v231_v49 }
  0x7d   :  { %1856 = vmatprep.subr.bf16.mxu0 %v745_v26  ;;  %2102 = vmatprep.subr.bf16.mxu1 %v747_v27  ;;  %v204_v26 = vld [vmem:[#allocation4 + $0x2a0] sm:$0xff]  ;;  %v206_v27 = vld [vmem:[#allocation4 + $0x2b0] sm:$0xff] }
  0x7e   :  { %v864_v28 = vunpack.c.l.s8.bf16 %v204_v26  ;;  %v866_v29 = vunpack.c.l.s8.bf16 %v206_v27  ;;  %v878_v36 = vunpack.c.h.s8.bf16 %v206_v27  ;;  %v264_v27 = vld [vmem:[#allocation4 + $0x480] sm:$0xff] }
  0x80   :  { %1857 = vmatpush1.bf16.msra.mxu0 %v744_v31  ;;  %2103 = vmatpush1.bf16.msra.mxu1 %v746_v32  ;;  %v879_v31 = vunpack.c.h.s8.bf16 %v207_v21  ;;  %v217_v32 = vld [vmem:[#allocation4 + $0x308] sm:$0xff] }
  0x81   :  { %1858 = vmatprep.subr.bf16.mxu0 %v757_v33  ;;  %2104 = vmatprep.subr.bf16.mxu1 %v759_v34  ;;  %v219_v33 = vld [vmem:[#allocation4 + $0x318] sm:$0xff]  ;;  %v876_v34 = vunpack.c.h.s8.bf16 %v204_v26  ;;  %v265_v21 = vld [vmem:[#allocation4 + $0x488] sm:$0xff] }
  0x84   :  { %1859 = vmatpush1.bf16.msra.mxu0 %v756_v38  ;;  %2105 = vmatpush1.bf16.msra.mxu1 %v758_v39  ;;  %v889_v38 = vunpack.c.l.s8.bf16 %v217_v32  ;;  %v891_v39 = vunpack.c.l.s8.bf16 %v219_v33 }
  0x85   :  { %1860 = vmatprep.subr.bf16.mxu0 %v769_v40  ;;  %2106 = vmatprep.subr.bf16.mxu1 %v771_v41  ;;  %v216_v40 = vld [vmem:[#allocation4 + $0x300] sm:$0xff]  ;;  %v218_v41 = vld [vmem:[#allocation4 + $0x310] sm:$0xff] }
  0x88   :  { %1861 = vmatpush1.bf16.msra.mxu0 %v768_v44  ;;  %2107 = vmatpush1.bf16.msra.mxu1 %v770_v45  ;;  %v888_v44 = vunpack.c.l.s8.bf16 %v216_v40  ;;  %v890_v45 = vunpack.c.l.s8.bf16 %v218_v41 }
  0x89   :  { %1862 = vmatprep.subr.bf16.mxu0 %v781_v46  ;;  %2108 = vmatprep.subr.bf16.mxu1 %v783_v47  ;;  %v901_v46 = vunpack.c.h.s8.bf16 %v217_v32  ;;  %v903_v47 = vunpack.c.h.s8.bf16 %v219_v33  ;;  %v277_v33 = vld [vmem:[#allocation4 + $0x4e8] sm:$0xff] }
  0x8c   :  { %1863 = vmatpush1.bf16.msra.mxu0 %v780_v50  ;;  %2109 = vmatpush1.bf16.msra.mxu1 %v782_v51  ;;  %v4282_v50 = vpack.c.bf16 %v99_v43, %v99_v43  ;;  %v900_v51 = vunpack.c.h.s8.bf16 %v216_v40  ;;  %v276_v40 = vld [vmem:[#allocation4 + $0x4e0] sm:$0xff] }
  0x8d   :  { %1864 = vmatprep.subr.bf16.mxu0 %v793_v52  ;;  %2110 = vmatprep.subr.bf16.mxu1 %v795_v53  ;;  %v902_v52 = vunpack.c.h.s8.bf16 %v218_v41  ;;  %v913_v53 = vunpack.c.l.s8.bf16 %v229_v48  ;;  %v278_v41 = vld [vmem:[#allocation4 + $0x4f0] sm:$0xff]  ;;  %v1008_v43 = vunpack.c.l.s8.bf16 %v276_v40  ;;  %v1020_v49 = vunpack.c.h.s8.bf16 %v276_v40 }
  0x90   :  { %1865 = vmatpush1.bf16.msra.mxu0 %v792_v56  ;;  %2111 = vmatpush1.bf16.msra.mxu1 %v794_v57  ;;  %v230_v56 = vld [vmem:[#allocation4 + $0x370] sm:$0xff]  ;;  %v912_v57 = vunpack.c.l.s8.bf16 %v228_v55 }
  0x91   :  { %1866 = vmatprep.subr.bf16.mxu0 %v805_v58  ;;  %2112 = vmatprep.subr.bf16.mxu1 %v807_v59  ;;  %v914_v58 = vunpack.c.l.s8.bf16 %v230_v56  ;;  %v925_v59 = vunpack.c.h.s8.bf16 %v229_v48  ;;  %v291_v48 = vld [vmem:[#allocation4 + $0x558] sm:$0xff] }
  0x94   :  { %1867 = vmatpush1.bf16.msra.mxu0 %v804_v62  ;;  %2113 = vmatpush1.bf16.msra.mxu1 %v806_v63  ;;  %v243_v62 = vld [vmem:[#allocation4 + $0x3d8] sm:$0xff]  ;;  %v924_v63 = vunpack.c.h.s8.bf16 %v228_v55  ;;  %v290_v55 = vld [vmem:[#allocation4 + $0x550] sm:$0xff] }
  0x95   :  { %1868 = vmatprep.subr.bf16.mxu0 %v817_v0  ;;  %2114 = vmatprep.subr.bf16.mxu1 %v819_v1  ;;  %v926_v0 = vunpack.c.h.s8.bf16 %v230_v56  ;;  %v937_v1 = vunpack.c.l.s8.bf16 %v241_v61  ;;  %v939_v2 = vunpack.c.l.s8.bf16 %v243_v62  ;;  %v951_v8 = vunpack.c.h.s8.bf16 %v243_v62 }
  0x98   :  { %1869 = vmatpush1.bf16.msra.mxu0 %v816_v4  ;;  %2115 = vmatpush1.bf16.msra.mxu1 %v818_v5  ;;  %v242_v4 = vld [vmem:[#allocation4 + $0x3d0] sm:$0xff]  ;;  %v936_v5 = vunpack.c.l.s8.bf16 %v240_v3 }
  0x99   :  { %1870 = vmatprep.subr.bf16.mxu0 %v829_v6  ;;  %2116 = vmatprep.subr.bf16.mxu1 %v831_v7  ;;  %v938_v6 = vunpack.c.l.s8.bf16 %v242_v4  ;;  %v949_v7 = vunpack.c.h.s8.bf16 %v241_v61  ;;  %v303_v61 = vld [vmem:[#allocation4 + $0x5b8] sm:$0xff] }
  0x9c   :  { %1871 = vmatpush1.bf16.msra.mxu0 %v828_v10  ;;  %2117 = vmatpush1.bf16.msra.mxu1 %v830_v11  ;;  %v255_v10 = vld [vmem:[#allocation4 + $0x438] sm:$0xff]  ;;  %v948_v11 = vunpack.c.h.s8.bf16 %v240_v3  ;;  %v302_v3 = vld [vmem:[#allocation4 + $0x5b0] sm:$0xff] }
  0x9d   :  { %1872 = vmatprep.subr.bf16.mxu0 %v841_v12  ;;  %2118 = vmatprep.subr.bf16.mxu1 %v843_v13  ;;  %v950_v12 = vunpack.c.h.s8.bf16 %v242_v4  ;;  %v961_v13 = vunpack.c.l.s8.bf16 %v253_v9  ;;  %v963_v14 = vunpack.c.l.s8.bf16 %v255_v10  ;;  %v975_v20 = vunpack.c.h.s8.bf16 %v255_v10 }
  0xa0   :  { %1873 = vmatpush1.bf16.msra.mxu0 %v840_v16  ;;  %2119 = vmatpush1.bf16.msra.mxu1 %v842_v17  ;;  %v254_v16 = vld [vmem:[#allocation4 + $0x430] sm:$0xff]  ;;  %v960_v17 = vunpack.c.l.s8.bf16 %v252_v15 }
  0xa1   :  { %1874 = vmatprep.subr.bf16.mxu0 %v853_v18  ;;  %2120 = vmatprep.subr.bf16.mxu1 %v855_v19  ;;  %v962_v18 = vunpack.c.l.s8.bf16 %v254_v16  ;;  %v973_v19 = vunpack.c.h.s8.bf16 %v253_v9  ;;  %v315_v9 = vld [vmem:[#allocation4 + $0x618] sm:$0xff] }
  0xa4   :  { %1875 = vmatpush1.bf16.msra.mxu0 %v852_v22  ;;  %2121 = vmatpush1.bf16.msra.mxu1 %v854_v23  ;;  %v267_v22 = vld [vmem:[#allocation4 + $0x498] sm:$0xff]  ;;  %v972_v23 = vunpack.c.h.s8.bf16 %v252_v15  ;;  %v312_v15 = vld [vmem:[#allocation4 + $0x600] sm:$0xff] }
  0xa5   :  { %1876 = vmatprep.subr.bf16.mxu0 %v865_v24  ;;  %2122 = vmatprep.subr.bf16.mxu1 %v867_v25  ;;  %v974_v24 = vunpack.c.h.s8.bf16 %v254_v16  ;;  %v985_v25 = vunpack.c.l.s8.bf16 %v265_v21  ;;  %v987_v26 = vunpack.c.l.s8.bf16 %v267_v22  ;;  %v999_v32 = vunpack.c.h.s8.bf16 %v267_v22  ;;  %v314_v16 = vld [vmem:[#allocation4 + $0x610] sm:$0xff] }
  0xa6   :  { %v1095_v22 = vunpack.c.h.s8.bf16 %v315_v9 }
  0xa8   :  { %1877 = vmatpush1.bf16.msra.mxu0 %v864_v28  ;;  %2123 = vmatpush1.bf16.msra.mxu1 %v866_v29  ;;  %v266_v28 = vld [vmem:[#allocation4 + $0x490] sm:$0xff]  ;;  %v984_v29 = vunpack.c.l.s8.bf16 %v264_v27 }
  0xa9   :  { %1878 = vmatprep.subr.bf16.mxu0 %v877_v30  ;;  %2124 = vmatprep.subr.bf16.mxu1 %v879_v31  ;;  %v986_v30 = vunpack.c.l.s8.bf16 %v266_v28  ;;  %v997_v31 = vunpack.c.h.s8.bf16 %v265_v21  ;;  %v998_v37 = vunpack.c.h.s8.bf16 %v266_v28 }
  0xac   :  { %1879 = vmatpush1.bf16.msra.mxu0 %v876_v34  ;;  %2125 = vmatpush1.bf16.msra.mxu1 %v878_v36  ;;  %v279_v34 = vld [vmem:[#allocation4 + $0x4f8] sm:$0xff]  ;;  %v996_v36 = vunpack.c.h.s8.bf16 %v264_v27  ;;  %v1094_v27 = vunpack.c.h.s8.bf16 %v314_v16 }
  0xad   :  { %1889 = vmatprep.subr.bf16.mxu0 %v889_v38  ;;  %2135 = vmatprep.subr.bf16.mxu1 %v891_v39  ;;  %v1009_v38 = vunpack.c.l.s8.bf16 %v277_v33  ;;  %v1011_v39 = vunpack.c.l.s8.bf16 %v279_v34 }
  0xaf   :  { %1881 = vmatmul.mubr.bf16.vlgmr.msra.gmra.mrb[0].mxu0 %v4280_v42  ;;  %2127 = vmatmul.mubr.bf16.vlgmr.msra.gmra.mrb[0].mxu1 %v4280_v42 }
  0xb0   :  { %1890 = vmatpush1.bf16.msra.mxu0 %v888_v44  ;;  %2136 = vmatpush1.bf16.msra.mxu1 %v890_v45  ;;  %v1010_v44 = vunpack.c.l.s8.bf16 %v278_v41  ;;  %v1021_v45 = vunpack.c.h.s8.bf16 %v277_v33 }
  0xb1   :  { %1891 = vmatprep.subr.bf16.mxu0 %v901_v46  ;;  %2137 = vmatprep.subr.bf16.mxu1 %v903_v47  ;;  %v1023_v46 = vunpack.c.h.s8.bf16 %v279_v34  ;;  %v289_v47 = vld [vmem:[#allocation4 + $0x548] sm:$0xff] }
  0xb2   :  { %1921 = vmatprep.mubr.bf16.mxu0 %v4282_v50  ;;  %2167 = vmatprep.mubr.bf16.mxu1 %v4282_v50 }
  0xb4   :  { %1892 = vmatpush1.bf16.msra.mxu0 %v900_v51  ;;  %2138 = vmatpush1.bf16.msra.mxu1 %v902_v52  ;;  %v1022_v51 = vunpack.c.h.s8.bf16 %v278_v41  ;;  %v1033_v52 = vunpack.c.l.s8.bf16 %v289_v47 }
  0xb5   :  { %1893 = vmatprep.subr.bf16.mxu0 %v913_v53  ;;  %2139 = vmatprep.subr.bf16.mxu1 %v915_v54  ;;  %v1035_v53 = vunpack.c.l.s8.bf16 %v291_v48  ;;  %v288_v54 = vld [vmem:[#allocation4 + $0x540] sm:$0xff] }
  0xb6   :  { %v1032_v56 = vunpack.c.l.s8.bf16 %v288_v54  ;;  %v1044_v62 = vunpack.c.h.s8.bf16 %v288_v54 }
  0xb8   :  { %1894 = vmatpush1.bf16.msra.mxu0 %v912_v57  ;;  %2140 = vmatpush1.bf16.msra.mxu1 %v914_v58  ;;  %v1034_v57 = vunpack.c.l.s8.bf16 %v290_v55  ;;  %v1045_v58 = vunpack.c.h.s8.bf16 %v289_v47 }
  0xb9   :  { %1895 = vmatprep.subr.bf16.mxu0 %v925_v59  ;;  %2141 = vmatprep.subr.bf16.mxu1 %v927_v60  ;;  %v1047_v59 = vunpack.c.h.s8.bf16 %v291_v48  ;;  %v301_v60 = vld [vmem:[#allocation4 + $0x5a8] sm:$0xff] }
  0xbc   :  { %1896 = vmatpush1.bf16.msra.mxu0 %v924_v63  ;;  %2142 = vmatpush1.bf16.msra.mxu1 %v926_v0  ;;  %v1046_v63 = vunpack.c.h.s8.bf16 %v290_v55  ;;  %v1057_v0 = vunpack.c.l.s8.bf16 %v301_v60 }
  0xbd   :  { %1897 = vmatprep.subr.bf16.mxu0 %v937_v1  ;;  %2143 = vmatprep.subr.bf16.mxu1 %v939_v2  ;;  %v1059_v1 = vunpack.c.l.s8.bf16 %v303_v61  ;;  %v300_v2 = vld [vmem:[#allocation4 + $0x5a0] sm:$0xff] }
  0xbe   :  { %v1056_v4 = vunpack.c.l.s8.bf16 %v300_v2  ;;  %v1068_v10 = vunpack.c.h.s8.bf16 %v300_v2 }
  0xc0   :  { %1898 = vmatpush1.bf16.msra.mxu0 %v936_v5  ;;  %2144 = vmatpush1.bf16.msra.mxu1 %v938_v6  ;;  %v1058_v5 = vunpack.c.l.s8.bf16 %v302_v3  ;;  %v1069_v6 = vunpack.c.h.s8.bf16 %v301_v60 }
  0xc1   :  { %1899 = vmatprep.subr.bf16.mxu0 %v949_v7  ;;  %2145 = vmatprep.subr.bf16.mxu1 %v951_v8  ;;  %v1071_v7 = vunpack.c.h.s8.bf16 %v303_v61  ;;  %v313_v8 = vld [vmem:[#allocation4 + $0x608] sm:$0xff] }
  0xc2   :  { %v1093_v21 = vunpack.c.h.s8.bf16 %v313_v8 }
  0xc4   :  { %1900 = vmatpush1.bf16.msra.mxu0 %v948_v11  ;;  %2146 = vmatpush1.bf16.msra.mxu1 %v950_v12  ;;  %v1070_v11 = vunpack.c.h.s8.bf16 %v302_v3  ;;  %v98_v12 = vld [vmem:[#allocation2 + $0x10] sm:$0xff] }
  0xc5   :  { %1901 = vmatprep.subr.bf16.mxu0 %v961_v13  ;;  %2147 = vmatprep.subr.bf16.mxu1 %v963_v14  ;;  %v1081_v13 = vunpack.c.l.s8.bf16 %v313_v8  ;;  %v1083_v14 = vunpack.c.l.s8.bf16 %v315_v9 }
  0xc8   :  { %1902 = vmatpush1.bf16.msra.mxu0 %v960_v17  ;;  %2148 = vmatpush1.bf16.msra.mxu1 %v962_v18  ;;  %v4288_v17 = vpack.c.bf16 %v98_v12, %v98_v12  ;;  %v101_v18 = vld [vmem:[#allocation2 + $0x28] sm:$0xff]  ;;  %v375_v12 = vld [vmem:[#allocation4 + $0x7f8] sm:$0xff] }
  0xc9   :  { %1903 = vmatprep.subr.bf16.mxu0 %v973_v19  ;;  %2149 = vmatprep.subr.bf16.mxu1 %v975_v20  ;;  %v1080_v19 = vunpack.c.l.s8.bf16 %v312_v15  ;;  %v1082_v20 = vunpack.c.l.s8.bf16 %v314_v16  ;;  %v1203_v16 = vunpack.c.l.s8.bf16 %v375_v12 }
  0xcc   :  { %1904 = vmatpush1.bf16.msra.mxu0 %v972_v23  ;;  %2150 = vmatpush1.bf16.msra.mxu1 %v974_v24  ;;  %v325_v23 = vld [vmem:[#allocation4 + $0x668] sm:$0xff]  ;;  %v327_v24 = vld [vmem:[#allocation4 + $0x678] sm:$0xff] }
  0xcd   :  { %1905 = vmatprep.subr.bf16.mxu0 %v985_v25  ;;  %2151 = vmatprep.subr.bf16.mxu1 %v987_v26  ;;  %v4290_v25 = vpack.c.bf16 %v101_v18, %v101_v18  ;;  %v1092_v26 = vunpack.c.h.s8.bf16 %v312_v15  ;;  %v1105_v28 = vunpack.c.l.s8.bf16 %v325_v23  ;;  %v1117_v34 = vunpack.c.h.s8.bf16 %v325_v23  ;;  %v372_v18 = vld [vmem:[#allocation4 + $0x7e0] sm:$0xff] }
  0xce   :  { %v1215_v23 = vunpack.c.h.s8.bf16 %v375_v12 }
  0xd0   :  { %1906 = vmatpush1.bf16.msra.mxu0 %v984_v29  ;;  %2152 = vmatpush1.bf16.msra.mxu1 %v986_v30  ;;  %v1107_v29 = vunpack.c.l.s8.bf16 %v327_v24  ;;  %v324_v30 = vld [vmem:[#allocation4 + $0x660] sm:$0xff] }
  0xd1   :  { %1907 = vmatprep.subr.bf16.mxu0 %v997_v31  ;;  %2153 = vmatprep.subr.bf16.mxu1 %v999_v32  ;;  %v326_v31 = vld [vmem:[#allocation4 + $0x670] sm:$0xff]  ;;  %v1104_v32 = vunpack.c.l.s8.bf16 %v324_v30 }
  0xd2   :  { %v1106_v33 = vunpack.c.l.s8.bf16 %v326_v31  ;;  %v1118_v40 = vunpack.c.h.s8.bf16 %v326_v31  ;;  %v384_v31 = vld [vmem:[#allocation4 + $0x840] sm:$0xff] }
  0xd4   :  { %1908 = vmatpush1.bf16.msra.mxu0 %v996_v36  ;;  %2154 = vmatpush1.bf16.msra.mxu1 %v998_v37  ;;  %v1119_v36 = vunpack.c.h.s8.bf16 %v327_v24  ;;  %v337_v37 = vld [vmem:[#allocation4 + $0x6c8] sm:$0xff] }
  0xd5   :  { %1909 = vmatprep.subr.bf16.mxu0 %v1009_v38  ;;  %2155 = vmatprep.subr.bf16.mxu1 %v1011_v39  ;;  %v339_v38 = vld [vmem:[#allocation4 + $0x6d8] sm:$0xff]  ;;  %v1116_v39 = vunpack.c.h.s8.bf16 %v324_v30  ;;  %v1129_v41 = vunpack.c.l.s8.bf16 %v337_v37  ;;  %v1141_v48 = vunpack.c.h.s8.bf16 %v337_v37  ;;  %v385_v24 = vld [vmem:[#allocation4 + $0x848] sm:$0xff] }
  0xd8   :  { %1910 = vmatpush1.bf16.msra.mxu0 %v1008_v43  ;;  %2156 = vmatpush1.bf16.msra.mxu1 %v1010_v44  ;;  %v1131_v43 = vunpack.c.l.s8.bf16 %v339_v38  ;;  %v336_v44 = vld [vmem:[#allocation4 + $0x6c0] sm:$0xff] }
  0xd9   :  { %1911 = vmatprep.subr.bf16.mxu0 %v1021_v45  ;;  %2157 = vmatprep.subr.bf16.mxu1 %v1023_v46  ;;  %v338_v45 = vld [vmem:[#allocation4 + $0x6d0] sm:$0xff]  ;;  %v1128_v46 = vunpack.c.l.s8.bf16 %v336_v44 }
  0xda   :  { %v1130_v47 = vunpack.c.l.s8.bf16 %v338_v45  ;;  %v1142_v54 = vunpack.c.h.s8.bf16 %v338_v45  ;;  %v396_v45 = vld [vmem:[#allocation4 + $0x8a0] sm:$0xff] }
  0xdc   :  { %1912 = vmatpush1.bf16.msra.mxu0 %v1020_v49  ;;  %2158 = vmatpush1.bf16.msra.mxu1 %v1022_v51  ;;  %v1143_v49 = vunpack.c.h.s8.bf16 %v339_v38  ;;  %v349_v51 = vld [vmem:[#allocation4 + $0x728] sm:$0xff] }
  0xdd   :  { %1913 = vmatprep.subr.bf16.mxu0 %v1033_v52  ;;  %2159 = vmatprep.subr.bf16.mxu1 %v1035_v53  ;;  %v351_v52 = vld [vmem:[#allocation4 + $0x738] sm:$0xff]  ;;  %v1140_v53 = vunpack.c.h.s8.bf16 %v336_v44  ;;  %v1153_v55 = vunpack.c.l.s8.bf16 %v349_v51  ;;  %v1165_v61 = vunpack.c.h.s8.bf16 %v349_v51  ;;  %v397_v38 = vld [vmem:[#allocation4 + $0x8a8] sm:$0xff] }
  0xe0   :  { %1914 = vmatpush1.bf16.msra.mxu0 %v1032_v56  ;;  %2160 = vmatpush1.bf16.msra.mxu1 %v1034_v57  ;;  %v1155_v56 = vunpack.c.l.s8.bf16 %v351_v52  ;;  %v348_v57 = vld [vmem:[#allocation4 + $0x720] sm:$0xff] }
  0xe1   :  { %1915 = vmatprep.subr.bf16.mxu0 %v1045_v58  ;;  %2161 = vmatprep.subr.bf16.mxu1 %v1047_v59  ;;  %v350_v58 = vld [vmem:[#allocation4 + $0x730] sm:$0xff]  ;;  %v1152_v59 = vunpack.c.l.s8.bf16 %v348_v57 }
  0xe2   :  { %v1154_v60 = vunpack.c.l.s8.bf16 %v350_v58  ;;  %v1166_v2 = vunpack.c.h.s8.bf16 %v350_v58 }
  0xe4   :  { %1916 = vmatpush1.bf16.msra.mxu0 %v1044_v62  ;;  %2162 = vmatpush1.bf16.msra.mxu1 %v1046_v63  ;;  %v1167_v62 = vunpack.c.h.s8.bf16 %v351_v52  ;;  %v361_v63 = vld [vmem:[#allocation4 + $0x788] sm:$0xff] }
  0xe5   :  { %1917 = vmatprep.subr.bf16.mxu0 %v1057_v0  ;;  %2163 = vmatprep.subr.bf16.mxu1 %v1059_v1  ;;  %v363_v0 = vld [vmem:[#allocation4 + $0x798] sm:$0xff]  ;;  %v1164_v1 = vunpack.c.h.s8.bf16 %v348_v57  ;;  %v1177_v3 = vunpack.c.l.s8.bf16 %v361_v63  ;;  %v1189_v9 = vunpack.c.h.s8.bf16 %v361_v63  ;;  %v409_v52 = vld [vmem:[#allocation4 + $0x908] sm:$0xff] }
  0xe6   :  { %v1273_v57 = vunpack.c.l.s8.bf16 %v409_v52 }
  0xe8   :  { %1918 = vmatpush1.bf16.msra.mxu0 %v1056_v4  ;;  %2164 = vmatpush1.bf16.msra.mxu1 %v1058_v5  ;;  %v1179_v4 = vunpack.c.l.s8.bf16 %v363_v0  ;;  %v360_v5 = vld [vmem:[#allocation4 + $0x780] sm:$0xff] }
  0xe9   :  { %1919 = vmatprep.subr.bf16.mxu0 %v1069_v6  ;;  %2165 = vmatprep.subr.bf16.mxu1 %v1071_v7  ;;  %v362_v6 = vld [vmem:[#allocation4 + $0x790] sm:$0xff]  ;;  %v1176_v7 = vunpack.c.l.s8.bf16 %v360_v5 }
  0xea   :  { %v1178_v8 = vunpack.c.l.s8.bf16 %v362_v6 }
  0xec   :  { %1920 = vmatpush1.bf16.msra.mxu0 %v1068_v10  ;;  %2166 = vmatpush1.bf16.msra.mxu1 %v1070_v11  ;;  %v1191_v10 = vunpack.c.h.s8.bf16 %v363_v0  ;;  %v373_v11 = vld [vmem:[#allocation4 + $0x7e8] sm:$0xff] }
  0xed   :  { %1930 = vmatprep.subr.bf16.mxu0 %v1081_v13  ;;  %2176 = vmatprep.subr.bf16.mxu1 %v1083_v14  ;;  %v1188_v13 = vunpack.c.h.s8.bf16 %v360_v5  ;;  %v1190_v14 = vunpack.c.h.s8.bf16 %v362_v6  ;;  %v1201_v15 = vunpack.c.l.s8.bf16 %v373_v11 }
  0xef   :  { %1922 = vmatmul.mubr.bf16.vlgmr.msra.gmra.mrb[0].mxu0 %v4288_v17  ;;  %2168 = vmatmul.mubr.bf16.vlgmr.msra.gmra.mrb[0].mxu1 %v4288_v17 }
  0xf0   :  { %1931 = vmatpush1.bf16.msra.mxu0 %v1080_v19  ;;  %2177 = vmatpush1.bf16.msra.mxu1 %v1082_v20  ;;  %v374_v19 = vld [vmem:[#allocation4 + $0x7f0] sm:$0xff]  ;;  %v1200_v20 = vunpack.c.l.s8.bf16 %v372_v18 }
  0xf1   :  { %1932 = vmatprep.subr.bf16.mxu0 %v1093_v21  ;;  %2178 = vmatprep.subr.bf16.mxu1 %v1095_v22  ;;  %v1202_v21 = vunpack.c.l.s8.bf16 %v374_v19  ;;  %v1213_v22 = vunpack.c.h.s8.bf16 %v373_v11  ;;  %v422_v11 = vld [vmem:[#allocation4 + $0x970] sm:$0xff] }
  0xf2   :  { %1962 = vmatprep.mubr.bf16.mxu0 %v4290_v25  ;;  %2208 = vmatprep.mubr.bf16.mxu1 %v4290_v25 }
  0xf4   :  { %1933 = vmatpush1.bf16.msra.mxu0 %v1092_v26  ;;  %2179 = vmatpush1.bf16.msra.mxu1 %v1094_v27  ;;  %v387_v26 = vld [vmem:[#allocation4 + $0x858] sm:$0xff]  ;;  %v1212_v27 = vunpack.c.h.s8.bf16 %v372_v18 }
  0xf5   :  { %1934 = vmatprep.subr.bf16.mxu0 %v1105_v28  ;;  %2180 = vmatprep.subr.bf16.mxu1 %v1107_v29  ;;  %v1214_v28 = vunpack.c.h.s8.bf16 %v374_v19  ;;  %v1225_v29 = vunpack.c.l.s8.bf16 %v385_v24  ;;  %v1227_v30 = vunpack.c.l.s8.bf16 %v387_v26  ;;  %v1239_v37 = vunpack.c.h.s8.bf16 %v387_v26  ;;  %v435_v18 = vld [vmem:[#allocation4 + $0x9d8] sm:$0xff] }
  0xf8   :  { %1935 = vmatpush1.bf16.msra.mxu0 %v1104_v32  ;;  %2181 = vmatpush1.bf16.msra.mxu1 %v1106_v33  ;;  %v386_v32 = vld [vmem:[#allocation4 + $0x850] sm:$0xff]  ;;  %v1224_v33 = vunpack.c.l.s8.bf16 %v384_v31 }
  0xf9   :  { %1936 = vmatprep.subr.bf16.mxu0 %v1117_v34  ;;  %2182 = vmatprep.subr.bf16.mxu1 %v1119_v36  ;;  %v1226_v34 = vunpack.c.l.s8.bf16 %v386_v32  ;;  %v1237_v36 = vunpack.c.h.s8.bf16 %v385_v24  ;;  %v434_v24 = vld [vmem:[#allocation4 + $0x9d0] sm:$0xff] }
  0xfc   :  { %1937 = vmatpush1.bf16.msra.mxu0 %v1116_v39  ;;  %2183 = vmatpush1.bf16.msra.mxu1 %v1118_v40  ;;  %v399_v39 = vld [vmem:[#allocation4 + $0x8b8] sm:$0xff]  ;;  %v1236_v40 = vunpack.c.h.s8.bf16 %v384_v31 }
  0xfd   :  { %1938 = vmatprep.subr.bf16.mxu0 %v1129_v41  ;;  %2184 = vmatprep.subr.bf16.mxu1 %v1131_v43  ;;  %v1238_v41 = vunpack.c.h.s8.bf16 %v386_v32  ;;  %v1249_v43 = vunpack.c.l.s8.bf16 %v397_v38  ;;  %v1251_v44 = vunpack.c.l.s8.bf16 %v399_v39  ;;  %v1263_v51 = vunpack.c.h.s8.bf16 %v399_v39  ;;  %v447_v31 = vld [vmem:[#allocation4 + $0xa38] sm:$0xff] }
 0x100   :  { %1939 = vmatpush1.bf16.msra.mxu0 %v1128_v46  ;;  %2185 = vmatpush1.bf16.msra.mxu1 %v1130_v47  ;;  %v398_v46 = vld [vmem:[#allocation4 + $0x8b0] sm:$0xff]  ;;  %v1248_v47 = vunpack.c.l.s8.bf16 %v396_v45 }
 0x101   :  { %1940 = vmatprep.subr.bf16.mxu0 %v1141_v48  ;;  %2186 = vmatprep.subr.bf16.mxu1 %v1143_v49  ;;  %v1250_v48 = vunpack.c.l.s8.bf16 %v398_v46  ;;  %v1261_v49 = vunpack.c.h.s8.bf16 %v397_v38  ;;  %v446_v38 = vld [vmem:[#allocation4 + $0xa30] sm:$0xff] }
 0x104   :  { %1941 = vmatpush1.bf16.msra.mxu0 %v1140_v53  ;;  %2187 = vmatpush1.bf16.msra.mxu1 %v1142_v54  ;;  %v411_v53 = vld [vmem:[#allocation4 + $0x918] sm:$0xff]  ;;  %v1260_v54 = vunpack.c.h.s8.bf16 %v396_v45 }
 0x105   :  { %1942 = vmatprep.subr.bf16.mxu0 %v1153_v55  ;;  %2188 = vmatprep.subr.bf16.mxu1 %v1155_v56  ;;  %v1262_v55 = vunpack.c.h.s8.bf16 %v398_v46  ;;  %v100_v56 = vld [vmem:[#allocation2 + $0x20] sm:$0xff]  ;;  %v1275_v58 = vunpack.c.l.s8.bf16 %v411_v53  ;;  %v459_v45 = vld [vmem:[#allocation4 + $0xa98] sm:$0xff] }
 0x108   :  { %1943 = vmatpush1.bf16.msra.mxu0 %v1152_v59  ;;  %2189 = vmatpush1.bf16.msra.mxu1 %v1154_v60  ;;  %v408_v59 = vld [vmem:[#allocation4 + $0x900] sm:$0xff]  ;;  %v410_v60 = vld [vmem:[#allocation4 + $0x910] sm:$0xff] }
 0x109   :  { %1944 = vmatprep.subr.bf16.mxu0 %v1165_v61  ;;  %2190 = vmatprep.subr.bf16.mxu1 %v1167_v62  ;;  %v4296_v61 = vpack.c.bf16 %v100_v56, %v100_v56  ;;  %v103_v62 = vld [vmem:[#allocation2 + $0x38] sm:$0xff]  ;;  %v1272_v63 = vunpack.c.l.s8.bf16 %v408_v59  ;;  %v1274_v0 = vunpack.c.l.s8.bf16 %v410_v60  ;;  %v1284_v6 = vunpack.c.h.s8.bf16 %v408_v59 }
 0x10a   :  { %v4298_v5 = vpack.c.bf16 %v103_v62, %v103_v62  ;;  %v1383_v56 = vunpack.c.h.s8.bf16 %v459_v45 }
 0x10c   :  { %1945 = vmatpush1.bf16.msra.mxu0 %v1164_v1  ;;  %2191 = vmatpush1.bf16.msra.mxu1 %v1166_v2  ;;  %v1285_v1 = vunpack.c.h.s8.bf16 %v409_v52  ;;  %v1287_v2 = vunpack.c.h.s8.bf16 %v411_v53  ;;  %v458_v52 = vld [vmem:[#allocation4 + $0xa90] sm:$0xff] }
 0x10d   :  { %1946 = vmatprep.subr.bf16.mxu0 %v1177_v3  ;;  %2192 = vmatprep.subr.bf16.mxu1 %v1179_v4  ;;  %v421_v3 = vld [vmem:[#allocation4 + $0x968] sm:$0xff]  ;;  %v423_v4 = vld [vmem:[#allocation4 + $0x978] sm:$0xff] }
 0x110   :  { %1947 = vmatpush1.bf16.msra.mxu0 %v1176_v7  ;;  %2193 = vmatpush1.bf16.msra.mxu1 %v1178_v8  ;;  %v1286_v7 = vunpack.c.h.s8.bf16 %v410_v60  ;;  %v1297_v8 = vunpack.c.l.s8.bf16 %v421_v3  ;;  %v1382_v60 = vunpack.c.h.s8.bf16 %v458_v52 }
 0x111   :  { %1948 = vmatprep.subr.bf16.mxu0 %v1189_v9  ;;  %2194 = vmatprep.subr.bf16.mxu1 %v1191_v10  ;;  %v1299_v9 = vunpack.c.l.s8.bf16 %v423_v4  ;;  %v420_v10 = vld [vmem:[#allocation4 + $0x960] sm:$0xff] }
 0x112   :  { %v1296_v12 = vunpack.c.l.s8.bf16 %v420_v10  ;;  %v1308_v19 = vunpack.c.h.s8.bf16 %v420_v10 }
 0x114   :  { %1949 = vmatpush1.bf16.msra.mxu0 %v1188_v13  ;;  %2195 = vmatpush1.bf16.msra.mxu1 %v1190_v14  ;;  %v1298_v13 = vunpack.c.l.s8.bf16 %v422_v11  ;;  %v1309_v14 = vunpack.c.h.s8.bf16 %v421_v3 }
 0x115   :  { %1950 = vmatprep.subr.bf16.mxu0 %v1201_v15  ;;  %2196 = vmatprep.subr.bf16.mxu1 %v1203_v16  ;;  %v1311_v15 = vunpack.c.h.s8.bf16 %v423_v4  ;;  %v433_v16 = vld [vmem:[#allocation4 + $0x9c8] sm:$0xff] }
 0x118   :  { %1951 = vmatpush1.bf16.msra.mxu0 %v1200_v20  ;;  %2197 = vmatpush1.bf16.msra.mxu1 %v1202_v21  ;;  %v1310_v20 = vunpack.c.h.s8.bf16 %v422_v11  ;;  %v1321_v21 = vunpack.c.l.s8.bf16 %v433_v16 }
 0x119   :  { %1952 = vmatprep.subr.bf16.mxu0 %v1213_v22  ;;  %2198 = vmatprep.subr.bf16.mxu1 %v1215_v23  ;;  %v1323_v22 = vunpack.c.l.s8.bf16 %v435_v18  ;;  %v432_v23 = vld [vmem:[#allocation4 + $0x9c0] sm:$0xff] }
 0x11a   :  { %v1320_v26 = vunpack.c.l.s8.bf16 %v432_v23  ;;  %v1332_v32 = vunpack.c.h.s8.bf16 %v432_v23 }
 0x11c   :  { %1953 = vmatpush1.bf16.msra.mxu0 %v1212_v27  ;;  %2199 = vmatpush1.bf16.msra.mxu1 %v1214_v28  ;;  %v1322_v27 = vunpack.c.l.s8.bf16 %v434_v24  ;;  %v1333_v28 = vunpack.c.h.s8.bf16 %v433_v16 }
 0x11d   :  { %1954 = vmatprep.subr.bf16.mxu0 %v1225_v29  ;;  %2200 = vmatprep.subr.bf16.mxu1 %v1227_v30  ;;  %v1335_v29 = vunpack.c.h.s8.bf16 %v435_v18  ;;  %v445_v30 = vld [vmem:[#allocation4 + $0xa28] sm:$0xff] }
 0x120   :  { %1955 = vmatpush1.bf16.msra.mxu0 %v1224_v33  ;;  %2201 = vmatpush1.bf16.msra.mxu1 %v1226_v34  ;;  %v1334_v33 = vunpack.c.h.s8.bf16 %v434_v24  ;;  %v1345_v34 = vunpack.c.l.s8.bf16 %v445_v30 }
 0x121   :  { %1956 = vmatprep.subr.bf16.mxu0 %v1237_v36  ;;  %2202 = vmatprep.subr.bf16.mxu1 %v1239_v37  ;;  %v1347_v36 = vunpack.c.l.s8.bf16 %v447_v31  ;;  %v444_v37 = vld [vmem:[#allocation4 + $0xa20] sm:$0xff] }
 0x122   :  { %v1344_v39 = vunpack.c.l.s8.bf16 %v444_v37  ;;  %v1356_v46 = vunpack.c.h.s8.bf16 %v444_v37 }
 0x124   :  { %1957 = vmatpush1.bf16.msra.mxu0 %v1236_v40  ;;  %2203 = vmatpush1.bf16.msra.mxu1 %v1238_v41  ;;  %v1346_v40 = vunpack.c.l.s8.bf16 %v446_v38  ;;  %v1357_v41 = vunpack.c.h.s8.bf16 %v445_v30 }
 0x125   :  { %1958 = vmatprep.subr.bf16.mxu0 %v1249_v43  ;;  %2204 = vmatprep.subr.bf16.mxu1 %v1251_v44  ;;  %v1359_v43 = vunpack.c.h.s8.bf16 %v447_v31  ;;  %v457_v44 = vld [vmem:[#allocation4 + $0xa88] sm:$0xff] }
 0x128   :  { %1959 = vmatpush1.bf16.msra.mxu0 %v1248_v47  ;;  %2205 = vmatpush1.bf16.msra.mxu1 %v1250_v48  ;;  %v1358_v47 = vunpack.c.h.s8.bf16 %v446_v38  ;;  %v1369_v48 = vunpack.c.l.s8.bf16 %v457_v44  ;;  %v102_v38 = vld [vmem:[#allocation2 + $0x30] sm:$0xff] }
 0x129   :  { %1960 = vmatprep.subr.bf16.mxu0 %v1261_v49  ;;  %2206 = vmatprep.subr.bf16.mxu1 %v1263_v51  ;;  %v1371_v49 = vunpack.c.l.s8.bf16 %v459_v45  ;;  %v456_v51 = vld [vmem:[#allocation4 + $0xa80] sm:$0xff]  ;;  %v105_v45 = vld [vmem:[#allocation2 + $0x48] sm:$0xff] }
 0x12a   :  { %v1368_v53 = vunpack.c.l.s8.bf16 %v456_v51  ;;  %v1380_v59 = vunpack.c.h.s8.bf16 %v456_v51  ;;  %v517_v51 = vld [vmem:[#allocation4 + $0xc68] sm:$0xff] }
 0x12c   :  { %1961 = vmatpush1.bf16.msra.mxu0 %v1260_v54  ;;  %2207 = vmatpush1.bf16.msra.mxu1 %v1262_v55  ;;  %v1370_v54 = vunpack.c.l.s8.bf16 %v458_v52  ;;  %v1381_v55 = vunpack.c.h.s8.bf16 %v457_v44  ;;  %v4304_v44 = vpack.c.bf16 %v102_v38, %v102_v38  ;;  %v519_v52 = vld [vmem:[#allocation4 + $0xc78] sm:$0xff] }
 0x12d   :  { %1971 = vmatprep.subr.bf16.mxu0 %v1273_v57  ;;  %2217 = vmatprep.subr.bf16.mxu1 %v1275_v58  ;;  %v469_v57 = vld [vmem:[#allocation4 + $0xae8] sm:$0xff]  ;;  %v471_v58 = vld [vmem:[#allocation4 + $0xaf8] sm:$0xff] }
 0x12e   :  { %v1393_v62 = vunpack.c.l.s8.bf16 %v469_v57  ;;  %v1405_v4 = vunpack.c.h.s8.bf16 %v469_v57  ;;  %v1491_v57 = vunpack.c.l.s8.bf16 %v519_v52 }
 0x12f   :  { %1963 = vmatmul.mubr.bf16.vlgmr.msra.gmra.mrb[0].mxu0 %v4296_v61  ;;  %2209 = vmatmul.mubr.bf16.vlgmr.msra.gmra.mrb[0].mxu1 %v4296_v61 }
 0x130   :  { %1972 = vmatpush1.bf16.msra.mxu0 %v1272_v63  ;;  %2218 = vmatpush1.bf16.msra.mxu1 %v1274_v0  ;;  %v1395_v63 = vunpack.c.l.s8.bf16 %v471_v58  ;;  %v468_v0 = vld [vmem:[#allocation4 + $0xae0] sm:$0xff] }
 0x131   :  { %1973 = vmatprep.subr.bf16.mxu0 %v1285_v1  ;;  %2219 = vmatprep.subr.bf16.mxu1 %v1287_v2  ;;  %v470_v1 = vld [vmem:[#allocation4 + $0xaf0] sm:$0xff]  ;;  %v1392_v2 = vunpack.c.l.s8.bf16 %v468_v0 }
 0x132   :  { %2003 = vmatprep.mubr.bf16.mxu0 %v4298_v5  ;;  %2249 = vmatprep.mubr.bf16.mxu1 %v4298_v5  ;;  %v1394_v3 = vunpack.c.l.s8.bf16 %v470_v1  ;;  %v1406_v10 = vunpack.c.h.s8.bf16 %v470_v1  ;;  %v529_v1 = vld [vmem:[#allocation4 + $0xcc8] sm:$0xff] }
 0x134   :  { %1974 = vmatpush1.bf16.msra.mxu0 %v1284_v6  ;;  %2220 = vmatpush1.bf16.msra.mxu1 %v1286_v7  ;;  %v1407_v6 = vunpack.c.h.s8.bf16 %v471_v58  ;;  %v481_v7 = vld [vmem:[#allocation4 + $0xb48] sm:$0xff]  ;;  %v516_v58 = vld [vmem:[#allocation4 + $0xc60] sm:$0xff] }
 0x135   :  { %1975 = vmatprep.subr.bf16.mxu0 %v1297_v8  ;;  %2221 = vmatprep.subr.bf16.mxu1 %v1299_v9  ;;  %v483_v8 = vld [vmem:[#allocation4 + $0xb58] sm:$0xff]  ;;  %v1404_v9 = vunpack.c.h.s8.bf16 %v468_v0  ;;  %v1417_v11 = vunpack.c.l.s8.bf16 %v481_v7  ;;  %v1429_v18 = vunpack.c.h.s8.bf16 %v481_v7  ;;  %v1503_v0 = vunpack.c.h.s8.bf16 %v519_v52 }
 0x138   :  { %1976 = vmatpush1.bf16.msra.mxu0 %v1296_v12  ;;  %2222 = vmatpush1.bf16.msra.mxu1 %v1298_v13  ;;  %v1419_v12 = vunpack.c.l.s8.bf16 %v483_v8  ;;  %v480_v13 = vld [vmem:[#allocation4 + $0xb40] sm:$0xff] }
 0x139   :  { %1977 = vmatprep.subr.bf16.mxu0 %v1309_v14  ;;  %2223 = vmatprep.subr.bf16.mxu1 %v1311_v15  ;;  %v482_v14 = vld [vmem:[#allocation4 + $0xb50] sm:$0xff]  ;;  %v1416_v15 = vunpack.c.l.s8.bf16 %v480_v13 }
 0x13a   :  { %v1418_v16 = vunpack.c.l.s8.bf16 %v482_v14  ;;  %v1430_v23 = vunpack.c.h.s8.bf16 %v482_v14  ;;  %v541_v14 = vld [vmem:[#allocation4 + $0xd28] sm:$0xff] }
 0x13c   :  { %1978 = vmatpush1.bf16.msra.mxu0 %v1308_v19  ;;  %2224 = vmatpush1.bf16.msra.mxu1 %v1310_v20  ;;  %v1431_v19 = vunpack.c.h.s8.bf16 %v483_v8  ;;  %v493_v20 = vld [vmem:[#allocation4 + $0xba8] sm:$0xff]  ;;  %v528_v8 = vld [vmem:[#allocation4 + $0xcc0] sm:$0xff] }
 0x13d   :  { %1979 = vmatprep.subr.bf16.mxu0 %v1321_v21  ;;  %2225 = vmatprep.subr.bf16.mxu1 %v1323_v22  ;;  %v495_v21 = vld [vmem:[#allocation4 + $0xbb8] sm:$0xff]  ;;  %v1428_v22 = vunpack.c.h.s8.bf16 %v480_v13  ;;  %v1441_v24 = vunpack.c.l.s8.bf16 %v493_v20  ;;  %v1453_v31 = vunpack.c.h.s8.bf16 %v493_v20 }
 0x140   :  { %1980 = vmatpush1.bf16.msra.mxu0 %v1320_v26  ;;  %2226 = vmatpush1.bf16.msra.mxu1 %v1322_v27  ;;  %v1443_v26 = vunpack.c.l.s8.bf16 %v495_v21  ;;  %v492_v27 = vld [vmem:[#allocation4 + $0xba0] sm:$0xff] }
 0x141   :  { %1981 = vmatprep.subr.bf16.mxu0 %v1333_v28  ;;  %2227 = vmatprep.subr.bf16.mxu1 %v1335_v29  ;;  %v494_v28 = vld [vmem:[#allocation4 + $0xbb0] sm:$0xff]  ;;  %v1440_v29 = vunpack.c.l.s8.bf16 %v492_v27 }
 0x142   :  { %v1442_v30 = vunpack.c.l.s8.bf16 %v494_v28  ;;  %v1454_v37 = vunpack.c.h.s8.bf16 %v494_v28  ;;  %v553_v28 = vld [vmem:[#allocation4 + $0xd88] sm:$0xff] }
 0x144   :  { %1982 = vmatpush1.bf16.msra.mxu0 %v1332_v32  ;;  %2228 = vmatpush1.bf16.msra.mxu1 %v1334_v33  ;;  %v1455_v32 = vunpack.c.h.s8.bf16 %v495_v21  ;;  %v505_v33 = vld [vmem:[#allocation4 + $0xc08] sm:$0xff]  ;;  %v540_v21 = vld [vmem:[#allocation4 + $0xd20] sm:$0xff] }
 0x145   :  { %1983 = vmatprep.subr.bf16.mxu0 %v1345_v34  ;;  %2229 = vmatprep.subr.bf16.mxu1 %v1347_v36  ;;  %v507_v34 = vld [vmem:[#allocation4 + $0xc18] sm:$0xff]  ;;  %v1452_v36 = vunpack.c.h.s8.bf16 %v492_v27 }
 0x148   :  { %1984 = vmatpush1.bf16.msra.mxu0 %v1344_v39  ;;  %2230 = vmatpush1.bf16.msra.mxu1 %v1346_v40  ;;  %v1465_v39 = vunpack.c.l.s8.bf16 %v505_v33  ;;  %v1467_v40 = vunpack.c.l.s8.bf16 %v507_v34 }
 0x149   :  { %1985 = vmatprep.subr.bf16.mxu0 %v1357_v41  ;;  %2231 = vmatprep.subr.bf16.mxu1 %v1359_v43  ;;  %v504_v41 = vld [vmem:[#allocation4 + $0xc00] sm:$0xff]  ;;  %v506_v43 = vld [vmem:[#allocation4 + $0xc10] sm:$0xff] }
 0x14c   :  { %1986 = vmatpush1.bf16.msra.mxu0 %v1356_v46  ;;  %2232 = vmatpush1.bf16.msra.mxu1 %v1358_v47  ;;  %v1464_v46 = vunpack.c.l.s8.bf16 %v504_v41  ;;  %v1466_v47 = vunpack.c.l.s8.bf16 %v506_v43 }
 0x14d   :  { %1987 = vmatprep.subr.bf16.mxu0 %v1369_v48  ;;  %2233 = vmatprep.subr.bf16.mxu1 %v1371_v49  ;;  %v1477_v48 = vunpack.c.h.s8.bf16 %v505_v33  ;;  %v1479_v49 = vunpack.c.h.s8.bf16 %v507_v34  ;;  %v552_v34 = vld [vmem:[#allocation4 + $0xd80] sm:$0xff] }
 0x150   :  { %1988 = vmatpush1.bf16.msra.mxu0 %v1368_v53  ;;  %2234 = vmatpush1.bf16.msra.mxu1 %v1370_v54  ;;  %v4306_v53 = vpack.c.bf16 %v105_v45, %v105_v45  ;;  %v1476_v54 = vunpack.c.h.s8.bf16 %v504_v41  ;;  %v565_v41 = vld [vmem:[#allocation4 + $0xde8] sm:$0xff]  ;;  %v1572_v45 = vunpack.c.h.s8.bf16 %v552_v34 }
 0x151   :  { %1989 = vmatprep.subr.bf16.mxu0 %v1381_v55  ;;  %2235 = vmatprep.subr.bf16.mxu1 %v1383_v56  ;;  %v1478_v55 = vunpack.c.h.s8.bf16 %v506_v43  ;;  %v1489_v56 = vunpack.c.l.s8.bf16 %v517_v51  ;;  %v567_v43 = vld [vmem:[#allocation4 + $0xdf8] sm:$0xff] }
 0x154   :  { %1990 = vmatpush1.bf16.msra.mxu0 %v1380_v59  ;;  %2236 = vmatpush1.bf16.msra.mxu1 %v1382_v60  ;;  %v518_v59 = vld [vmem:[#allocation4 + $0xc70] sm:$0xff]  ;;  %v1488_v60 = vunpack.c.l.s8.bf16 %v516_v58 }
 0x155   :  { %1991 = vmatprep.subr.bf16.mxu0 %v1393_v62  ;;  %2237 = vmatprep.subr.bf16.mxu1 %v1395_v63  ;;  %v1490_v62 = vunpack.c.l.s8.bf16 %v518_v59  ;;  %v1501_v63 = vunpack.c.h.s8.bf16 %v517_v51  ;;  %v566_v51 = vld [vmem:[#allocation4 + $0xdf0] sm:$0xff] }
 0x158   :  { %1992 = vmatpush1.bf16.msra.mxu0 %v1392_v2  ;;  %2238 = vmatpush1.bf16.msra.mxu1 %v1394_v3  ;;  %v531_v2 = vld [vmem:[#allocation4 + $0xcd8] sm:$0xff]  ;;  %v1500_v3 = vunpack.c.h.s8.bf16 %v516_v58 }
 0x159   :  { %1993 = vmatprep.subr.bf16.mxu0 %v1405_v4  ;;  %2239 = vmatprep.subr.bf16.mxu1 %v1407_v6  ;;  %v1502_v4 = vunpack.c.h.s8.bf16 %v518_v59  ;;  %v1513_v6 = vunpack.c.l.s8.bf16 %v529_v1  ;;  %v1515_v7 = vunpack.c.l.s8.bf16 %v531_v2  ;;  %v1527_v13 = vunpack.c.h.s8.bf16 %v531_v2  ;;  %v579_v58 = vld [vmem:[#allocation4 + $0xe58] sm:$0xff] }
 0x15c   :  { %1994 = vmatpush1.bf16.msra.mxu0 %v1404_v9  ;;  %2240 = vmatpush1.bf16.msra.mxu1 %v1406_v10  ;;  %v530_v9 = vld [vmem:[#allocation4 + $0xcd0] sm:$0xff]  ;;  %v1512_v10 = vunpack.c.l.s8.bf16 %v528_v8 }
 0x15d   :  { %1995 = vmatprep.subr.bf16.mxu0 %v1417_v11  ;;  %2241 = vmatprep.subr.bf16.mxu1 %v1419_v12  ;;  %v1514_v11 = vunpack.c.l.s8.bf16 %v530_v9  ;;  %v1525_v12 = vunpack.c.h.s8.bf16 %v529_v1  ;;  %v578_v1 = vld [vmem:[#allocation4 + $0xe50] sm:$0xff] }
 0x160   :  { %1996 = vmatpush1.bf16.msra.mxu0 %v1416_v15  ;;  %2242 = vmatpush1.bf16.msra.mxu1 %v1418_v16  ;;  %v543_v15 = vld [vmem:[#allocation4 + $0xd38] sm:$0xff]  ;;  %v1524_v16 = vunpack.c.h.s8.bf16 %v528_v8 }
 0x161   :  { %1997 = vmatprep.subr.bf16.mxu0 %v1429_v18  ;;  %2243 = vmatprep.subr.bf16.mxu1 %v1431_v19  ;;  %v1526_v18 = vunpack.c.h.s8.bf16 %v530_v9  ;;  %v1537_v19 = vunpack.c.l.s8.bf16 %v541_v14  ;;  %v1539_v20 = vunpack.c.l.s8.bf16 %v543_v15  ;;  %v1551_v27 = vunpack.c.h.s8.bf16 %v543_v15  ;;  %v591_v8 = vld [vmem:[#allocation4 + $0xeb8] sm:$0xff] }
 0x164   :  { %1998 = vmatpush1.bf16.msra.mxu0 %v1428_v22  ;;  %2244 = vmatpush1.bf16.msra.mxu1 %v1430_v23  ;;  %v542_v22 = vld [vmem:[#allocation4 + $0xd30] sm:$0xff]  ;;  %v1536_v23 = vunpack.c.l.s8.bf16 %v540_v21 }
 0x165   :  { %1999 = vmatprep.subr.bf16.mxu0 %v1441_v24  ;;  %2245 = vmatprep.subr.bf16.mxu1 %v1443_v26  ;;  %v1538_v24 = vunpack.c.l.s8.bf16 %v542_v22  ;;  %v1549_v26 = vunpack.c.h.s8.bf16 %v541_v14  ;;  %v590_v14 = vld [vmem:[#allocation4 + $0xeb0] sm:$0xff] }
 0x168   :  { %2000 = vmatpush1.bf16.msra.mxu0 %v1440_v29  ;;  %2246 = vmatpush1.bf16.msra.mxu1 %v1442_v30  ;;  %v555_v29 = vld [vmem:[#allocation4 + $0xd98] sm:$0xff]  ;;  %v1548_v30 = vunpack.c.h.s8.bf16 %v540_v21 }
 0x169   :  { %2001 = vmatprep.subr.bf16.mxu0 %v1453_v31  ;;  %2247 = vmatprep.subr.bf16.mxu1 %v1455_v32  ;;  %v1550_v31 = vunpack.c.h.s8.bf16 %v542_v22  ;;  %v1561_v32 = vunpack.c.l.s8.bf16 %v553_v28  ;;  %v1563_v33 = vunpack.c.l.s8.bf16 %v555_v29  ;;  %v603_v21 = vld [vmem:[#allocation4 + $0xf18] sm:$0xff] }
 0x16c   :  { %2002 = vmatpush1.bf16.msra.mxu0 %v1452_v36  ;;  %2248 = vmatpush1.bf16.msra.mxu1 %v1454_v37  ;;  %v554_v36 = vld [vmem:[#allocation4 + $0xd90] sm:$0xff]  ;;  %v1560_v37 = vunpack.c.l.s8.bf16 %v552_v34 }
 0x16d   :  { %2012 = vmatprep.subr.bf16.mxu0 %v1465_v39  ;;  %2258 = vmatprep.subr.bf16.mxu1 %v1467_v40  ;;  %v1562_v38 = vunpack.c.l.s8.bf16 %v554_v36  ;;  %v1573_v39 = vunpack.c.h.s8.bf16 %v553_v28  ;;  %v1575_v40 = vunpack.c.h.s8.bf16 %v555_v29  ;;  %v600_v28 = vld [vmem:[#allocation4 + $0xf00] sm:$0xff]  ;;  %v602_v29 = vld [vmem:[#allocation4 + $0xf10] sm:$0xff] }
 0x16f   :  { %2004 = vmatmul.mubr.bf16.vlgmr.msra.gmra.mrb[0].mxu0 %v4304_v44  ;;  %2250 = vmatmul.mubr.bf16.vlgmr.msra.gmra.mrb[0].mxu1 %v4304_v44 }
 0x170   :  { %2013 = vmatpush1.bf16.msra.mxu0 %v1464_v46  ;;  %2259 = vmatpush1.bf16.msra.mxu1 %v1466_v47  ;;  %v1574_v46 = vunpack.c.h.s8.bf16 %v554_v36  ;;  %v1585_v47 = vunpack.c.l.s8.bf16 %v565_v41  ;;  %v1671_v36 = vunpack.c.h.s8.bf16 %v603_v21 }
 0x171   :  { %2014 = vmatprep.subr.bf16.mxu0 %v1477_v48  ;;  %2260 = vmatprep.subr.bf16.mxu1 %v1479_v49  ;;  %v1587_v48 = vunpack.c.l.s8.bf16 %v567_v43  ;;  %v564_v49 = vld [vmem:[#allocation4 + $0xde0] sm:$0xff] }
 0x172   :  { %2044 = vmatprep.mubr.bf16.mxu0 %v4306_v53  ;;  %2290 = vmatprep.mubr.bf16.mxu1 %v4306_v53  ;;  %v1584_v52 = vunpack.c.l.s8.bf16 %v564_v49  ;;  %v1596_v59 = vunpack.c.h.s8.bf16 %v564_v49 }
 0x174   :  { %2015 = vmatpush1.bf16.msra.mxu0 %v1476_v54  ;;  %2261 = vmatpush1.bf16.msra.mxu1 %v1478_v55  ;;  %v1586_v54 = vunpack.c.l.s8.bf16 %v566_v51  ;;  %v1597_v55 = vunpack.c.h.s8.bf16 %v565_v41  ;;  %v1670_v41 = vunpack.c.h.s8.bf16 %v602_v29 }
 0x175   :  { %2016 = vmatprep.subr.bf16.mxu0 %v1489_v56  ;;  %2262 = vmatprep.subr.bf16.mxu1 %v1491_v57  ;;  %v1599_v56 = vunpack.c.h.s8.bf16 %v567_v43  ;;  %v577_v57 = vld [vmem:[#allocation4 + $0xe48] sm:$0xff] }
 0x178   :  { %2017 = vmatpush1.bf16.msra.mxu0 %v1488_v60  ;;  %2263 = vmatpush1.bf16.msra.mxu1 %v1490_v62  ;;  %v1598_v60 = vunpack.c.h.s8.bf16 %v566_v51  ;;  %v1609_v62 = vunpack.c.l.s8.bf16 %v577_v57 }
 0x179   :  { %2018 = vmatprep.subr.bf16.mxu0 %v1501_v63  ;;  %2264 = vmatprep.subr.bf16.mxu1 %v1503_v0  ;;  %v1611_v63 = vunpack.c.l.s8.bf16 %v579_v58  ;;  %v576_v0 = vld [vmem:[#allocation4 + $0xe40] sm:$0xff] }
 0x17a   :  { %v1608_v2 = vunpack.c.l.s8.bf16 %v576_v0  ;;  %v1620_v9 = vunpack.c.h.s8.bf16 %v576_v0 }
 0x17c   :  { %2019 = vmatpush1.bf16.msra.mxu0 %v1500_v3  ;;  %2265 = vmatpush1.bf16.msra.mxu1 %v1502_v4  ;;  %v1610_v3 = vunpack.c.l.s8.bf16 %v578_v1  ;;  %v1621_v4 = vunpack.c.h.s8.bf16 %v577_v57 }
 0x17d   :  { %2020 = vmatprep.subr.bf16.mxu0 %v1513_v6  ;;  %2266 = vmatprep.subr.bf16.mxu1 %v1515_v7  ;;  %v1623_v6 = vunpack.c.h.s8.bf16 %v579_v58  ;;  %v589_v7 = vld [vmem:[#allocation4 + $0xea8] sm:$0xff] }
 0x180   :  { %2021 = vmatpush1.bf16.msra.mxu0 %v1512_v10  ;;  %2267 = vmatpush1.bf16.msra.mxu1 %v1514_v11  ;;  %v1622_v10 = vunpack.c.h.s8.bf16 %v578_v1  ;;  %v1633_v11 = vunpack.c.l.s8.bf16 %v589_v7 }
 0x181   :  { %2022 = vmatprep.subr.bf16.mxu0 %v1525_v12  ;;  %2268 = vmatprep.subr.bf16.mxu1 %v1527_v13  ;;  %v1635_v12 = vunpack.c.l.s8.bf16 %v591_v8  ;;  %v588_v13 = vld [vmem:[#allocation4 + $0xea0] sm:$0xff] }
 0x182   :  { %v1632_v15 = vunpack.c.l.s8.bf16 %v588_v13  ;;  %v1644_v22 = vunpack.c.h.s8.bf16 %v588_v13 }
 0x184   :  { %2023 = vmatpush1.bf16.msra.mxu0 %v1524_v16  ;;  %2269 = vmatpush1.bf16.msra.mxu1 %v1526_v18  ;;  %v1634_v16 = vunpack.c.l.s8.bf16 %v590_v14  ;;  %v1645_v18 = vunpack.c.h.s8.bf16 %v589_v7 }
 0x185   :  { %2024 = vmatprep.subr.bf16.mxu0 %v1537_v19  ;;  %2270 = vmatprep.subr.bf16.mxu1 %v1539_v20  ;;  %v1647_v19 = vunpack.c.h.s8.bf16 %v591_v8  ;;  %v601_v20 = vld [vmem:[#allocation4 + $0xf08] sm:$0xff] }
 0x186   :  { %v1669_v34 = vunpack.c.h.s8.bf16 %v601_v20 }
 0x188   :  { %2025 = vmatpush1.bf16.msra.mxu0 %v1536_v23  ;;  %2271 = vmatpush1.bf16.msra.mxu1 %v1538_v24  ;;  %v1646_v23 = vunpack.c.h.s8.bf16 %v590_v14  ;;  %v104_v24 = vld [vmem:[#allocation2 + $0x40] sm:$0xff] }
 0x189   :  { %2026 = vmatprep.subr.bf16.mxu0 %v1549_v26  ;;  %2272 = vmatprep.subr.bf16.mxu1 %v1551_v27  ;;  %v1657_v26 = vunpack.c.l.s8.bf16 %v601_v20  ;;  %v1659_v27 = vunpack.c.l.s8.bf16 %v603_v21 }
 0x18c   :  { %2027 = vmatpush1.bf16.msra.mxu0 %v1548_v30  ;;  %2273 = vmatpush1.bf16.msra.mxu1 %v1550_v31  ;;  %v4312_v30 = vpack.c.bf16 %v104_v24, %v104_v24  ;;  %v107_v31 = vld [vmem:[#allocation2 + $0x58] sm:$0xff]  ;;  %v650_v24 = vld [vmem:[#allocation4 + $0x1090] sm:$0xff] }
 0x18d   :  { %2028 = vmatprep.subr.bf16.mxu0 %v1561_v32  ;;  %2274 = vmatprep.subr.bf16.mxu1 %v1563_v33  ;;  %v1656_v32 = vunpack.c.l.s8.bf16 %v600_v28  ;;  %v1658_v33 = vunpack.c.l.s8.bf16 %v602_v29 }
 0x190   :  { %2029 = vmatpush1.bf16.msra.mxu0 %v1560_v37  ;;  %2275 = vmatpush1.bf16.msra.mxu1 %v1562_v38  ;;  %v613_v37 = vld [vmem:[#allocation4 + $0xf68] sm:$0xff]  ;;  %v615_v38 = vld [vmem:[#allocation4 + $0xf78] sm:$0xff] }
 0x191   :  { %2030 = vmatprep.subr.bf16.mxu0 %v1573_v39  ;;  %2276 = vmatprep.subr.bf16.mxu1 %v1575_v40  ;;  %v4314_v39 = vpack.c.bf16 %v107_v31, %v107_v31  ;;  %v1668_v40 = vunpack.c.h.s8.bf16 %v600_v28  ;;  %v1681_v43 = vunpack.c.l.s8.bf16 %v613_v37  ;;  %v1693_v51 = vunpack.c.h.s8.bf16 %v613_v37  ;;  %v661_v31 = vld [vmem:[#allocation4 + $0x10e8] sm:$0xff] }
 0x194   :  { %2031 = vmatpush1.bf16.msra.mxu0 %v1572_v45  ;;  %2277 = vmatpush1.bf16.msra.mxu1 %v1574_v46  ;;  %v1683_v45 = vunpack.c.l.s8.bf16 %v615_v38  ;;  %v612_v46 = vld [vmem:[#allocation4 + $0xf60] sm:$0xff] }
 0x195   :  { %2032 = vmatprep.subr.bf16.mxu0 %v1585_v47  ;;  %2278 = vmatprep.subr.bf16.mxu1 %v1587_v48  ;;  %v614_v47 = vld [vmem:[#allocation4 + $0xf70] sm:$0xff]  ;;  %v1680_v48 = vunpack.c.l.s8.bf16 %v612_v46 }
 0x196   :  { %v1682_v49 = vunpack.c.l.s8.bf16 %v614_v47  ;;  %v1694_v57 = vunpack.c.h.s8.bf16 %v614_v47  ;;  %v673_v47 = vld [vmem:[#allocation4 + $0x1148] sm:$0xff] }
 0x198   :  { %2033 = vmatpush1.bf16.msra.mxu0 %v1584_v52  ;;  %2279 = vmatpush1.bf16.msra.mxu1 %v1586_v54  ;;  %v1695_v52 = vunpack.c.h.s8.bf16 %v615_v38  ;;  %v625_v54 = vld [vmem:[#allocation4 + $0xfc8] sm:$0xff]  ;;  %v660_v38 = vld [vmem:[#allocation4 + $0x10e0] sm:$0xff] }
 0x199   :  { %2034 = vmatprep.subr.bf16.mxu0 %v1597_v55  ;;  %2280 = vmatprep.subr.bf16.mxu1 %v1599_v56  ;;  %v627_v55 = vld [vmem:[#allocation4 + $0xfd8] sm:$0xff]  ;;  %v1692_v56 = vunpack.c.h.s8.bf16 %v612_v46  ;;  %v1705_v58 = vunpack.c.l.s8.bf16 %v625_v54  ;;  %v1717_v1 = vunpack.c.h.s8.bf16 %v625_v54 }
 0x19c   :  { %2035 = vmatpush1.bf16.msra.mxu0 %v1596_v59  ;;  %2281 = vmatpush1.bf16.msra.mxu1 %v1598_v60  ;;  %v1707_v59 = vunpack.c.l.s8.bf16 %v627_v55  ;;  %v624_v60 = vld [vmem:[#allocation4 + $0xfc0] sm:$0xff] }
 0x19d   :  { %2036 = vmatprep.subr.bf16.mxu0 %v1609_v62  ;;  %2282 = vmatprep.subr.bf16.mxu1 %v1611_v63  ;;  %v626_v62 = vld [vmem:[#allocation4 + $0xfd0] sm:$0xff]  ;;  %v1704_v63 = vunpack.c.l.s8.bf16 %v624_v60 }
 0x19e   :  { %v1706_v0 = vunpack.c.l.s8.bf16 %v626_v62  ;;  %v1718_v7 = vunpack.c.h.s8.bf16 %v626_v62  ;;  %v685_v62 = vld [vmem:[#allocation4 + $0x11a8] sm:$0xff] }
 0x1a0   :  { %2037 = vmatpush1.bf16.msra.mxu0 %v1608_v2  ;;  %2283 = vmatpush1.bf16.msra.mxu1 %v1610_v3  ;;  %v1719_v2 = vunpack.c.h.s8.bf16 %v627_v55  ;;  %v637_v3 = vld [vmem:[#allocation4 + $0x1028] sm:$0xff]  ;;  %v672_v55 = vld [vmem:[#allocation4 + $0x1140] sm:$0xff] }
 0x1a1   :  { %2038 = vmatprep.subr.bf16.mxu0 %v1621_v4  ;;  %2284 = vmatprep.subr.bf16.mxu1 %v1623_v6  ;;  %v639_v4 = vld [vmem:[#allocation4 + $0x1038] sm:$0xff]  ;;  %v1716_v6 = vunpack.c.h.s8.bf16 %v624_v60  ;;  %v1729_v8 = vunpack.c.l.s8.bf16 %v637_v3  ;;  %v1741_v14 = vunpack.c.h.s8.bf16 %v637_v3 }
 0x1a4   :  { %2039 = vmatpush1.bf16.msra.mxu0 %v1620_v9  ;;  %2285 = vmatpush1.bf16.msra.mxu1 %v1622_v10  ;;  %v1731_v9 = vunpack.c.l.s8.bf16 %v639_v4  ;;  %v636_v10 = vld [vmem:[#allocation4 + $0x1020] sm:$0xff] }
 0x1a5   :  { %2040 = vmatprep.subr.bf16.mxu0 %v1633_v11  ;;  %2286 = vmatprep.subr.bf16.mxu1 %v1635_v12  ;;  %v638_v11 = vld [vmem:[#allocation4 + $0x1030] sm:$0xff]  ;;  %v1728_v12 = vunpack.c.l.s8.bf16 %v636_v10 }
 0x1a6   :  { %v1730_v13 = vunpack.c.l.s8.bf16 %v638_v11  ;;  %v1742_v20 = vunpack.c.h.s8.bf16 %v638_v11  ;;  %v125_v11 = vld [vmem:[#allocation4 + $0x28] sm:$0xff] }
 0x1a8   :  { %2041 = vmatpush1.bf16.msra.mxu0 %v1632_v15  ;;  %2287 = vmatpush1.bf16.msra.mxu1 %v1634_v16  ;;  %v1743_v15 = vunpack.c.h.s8.bf16 %v639_v4  ;;  %v649_v16 = vld [vmem:[#allocation4 + $0x1088] sm:$0xff]  ;;  %v684_v4 = vld [vmem:[#allocation4 + $0x11a0] sm:$0xff] }
 0x1a9   :  { %2042 = vmatprep.subr.bf16.mxu0 %v1645_v18  ;;  %2288 = vmatprep.subr.bf16.mxu1 %v1647_v19  ;;  %v651_v18 = vld [vmem:[#allocation4 + $0x1098] sm:$0xff]  ;;  %v1740_v19 = vunpack.c.h.s8.bf16 %v636_v10  ;;  %v1753_v21 = vunpack.c.l.s8.bf16 %v649_v16  ;;  %v1765_v28 = vunpack.c.h.s8.bf16 %v649_v16  ;;  %v701_v16 = vunpack.c.l.s8.bf16 %v125_v11 }
 0x1aa   :  { %v1767_v29 = vunpack.c.h.s8.bf16 %v651_v18 }
 0x1ac   :  { %2043 = vmatpush1.bf16.msra.mxu0 %v1644_v22  ;;  %2289 = vmatpush1.bf16.msra.mxu1 %v1646_v23  ;;  %v1755_v22 = vunpack.c.l.s8.bf16 %v651_v18  ;;  %v648_v23 = vld [vmem:[#allocation4 + $0x1080] sm:$0xff] }
 0x1ad   :  { %2053 = vmatprep.subr.bf16.mxu0 %v1657_v26  ;;  %2299 = vmatprep.subr.bf16.mxu1 %v1659_v27  ;;  %v1752_v26 = vunpack.c.l.s8.bf16 %v648_v23  ;;  %v1754_v27 = vunpack.c.l.s8.bf16 %v650_v24 }
 0x1af   :  { %2045 = vmatmul.mubr.bf16.vlgmr.msra.gmra.mrb[0].mxu0 %v4312_v30  ;;  %2291 = vmatmul.mubr.bf16.vlgmr.msra.gmra.mrb[0].mxu1 %v4312_v30 }
 0x1b0   :  { %2054 = vmatpush1.bf16.msra.mxu0 %v1656_v32  ;;  %2300 = vmatpush1.bf16.msra.mxu1 %v1658_v33  ;;  %v663_v32 = vld [vmem:[#allocation4 + $0x10f8] sm:$0xff]  ;;  %v1764_v33 = vunpack.c.h.s8.bf16 %v648_v23 }
 0x1b1   :  { %2055 = vmatprep.subr.bf16.mxu0 %v1669_v34  ;;  %2301 = vmatprep.subr.bf16.mxu1 %v1671_v36  ;;  %v1766_v34 = vunpack.c.h.s8.bf16 %v650_v24  ;;  %v1777_v36 = vunpack.c.l.s8.bf16 %v661_v31  ;;  %v1779_v37 = vunpack.c.l.s8.bf16 %v663_v32  ;;  %v1791_v46 = vunpack.c.h.s8.bf16 %v663_v32 }
 0x1b2   :  { %2085 = vmatprep.mubr.bf16.mxu0 %v4314_v39  ;;  %2331 = vmatprep.mubr.bf16.mxu1 %v4314_v39  ;;  %v713_v24 = vunpack.c.h.s8.bf16 %v125_v11 }
 0x1b4   :  { %2056 = vmatpush1.bf16.msra.mxu0 %v1668_v40  ;;  %2302 = vmatpush1.bf16.msra.mxu1 %v1670_v41  ;;  %v662_v40 = vld [vmem:[#allocation4 + $0x10f0] sm:$0xff]  ;;  %v1776_v41 = vunpack.c.l.s8.bf16 %v660_v38 }
 0x1b5   :  { %2057 = vmatprep.subr.bf16.mxu0 %v1681_v43  ;;  %2303 = vmatprep.subr.bf16.mxu1 %v1683_v45  ;;  %v1778_v43 = vunpack.c.l.s8.bf16 %v662_v40  ;;  %v1789_v45 = vunpack.c.h.s8.bf16 %v661_v31 }
 0x1b8   :  { %2058 = vmatpush1.bf16.msra.mxu0 %v1680_v48  ;;  %2304 = vmatpush1.bf16.msra.mxu1 %v1682_v49  ;;  %v675_v48 = vld [vmem:[#allocation4 + $0x1158] sm:$0xff]  ;;  %v1788_v49 = vunpack.c.h.s8.bf16 %v660_v38 }
 0x1b9   :  { %2059 = vmatprep.subr.bf16.mxu0 %v1693_v51  ;;  %2305 = vmatprep.subr.bf16.mxu1 %v1695_v52  ;;  %v1790_v51 = vunpack.c.h.s8.bf16 %v662_v40  ;;  %v1801_v52 = vunpack.c.l.s8.bf16 %v673_v47  ;;  %v1803_v54 = vunpack.c.l.s8.bf16 %v675_v48  ;;  %v1815_v60 = vunpack.c.h.s8.bf16 %v675_v48 }
 0x1bc   :  { %2060 = vmatpush1.bf16.msra.mxu0 %v1692_v56  ;;  %2306 = vmatpush1.bf16.msra.mxu1 %v1694_v57  ;;  %v674_v56 = vld [vmem:[#allocation4 + $0x1150] sm:$0xff]  ;;  %v1800_v57 = vunpack.c.l.s8.bf16 %v672_v55 }
 0x1bd   :  { %2061 = vmatprep.subr.bf16.mxu0 %v1705_v58  ;;  %2307 = vmatprep.subr.bf16.mxu1 %v1707_v59  ;;  %v1802_v58 = vunpack.c.l.s8.bf16 %v674_v56  ;;  %v1813_v59 = vunpack.c.h.s8.bf16 %v673_v47 }
 0x1c0   :  { %2062 = vmatpush1.bf16.msra.mxu0 %v1704_v63  ;;  %2308 = vmatpush1.bf16.msra.mxu1 %v1706_v0  ;;  %v687_v63 = vld [vmem:[#allocation4 + $0x11b8] sm:$0xff]  ;;  %v1812_v0 = vunpack.c.h.s8.bf16 %v672_v55 }
 0x1c1   :  { %2063 = vmatprep.subr.bf16.mxu0 %v1717_v1  ;;  %2309 = vmatprep.subr.bf16.mxu1 %v1719_v2  ;;  %v1814_v1 = vunpack.c.h.s8.bf16 %v674_v56  ;;  %v1825_v2 = vunpack.c.l.s8.bf16 %v685_v62  ;;  %v1827_v3 = vunpack.c.l.s8.bf16 %v687_v63  ;;  %v1839_v10 = vunpack.c.h.s8.bf16 %v687_v63 }
 0x1c4   :  { %2064 = vmatpush1.bf16.msra.mxu0 %v1716_v6  ;;  %2310 = vmatpush1.bf16.msra.mxu1 %v1718_v7  ;;  %v686_v6 = vld [vmem:[#allocation4 + $0x11b0] sm:$0xff]  ;;  %v1824_v7 = vunpack.c.l.s8.bf16 %v684_v4 }
 0x1c5   :  { %2065 = vmatprep.subr.bf16.mxu0 %v1729_v8  ;;  %2311 = vmatprep.subr.bf16.mxu1 %v1731_v9  ;;  %v1826_v8 = vunpack.c.l.s8.bf16 %v686_v6  ;;  %v1837_v9 = vunpack.c.h.s8.bf16 %v685_v62 }
 0x1c8   :  { %2066 = vmatpush1.bf16.msra.mxu0 %v1728_v12  ;;  %2312 = vmatpush1.bf16.msra.mxu1 %v1730_v13  ;;  %v127_v12 = vld [vmem:[#allocation4 + $0x38] sm:$0xff]  ;;  %v1836_v13 = vunpack.c.h.s8.bf16 %v684_v4 }
 0x1c9   :  { %2067 = vmatprep.subr.bf16.mxu0 %v1741_v14  ;;  %2313 = vmatprep.subr.bf16.mxu1 %v1743_v15  ;;  %v1838_v14 = vunpack.c.h.s8.bf16 %v686_v6  ;;  %v106_v15 = vld [vmem:[#allocation2 + $0x50] sm:$0xff]  ;;  %v703_v18 = vunpack.c.l.s8.bf16 %v127_v12 }
 0x1cc   :  { %2068 = vmatpush1.bf16.msra.mxu0 %v1740_v19  ;;  %2314 = vmatpush1.bf16.msra.mxu1 %v1742_v20  ;;  %v124_v19 = vld [vmem:[#allocation4 + $0x20] sm:$0xff]  ;;  %v126_v20 = vld [vmem:[#allocation4 + $0x30] sm:$0xff] }
 0x1cd   :  { %2069 = vmatprep.subr.bf16.mxu0 %v1753_v21  ;;  %2315 = vmatprep.subr.bf16.mxu1 %v1755_v22  ;;  %v4320_v21 = vpack.c.bf16 %v106_v15, %v106_v15  ;;  %v700_v22 = vunpack.c.l.s8.bf16 %v124_v19  ;;  %v702_v23 = vunpack.c.l.s8.bf16 %v126_v20  ;;  %v714_v31 = vunpack.c.h.s8.bf16 %v126_v20  ;;  %v174_v15 = vld [vmem:[#allocation4 + $0x1b0] sm:$0xff] }
 0x1d0   :  { %2070 = vmatpush1.bf16.msra.mxu0 %v1752_v26  ;;  %2316 = vmatpush1.bf16.msra.mxu1 %v1754_v27  ;;  %v715_v26 = vunpack.c.h.s8.bf16 %v127_v12  ;;  %v137_v27 = vld [vmem:[#allocation4 + $0x88] sm:$0xff] }
 0x1d1   :  { %2071 = vmatprep.subr.bf16.mxu0 %v1765_v28  ;;  %2317 = vmatprep.subr.bf16.mxu1 %v1767_v29  ;;  %v139_v28 = vld [vmem:[#allocation4 + $0x98] sm:$0xff]  ;;  %v712_v29 = vunpack.c.h.s8.bf16 %v124_v19  ;;  %v725_v32 = vunpack.c.l.s8.bf16 %v137_v27  ;;  %v737_v40 = vunpack.c.h.s8.bf16 %v137_v27 }
 0x1d4   :  { %2072 = vmatpush1.bf16.msra.mxu0 %v1764_v33  ;;  %2318 = vmatpush1.bf16.msra.mxu1 %v1766_v34  ;;  %v727_v33 = vunpack.c.l.s8.bf16 %v139_v28  ;;  %v136_v34 = vld [vmem:[#allocation4 + $0x80] sm:$0xff] }
 0x1d5   :  { %2073 = vmatprep.subr.bf16.mxu0 %v1777_v36  ;;  %2319 = vmatprep.subr.bf16.mxu1 %v1779_v37  ;;  %v138_v36 = vld [vmem:[#allocation4 + $0x90] sm:$0xff]  ;;  %v724_v37 = vunpack.c.l.s8.bf16 %v136_v34 }
 0x1d6   :  { %v726_v38 = vunpack.c.l.s8.bf16 %v138_v36  ;;  %v738_v47 = vunpack.c.h.s8.bf16 %v138_v36 }
 0x1d8   :  { %2074 = vmatpush1.bf16.msra.mxu0 %v1776_v41  ;;  %2320 = vmatpush1.bf16.msra.mxu1 %v1778_v43  ;;  %v739_v41 = vunpack.c.h.s8.bf16 %v139_v28  ;;  %v149_v43 = vld [vmem:[#allocation4 + $0xe8] sm:$0xff] }
 0x1d9   :  { %2075 = vmatprep.subr.bf16.mxu0 %v1789_v45  ;;  %2321 = vmatprep.subr.bf16.mxu1 %v1791_v46  ;;  %v151_v45 = vld [vmem:[#allocation4 + $0xf8] sm:$0xff]  ;;  %v736_v46 = vunpack.c.h.s8.bf16 %v136_v34  ;;  %v749_v48 = vunpack.c.l.s8.bf16 %v149_v43  ;;  %v761_v56 = vunpack.c.h.s8.bf16 %v149_v43 }
 0x1dc   :  { %2076 = vmatpush1.bf16.msra.mxu0 %v1788_v49  ;;  %2322 = vmatpush1.bf16.msra.mxu1 %v1790_v51  ;;  %v751_v49 = vunpack.c.l.s8.bf16 %v151_v45  ;;  %v148_v51 = vld [vmem:[#allocation4 + $0xe0] sm:$0xff] }
 0x1dd   :  { %2077 = vmatprep.subr.bf16.mxu0 %v1801_v52  ;;  %2323 = vmatprep.subr.bf16.mxu1 %v1803_v54  ;;  %v150_v52 = vld [vmem:[#allocation4 + $0xf0] sm:$0xff]  ;;  %v748_v54 = vunpack.c.l.s8.bf16 %v148_v51 }
 0x1de   :  { %v750_v55 = vunpack.c.l.s8.bf16 %v150_v52  ;;  %v762_v62 = vunpack.c.h.s8.bf16 %v150_v52 }
 0x1e0   :  { %2078 = vmatpush1.bf16.msra.mxu0 %v1800_v57  ;;  %2324 = vmatpush1.bf16.msra.mxu1 %v1802_v58  ;;  %v763_v57 = vunpack.c.h.s8.bf16 %v151_v45  ;;  %v161_v58 = vld [vmem:[#allocation4 + $0x148] sm:$0xff] }
 0x1e1   :  { %2079 = vmatprep.subr.bf16.mxu0 %v1813_v59  ;;  %2325 = vmatprep.subr.bf16.mxu1 %v1815_v60  ;;  %v163_v59 = vld [vmem:[#allocation4 + $0x158] sm:$0xff]  ;;  %v760_v60 = vunpack.c.h.s8.bf16 %v148_v51  ;;  %v773_v63 = vunpack.c.l.s8.bf16 %v161_v58  ;;  %v785_v6 = vunpack.c.h.s8.bf16 %v161_v58 }
 0x1e4   :  { %2080 = vmatpush1.bf16.msra.mxu0 %v1812_v0  ;;  %2326 = vmatpush1.bf16.msra.mxu1 %v1814_v1  ;;  %v775_v0 = vunpack.c.l.s8.bf16 %v163_v59  ;;  %v160_v1 = vld [vmem:[#allocation4 + $0x140] sm:$0xff] }
 0x1e5   :  { %2081 = vmatprep.subr.bf16.mxu0 %v1825_v2  ;;  %2327 = vmatprep.subr.bf16.mxu1 %v1827_v3  ;;  %v162_v2 = vld [vmem:[#allocation4 + $0x150] sm:$0xff]  ;;  %v772_v3 = vunpack.c.l.s8.bf16 %v160_v1 }
 0x1e6   :  { %v774_v4 = vunpack.c.l.s8.bf16 %v162_v2  ;;  %v786_v11 = vunpack.c.h.s8.bf16 %v162_v2 }
 0x1e8   :  { %2082 = vmatpush1.bf16.msra.mxu0 %v1824_v7  ;;  %2328 = vmatpush1.bf16.msra.mxu1 %v1826_v8  ;;  %v787_v7 = vunpack.c.h.s8.bf16 %v163_v59  ;;  %v173_v8 = vld [vmem:[#allocation4 + $0x1a8] sm:$0xff] }
 0x1e9   :  { %2083 = vmatprep.subr.bf16.mxu0 %v1837_v9  ;;  %2329 = vmatprep.subr.bf16.mxu1 %v1839_v10  ;;  %v175_v9 = vld [vmem:[#allocation4 + $0x1b8] sm:$0xff]  ;;  %v784_v10 = vunpack.c.h.s8.bf16 %v160_v1  ;;  %v797_v12 = vunpack.c.l.s8.bf16 %v173_v8  ;;  %v809_v19 = vunpack.c.h.s8.bf16 %v173_v8 }
 0x1ea   :  { %v811_v20 = vunpack.c.h.s8.bf16 %v175_v9 }
 0x1ec   :  { %2084 = vmatpush1.bf16.msra.mxu0 %v1836_v13  ;;  %2330 = vmatpush1.bf16.msra.mxu1 %v1838_v14  ;;  %v799_v13 = vunpack.c.l.s8.bf16 %v175_v9  ;;  %v172_v14 = vld [vmem:[#allocation4 + $0x1a0] sm:$0xff] }
 0x1ed   :  { %2340 = vmatprep.subr.bf16.mxu0 %v701_v16  ;;  %2586 = vmatprep.subr.bf16.mxu1 %v703_v18  ;;  %v796_v16 = vunpack.c.l.s8.bf16 %v172_v14  ;;  %v798_v18 = vunpack.c.l.s8.bf16 %v174_v15 }
 0x1ef   :  { %2086 = vmatmul.mubr.bf16.vlgmr.msra.gmra.mrb[0].mxu0 %v4320_v21  ;;  %2332 = vmatmul.mubr.bf16.vlgmr.msra.gmra.mrb[0].mxu1 %v4320_v21 }
 0x1f0   :  { %2341 = vmatpush1.bf16.msra.mxu0 %v700_v22  ;;  %2587 = vmatpush1.bf16.msra.mxu1 %v702_v23  ;;  %v185_v22 = vld [vmem:[#allocation4 + $0x208] sm:$0xff]  ;;  %v187_v23 = vld [vmem:[#allocation4 + $0x218] sm:$0xff] }
 0x1f1   :  { %2342 = vmatprep.subr.bf16.mxu0 %v713_v24  ;;  %2588 = vmatprep.subr.bf16.mxu1 %v715_v26  ;;  %v808_v24 = vunpack.c.h.s8.bf16 %v172_v14  ;;  %v810_v26 = vunpack.c.h.s8.bf16 %v174_v15  ;;  %v821_v27 = vunpack.c.l.s8.bf16 %v185_v22  ;;  %v823_v28 = vunpack.c.l.s8.bf16 %v187_v23 }
 0x1f2   :  { %2372 = vmatprep.mubr.bf16.mxu0 %v4276_v35  ;;  %2618 = vmatprep.mubr.bf16.mxu1 %v4276_v35  ;;  %v833_v34 = vunpack.c.h.s8.bf16 %v185_v22  ;;  %v835_v36 = vunpack.c.h.s8.bf16 %v187_v23 }
 0x1f4   :  { %2343 = vmatpush1.bf16.msra.mxu0 %v712_v29  ;;  %2589 = vmatpush1.bf16.msra.mxu1 %v714_v31  ;;  %v184_v29 = vld [vmem:[#allocation4 + $0x200] sm:$0xff]  ;;  %v186_v31 = vld [vmem:[#allocation4 + $0x210] sm:$0xff] }
 0x1f5   :  { %2344 = vmatprep.subr.bf16.mxu0 %v725_v32  ;;  %2590 = vmatprep.subr.bf16.mxu1 %v727_v33  ;;  %v820_v32 = vunpack.c.l.s8.bf16 %v184_v29  ;;  %v822_v33 = vunpack.c.l.s8.bf16 %v186_v31 }
 0x1f8   :  { %2345 = vmatpush1.bf16.msra.mxu0 %v724_v37  ;;  %2591 = vmatpush1.bf16.msra.mxu1 %v726_v38  ;;  %v197_v37 = vld [vmem:[#allocation4 + $0x268] sm:$0xff]  ;;  %v199_v38 = vld [vmem:[#allocation4 + $0x278] sm:$0xff] }
 0x1f9   :  { %2346 = vmatprep.subr.bf16.mxu0 %v737_v40  ;;  %2592 = vmatprep.subr.bf16.mxu1 %v739_v41  ;;  %v832_v40 = vunpack.c.h.s8.bf16 %v184_v29  ;;  %v834_v41 = vunpack.c.h.s8.bf16 %v186_v31  ;;  %v845_v43 = vunpack.c.l.s8.bf16 %v197_v37  ;;  %v847_v45 = vunpack.c.l.s8.bf16 %v199_v38 }
 0x1fa   :  { %v857_v51 = vunpack.c.h.s8.bf16 %v197_v37  ;;  %v859_v52 = vunpack.c.h.s8.bf16 %v199_v38 }
 0x1fc   :  { %2347 = vmatpush1.bf16.msra.mxu0 %v736_v46  ;;  %2593 = vmatpush1.bf16.msra.mxu1 %v738_v47  ;;  %v196_v46 = vld [vmem:[#allocation4 + $0x260] sm:$0xff]  ;;  %v198_v47 = vld [vmem:[#allocation4 + $0x270] sm:$0xff] }
 0x1fd   :  { %2348 = vmatprep.subr.bf16.mxu0 %v749_v48  ;;  %2594 = vmatprep.subr.bf16.mxu1 %v751_v49  ;;  %v844_v48 = vunpack.c.l.s8.bf16 %v196_v46  ;;  %v846_v49 = vunpack.c.l.s8.bf16 %v198_v47 }
 0x200   :  { %2349 = vmatpush1.bf16.msra.mxu0 %v748_v54  ;;  %2595 = vmatpush1.bf16.msra.mxu1 %v750_v55  ;;  %v209_v54 = vld [vmem:[#allocation4 + $0x2c8] sm:$0xff]  ;;  %v211_v55 = vld [vmem:[#allocation4 + $0x2d8] sm:$0xff] }
 0x201   :  { %2350 = vmatprep.subr.bf16.mxu0 %v761_v56  ;;  %2596 = vmatprep.subr.bf16.mxu1 %v763_v57  ;;  %v856_v56 = vunpack.c.h.s8.bf16 %v196_v46  ;;  %v858_v57 = vunpack.c.h.s8.bf16 %v198_v47  ;;  %v869_v58 = vunpack.c.l.s8.bf16 %v209_v54  ;;  %v871_v59 = vunpack.c.l.s8.bf16 %v211_v55 }
 0x202   :  { %v881_v1 = vunpack.c.h.s8.bf16 %v209_v54  ;;  %v883_v2 = vunpack.c.h.s8.bf16 %v211_v55 }
 0x204   :  { %2351 = vmatpush1.bf16.msra.mxu0 %v760_v60  ;;  %2597 = vmatpush1.bf16.msra.mxu1 %v762_v62  ;;  %v208_v60 = vld [vmem:[#allocation4 + $0x2c0] sm:$0xff]  ;;  %v210_v62 = vld [vmem:[#allocation4 + $0x2d0] sm:$0xff] }
 0x205   :  { %2352 = vmatprep.subr.bf16.mxu0 %v773_v63  ;;  %2598 = vmatprep.subr.bf16.mxu1 %v775_v0  ;;  %v868_v63 = vunpack.c.l.s8.bf16 %v208_v60  ;;  %v870_v0 = vunpack.c.l.s8.bf16 %v210_v62 }
 0x208   :  { %2353 = vmatpush1.bf16.msra.mxu0 %v772_v3  ;;  %2599 = vmatpush1.bf16.msra.mxu1 %v774_v4  ;;  %v221_v3 = vld [vmem:[#allocation4 + $0x328] sm:$0xff]  ;;  %v223_v4 = vld [vmem:[#allocation4 + $0x338] sm:$0xff] }
 0x209   :  { %2354 = vmatprep.subr.bf16.mxu0 %v785_v6  ;;  %2600 = vmatprep.subr.bf16.mxu1 %v787_v7  ;;  %v880_v6 = vunpack.c.h.s8.bf16 %v208_v60  ;;  %v882_v7 = vunpack.c.h.s8.bf16 %v210_v62  ;;  %v893_v8 = vunpack.c.l.s8.bf16 %v221_v3  ;;  %v895_v9 = vunpack.c.l.s8.bf16 %v223_v4 }
 0x20a   :  { %v905_v14 = vunpack.c.h.s8.bf16 %v221_v3  ;;  %v907_v15 = vunpack.c.h.s8.bf16 %v223_v4 }
 0x20c   :  { %2355 = vmatpush1.bf16.msra.mxu0 %v784_v10  ;;  %2601 = vmatpush1.bf16.msra.mxu1 %v786_v11  ;;  %v220_v10 = vld [vmem:[#allocation4 + $0x320] sm:$0xff]  ;;  %v222_v11 = vld [vmem:[#allocation4 + $0x330] sm:$0xff] }
 0x20d   :  { %2356 = vmatprep.subr.bf16.mxu0 %v797_v12  ;;  %2602 = vmatprep.subr.bf16.mxu1 %v799_v13  ;;  %v892_v12 = vunpack.c.l.s8.bf16 %v220_v10  ;;  %v894_v13 = vunpack.c.l.s8.bf16 %v222_v11 }
 0x210   :  { %2357 = vmatpush1.bf16.msra.mxu0 %v796_v16  ;;  %2603 = vmatpush1.bf16.msra.mxu1 %v798_v18  ;;  %v233_v16 = vld [vmem:[#allocation4 + $0x388] sm:$0xff]  ;;  %v235_v18 = vld [vmem:[#allocation4 + $0x398] sm:$0xff] }
 0x211   :  { %2358 = vmatprep.subr.bf16.mxu0 %v809_v19  ;;  %2604 = vmatprep.subr.bf16.mxu1 %v811_v20  ;;  %v904_v19 = vunpack.c.h.s8.bf16 %v220_v10  ;;  %v906_v20 = vunpack.c.h.s8.bf16 %v222_v11  ;;  %v917_v22 = vunpack.c.l.s8.bf16 %v233_v16  ;;  %v919_v23 = vunpack.c.l.s8.bf16 %v235_v18 }
 0x212   :  { %v929_v29 = vunpack.c.h.s8.bf16 %v233_v16  ;;  %v931_v31 = vunpack.c.h.s8.bf16 %v235_v18 }
 0x214   :  { %2359 = vmatpush1.bf16.msra.mxu0 %v808_v24  ;;  %2605 = vmatpush1.bf16.msra.mxu1 %v810_v26  ;;  %v232_v24 = vld [vmem:[#allocation4 + $0x380] sm:$0xff]  ;;  %v234_v26 = vld [vmem:[#allocation4 + $0x390] sm:$0xff] }
 0x215   :  { %2360 = vmatprep.subr.bf16.mxu0 %v821_v27  ;;  %2606 = vmatprep.subr.bf16.mxu1 %v823_v28  ;;  %v916_v27 = vunpack.c.l.s8.bf16 %v232_v24  ;;  %v918_v28 = vunpack.c.l.s8.bf16 %v234_v26 }
 0x218   :  { %2361 = vmatpush1.bf16.msra.mxu0 %v820_v32  ;;  %2607 = vmatpush1.bf16.msra.mxu1 %v822_v33  ;;  %v245_v32 = vld [vmem:[#allocation4 + $0x3e8] sm:$0xff]  ;;  %v247_v33 = vld [vmem:[#allocation4 + $0x3f8] sm:$0xff] }
 0x219   :  { %2362 = vmatprep.subr.bf16.mxu0 %v833_v34  ;;  %2608 = vmatprep.subr.bf16.mxu1 %v835_v36  ;;  %v928_v34 = vunpack.c.h.s8.bf16 %v232_v24  ;;  %v930_v36 = vunpack.c.h.s8.bf16 %v234_v26  ;;  %v941_v37 = vunpack.c.l.s8.bf16 %v245_v32  ;;  %v943_v38 = vunpack.c.l.s8.bf16 %v247_v33 }
 0x21a   :  { %v953_v46 = vunpack.c.h.s8.bf16 %v245_v32  ;;  %v955_v47 = vunpack.c.h.s8.bf16 %v247_v33 }
 0x21c   :  { %2363 = vmatpush1.bf16.msra.mxu0 %v832_v40  ;;  %2609 = vmatpush1.bf16.msra.mxu1 %v834_v41  ;;  %v244_v40 = vld [vmem:[#allocation4 + $0x3e0] sm:$0xff]  ;;  %v246_v41 = vld [vmem:[#allocation4 + $0x3f0] sm:$0xff] }
 0x21d   :  { %2364 = vmatprep.subr.bf16.mxu0 %v845_v43  ;;  %2610 = vmatprep.subr.bf16.mxu1 %v847_v45  ;;  %v940_v43 = vunpack.c.l.s8.bf16 %v244_v40  ;;  %v942_v45 = vunpack.c.l.s8.bf16 %v246_v41 }
 0x220   :  { %2365 = vmatpush1.bf16.msra.mxu0 %v844_v48  ;;  %2611 = vmatpush1.bf16.msra.mxu1 %v846_v49  ;;  %v257_v48 = vld [vmem:[#allocation4 + $0x448] sm:$0xff]  ;;  %v259_v49 = vld [vmem:[#allocation4 + $0x458] sm:$0xff] }
 0x221   :  { %2366 = vmatprep.subr.bf16.mxu0 %v857_v51  ;;  %2612 = vmatprep.subr.bf16.mxu1 %v859_v52  ;;  %v952_v51 = vunpack.c.h.s8.bf16 %v244_v40  ;;  %v954_v52 = vunpack.c.h.s8.bf16 %v246_v41  ;;  %v965_v54 = vunpack.c.l.s8.bf16 %v257_v48  ;;  %v967_v55 = vunpack.c.l.s8.bf16 %v259_v49 }
 0x222   :  { %v977_v60 = vunpack.c.h.s8.bf16 %v257_v48  ;;  %v979_v62 = vunpack.c.h.s8.bf16 %v259_v49 }
 0x224   :  { %2367 = vmatpush1.bf16.msra.mxu0 %v856_v56  ;;  %2613 = vmatpush1.bf16.msra.mxu1 %v858_v57  ;;  %v256_v56 = vld [vmem:[#allocation4 + $0x440] sm:$0xff]  ;;  %v258_v57 = vld [vmem:[#allocation4 + $0x450] sm:$0xff] }
 0x225   :  { %2368 = vmatprep.subr.bf16.mxu0 %v869_v58  ;;  %2614 = vmatprep.subr.bf16.mxu1 %v871_v59  ;;  %v964_v58 = vunpack.c.l.s8.bf16 %v256_v56  ;;  %v966_v59 = vunpack.c.l.s8.bf16 %v258_v57 }
 0x228   :  { %2369 = vmatpush1.bf16.msra.mxu0 %v868_v63  ;;  %2615 = vmatpush1.bf16.msra.mxu1 %v870_v0  ;;  %v269_v63 = vld [vmem:[#allocation4 + $0x4a8] sm:$0xff]  ;;  %v271_v0 = vld [vmem:[#allocation4 + $0x4b8] sm:$0xff] }
 0x229   :  { %2370 = vmatprep.subr.bf16.mxu0 %v881_v1  ;;  %2616 = vmatprep.subr.bf16.mxu1 %v883_v2  ;;  %v976_v1 = vunpack.c.h.s8.bf16 %v256_v56  ;;  %v978_v2 = vunpack.c.h.s8.bf16 %v258_v57  ;;  %v989_v3 = vunpack.c.l.s8.bf16 %v269_v63  ;;  %v991_v4 = vunpack.c.l.s8.bf16 %v271_v0 }
 0x22a   :  { %v1001_v10 = vunpack.c.h.s8.bf16 %v269_v63  ;;  %v1003_v11 = vunpack.c.h.s8.bf16 %v271_v0 }
 0x22c   :  { %2371 = vmatpush1.bf16.msra.mxu0 %v880_v6  ;;  %2617 = vmatpush1.bf16.msra.mxu1 %v882_v7  ;;  %v268_v6 = vld [vmem:[#allocation4 + $0x4a0] sm:$0xff]  ;;  %v270_v7 = vld [vmem:[#allocation4 + $0x4b0] sm:$0xff] }
 0x22d   :  { %2381 = vmatprep.subr.bf16.mxu0 %v893_v8  ;;  %2627 = vmatprep.subr.bf16.mxu1 %v895_v9  ;;  %v988_v8 = vunpack.c.l.s8.bf16 %v268_v6  ;;  %v990_v9 = vunpack.c.l.s8.bf16 %v270_v7 }
 0x22f   :  { %2373 = vmatmul.mubr.bf16.vlgmr.msra.gmra.mrb[4].mxu0 %v4280_v42  ;;  %2619 = vmatmul.mubr.bf16.vlgmr.msra.gmra.mrb[4].mxu1 %v4280_v42 }
 0x230   :  { %2382 = vmatpush1.bf16.msra.mxu0 %v892_v12  ;;  %2628 = vmatpush1.bf16.msra.mxu1 %v894_v13  ;;  %v281_v12 = vld [vmem:[#allocation4 + $0x508] sm:$0xff]  ;;  %v283_v13 = vld [vmem:[#allocation4 + $0x518] sm:$0xff] }
 0x231   :  { %2383 = vmatprep.subr.bf16.mxu0 %v905_v14  ;;  %2629 = vmatprep.subr.bf16.mxu1 %v907_v15  ;;  %v1000_v14 = vunpack.c.h.s8.bf16 %v268_v6  ;;  %v1002_v15 = vunpack.c.h.s8.bf16 %v270_v7  ;;  %v1013_v16 = vunpack.c.l.s8.bf16 %v281_v12  ;;  %v1015_v18 = vunpack.c.l.s8.bf16 %v283_v13 }
 0x232   :  { %2413 = vmatprep.mubr.bf16.mxu0 %v4282_v50  ;;  %2659 = vmatprep.mubr.bf16.mxu1 %v4282_v50  ;;  %v1025_v24 = vunpack.c.h.s8.bf16 %v281_v12  ;;  %v1027_v26 = vunpack.c.h.s8.bf16 %v283_v13 }
 0x234   :  { %2384 = vmatpush1.bf16.msra.mxu0 %v904_v19  ;;  %2630 = vmatpush1.bf16.msra.mxu1 %v906_v20  ;;  %v280_v19 = vld [vmem:[#allocation4 + $0x500] sm:$0xff]  ;;  %v282_v20 = vld [vmem:[#allocation4 + $0x510] sm:$0xff] }
 0x235   :  { %2385 = vmatprep.subr.bf16.mxu0 %v917_v22  ;;  %2631 = vmatprep.subr.bf16.mxu1 %v919_v23  ;;  %v1012_v22 = vunpack.c.l.s8.bf16 %v280_v19  ;;  %v1014_v23 = vunpack.c.l.s8.bf16 %v282_v20 }
 0x238   :  { %2386 = vmatpush1.bf16.msra.mxu0 %v916_v27  ;;  %2632 = vmatpush1.bf16.msra.mxu1 %v918_v28  ;;  %v293_v27 = vld [vmem:[#allocation4 + $0x568] sm:$0xff]  ;;  %v295_v28 = vld [vmem:[#allocation4 + $0x578] sm:$0xff] }
 0x239   :  { %2387 = vmatprep.subr.bf16.mxu0 %v929_v29  ;;  %2633 = vmatprep.subr.bf16.mxu1 %v931_v31  ;;  %v1024_v29 = vunpack.c.h.s8.bf16 %v280_v19  ;;  %v1026_v31 = vunpack.c.h.s8.bf16 %v282_v20  ;;  %v1037_v32 = vunpack.c.l.s8.bf16 %v293_v27  ;;  %v1039_v33 = vunpack.c.l.s8.bf16 %v295_v28 }
 0x23a   :  { %v1049_v40 = vunpack.c.h.s8.bf16 %v293_v27  ;;  %v1051_v41 = vunpack.c.h.s8.bf16 %v295_v28 }
 0x23c   :  { %2388 = vmatpush1.bf16.msra.mxu0 %v928_v34  ;;  %2634 = vmatpush1.bf16.msra.mxu1 %v930_v36  ;;  %v292_v34 = vld [vmem:[#allocation4 + $0x560] sm:$0xff]  ;;  %v294_v36 = vld [vmem:[#allocation4 + $0x570] sm:$0xff] }
 0x23d   :  { %2389 = vmatprep.subr.bf16.mxu0 %v941_v37  ;;  %2635 = vmatprep.subr.bf16.mxu1 %v943_v38  ;;  %v1036_v37 = vunpack.c.l.s8.bf16 %v292_v34  ;;  %v1038_v38 = vunpack.c.l.s8.bf16 %v294_v36 }
 0x240   :  { %2390 = vmatpush1.bf16.msra.mxu0 %v940_v43  ;;  %2636 = vmatpush1.bf16.msra.mxu1 %v942_v45  ;;  %v305_v43 = vld [vmem:[#allocation4 + $0x5c8] sm:$0xff]  ;;  %v307_v45 = vld [vmem:[#allocation4 + $0x5d8] sm:$0xff] }
 0x241   :  { %2391 = vmatprep.subr.bf16.mxu0 %v953_v46  ;;  %2637 = vmatprep.subr.bf16.mxu1 %v955_v47  ;;  %v1048_v46 = vunpack.c.h.s8.bf16 %v292_v34  ;;  %v1050_v47 = vunpack.c.h.s8.bf16 %v294_v36  ;;  %v1061_v48 = vunpack.c.l.s8.bf16 %v305_v43  ;;  %v1063_v49 = vunpack.c.l.s8.bf16 %v307_v45 }
 0x242   :  { %v1073_v56 = vunpack.c.h.s8.bf16 %v305_v43  ;;  %v1075_v57 = vunpack.c.h.s8.bf16 %v307_v45 }
 0x244   :  { %2392 = vmatpush1.bf16.msra.mxu0 %v952_v51  ;;  %2638 = vmatpush1.bf16.msra.mxu1 %v954_v52  ;;  %v304_v51 = vld [vmem:[#allocation4 + $0x5c0] sm:$0xff]  ;;  %v306_v52 = vld [vmem:[#allocation4 + $0x5d0] sm:$0xff] }
 0x245   :  { %2393 = vmatprep.subr.bf16.mxu0 %v965_v54  ;;  %2639 = vmatprep.subr.bf16.mxu1 %v967_v55  ;;  %v1060_v54 = vunpack.c.l.s8.bf16 %v304_v51  ;;  %v1062_v55 = vunpack.c.l.s8.bf16 %v306_v52 }
 0x248   :  { %2394 = vmatpush1.bf16.msra.mxu0 %v964_v58  ;;  %2640 = vmatpush1.bf16.msra.mxu1 %v966_v59  ;;  %v317_v58 = vld [vmem:[#allocation4 + $0x628] sm:$0xff]  ;;  %v319_v59 = vld [vmem:[#allocation4 + $0x638] sm:$0xff] }
 0x249   :  { %2395 = vmatprep.subr.bf16.mxu0 %v977_v60  ;;  %2641 = vmatprep.subr.bf16.mxu1 %v979_v62  ;;  %v1072_v60 = vunpack.c.h.s8.bf16 %v304_v51  ;;  %v1074_v62 = vunpack.c.h.s8.bf16 %v306_v52  ;;  %v1085_v63 = vunpack.c.l.s8.bf16 %v317_v58  ;;  %v1087_v0 = vunpack.c.l.s8.bf16 %v319_v59 }
 0x24a   :  { %v1097_v6 = vunpack.c.h.s8.bf16 %v317_v58  ;;  %v1099_v7 = vunpack.c.h.s8.bf16 %v319_v59 }
 0x24c   :  { %2396 = vmatpush1.bf16.msra.mxu0 %v976_v1  ;;  %2642 = vmatpush1.bf16.msra.mxu1 %v978_v2  ;;  %v316_v1 = vld [vmem:[#allocation4 + $0x620] sm:$0xff]  ;;  %v318_v2 = vld [vmem:[#allocation4 + $0x630] sm:$0xff] }
 0x24d   :  { %2397 = vmatprep.subr.bf16.mxu0 %v989_v3  ;;  %2643 = vmatprep.subr.bf16.mxu1 %v991_v4  ;;  %v1084_v3 = vunpack.c.l.s8.bf16 %v316_v1  ;;  %v1086_v4 = vunpack.c.l.s8.bf16 %v318_v2 }
 0x250   :  { %2398 = vmatpush1.bf16.msra.mxu0 %v988_v8  ;;  %2644 = vmatpush1.bf16.msra.mxu1 %v990_v9  ;;  %v329_v8 = vld [vmem:[#allocation4 + $0x688] sm:$0xff]  ;;  %v331_v9 = vld [vmem:[#allocation4 + $0x698] sm:$0xff] }
 0x251   :  { %2399 = vmatprep.subr.bf16.mxu0 %v1001_v10  ;;  %2645 = vmatprep.subr.bf16.mxu1 %v1003_v11  ;;  %v1096_v10 = vunpack.c.h.s8.bf16 %v316_v1  ;;  %v1098_v11 = vunpack.c.h.s8.bf16 %v318_v2  ;;  %v1109_v12 = vunpack.c.l.s8.bf16 %v329_v8  ;;  %v1111_v13 = vunpack.c.l.s8.bf16 %v331_v9 }
 0x252   :  { %v1121_v19 = vunpack.c.h.s8.bf16 %v329_v8  ;;  %v1123_v20 = vunpack.c.h.s8.bf16 %v331_v9 }
 0x254   :  { %2400 = vmatpush1.bf16.msra.mxu0 %v1000_v14  ;;  %2646 = vmatpush1.bf16.msra.mxu1 %v1002_v15  ;;  %v328_v14 = vld [vmem:[#allocation4 + $0x680] sm:$0xff]  ;;  %v330_v15 = vld [vmem:[#allocation4 + $0x690] sm:$0xff] }
 0x255   :  { %2401 = vmatprep.subr.bf16.mxu0 %v1013_v16  ;;  %2647 = vmatprep.subr.bf16.mxu1 %v1015_v18  ;;  %v1108_v16 = vunpack.c.l.s8.bf16 %v328_v14  ;;  %v1110_v18 = vunpack.c.l.s8.bf16 %v330_v15 }
 0x258   :  { %2402 = vmatpush1.bf16.msra.mxu0 %v1012_v22  ;;  %2648 = vmatpush1.bf16.msra.mxu1 %v1014_v23  ;;  %v341_v22 = vld [vmem:[#allocation4 + $0x6e8] sm:$0xff]  ;;  %v343_v23 = vld [vmem:[#allocation4 + $0x6f8] sm:$0xff] }
 0x259   :  { %2403 = vmatprep.subr.bf16.mxu0 %v1025_v24  ;;  %2649 = vmatprep.subr.bf16.mxu1 %v1027_v26  ;;  %v1120_v24 = vunpack.c.h.s8.bf16 %v328_v14  ;;  %v1122_v26 = vunpack.c.h.s8.bf16 %v330_v15  ;;  %v1133_v27 = vunpack.c.l.s8.bf16 %v341_v22  ;;  %v1135_v28 = vunpack.c.l.s8.bf16 %v343_v23 }
 0x25a   :  { %v1145_v34 = vunpack.c.h.s8.bf16 %v341_v22  ;;  %v1147_v36 = vunpack.c.h.s8.bf16 %v343_v23 }
 0x25c   :  { %2404 = vmatpush1.bf16.msra.mxu0 %v1024_v29  ;;  %2650 = vmatpush1.bf16.msra.mxu1 %v1026_v31  ;;  %v340_v29 = vld [vmem:[#allocation4 + $0x6e0] sm:$0xff]  ;;  %v342_v31 = vld [vmem:[#allocation4 + $0x6f0] sm:$0xff] }
 0x25d   :  { %2405 = vmatprep.subr.bf16.mxu0 %v1037_v32  ;;  %2651 = vmatprep.subr.bf16.mxu1 %v1039_v33  ;;  %v1132_v32 = vunpack.c.l.s8.bf16 %v340_v29  ;;  %v1134_v33 = vunpack.c.l.s8.bf16 %v342_v31 }
 0x260   :  { %2406 = vmatpush1.bf16.msra.mxu0 %v1036_v37  ;;  %2652 = vmatpush1.bf16.msra.mxu1 %v1038_v38  ;;  %v353_v37 = vld [vmem:[#allocation4 + $0x748] sm:$0xff]  ;;  %v355_v38 = vld [vmem:[#allocation4 + $0x758] sm:$0xff] }
 0x261   :  { %2407 = vmatprep.subr.bf16.mxu0 %v1049_v40  ;;  %2653 = vmatprep.subr.bf16.mxu1 %v1051_v41  ;;  %v1144_v40 = vunpack.c.h.s8.bf16 %v340_v29  ;;  %v1146_v41 = vunpack.c.h.s8.bf16 %v342_v31  ;;  %v1157_v43 = vunpack.c.l.s8.bf16 %v353_v37  ;;  %v1159_v45 = vunpack.c.l.s8.bf16 %v355_v38 }
 0x262   :  { %v1169_v51 = vunpack.c.h.s8.bf16 %v353_v37  ;;  %v1171_v52 = vunpack.c.h.s8.bf16 %v355_v38 }
 0x264   :  { %2408 = vmatpush1.bf16.msra.mxu0 %v1048_v46  ;;  %2654 = vmatpush1.bf16.msra.mxu1 %v1050_v47  ;;  %v352_v46 = vld [vmem:[#allocation4 + $0x740] sm:$0xff]  ;;  %v354_v47 = vld [vmem:[#allocation4 + $0x750] sm:$0xff] }
 0x265   :  { %2409 = vmatprep.subr.bf16.mxu0 %v1061_v48  ;;  %2655 = vmatprep.subr.bf16.mxu1 %v1063_v49  ;;  %v1156_v48 = vunpack.c.l.s8.bf16 %v352_v46  ;;  %v1158_v49 = vunpack.c.l.s8.bf16 %v354_v47 }
 0x268   :  { %2410 = vmatpush1.bf16.msra.mxu0 %v1060_v54  ;;  %2656 = vmatpush1.bf16.msra.mxu1 %v1062_v55  ;;  %v365_v54 = vld [vmem:[#allocation4 + $0x7a8] sm:$0xff]  ;;  %v367_v55 = vld [vmem:[#allocation4 + $0x7b8] sm:$0xff] }
 0x269   :  { %2411 = vmatprep.subr.bf16.mxu0 %v1073_v56  ;;  %2657 = vmatprep.subr.bf16.mxu1 %v1075_v57  ;;  %v1168_v56 = vunpack.c.h.s8.bf16 %v352_v46  ;;  %v1170_v57 = vunpack.c.h.s8.bf16 %v354_v47  ;;  %v1181_v58 = vunpack.c.l.s8.bf16 %v365_v54  ;;  %v1183_v59 = vunpack.c.l.s8.bf16 %v367_v55 }
 0x26a   :  { %v1193_v1 = vunpack.c.h.s8.bf16 %v365_v54  ;;  %v1195_v2 = vunpack.c.h.s8.bf16 %v367_v55 }
 0x26c   :  { %2412 = vmatpush1.bf16.msra.mxu0 %v1072_v60  ;;  %2658 = vmatpush1.bf16.msra.mxu1 %v1074_v62  ;;  %v364_v60 = vld [vmem:[#allocation4 + $0x7a0] sm:$0xff]  ;;  %v366_v62 = vld [vmem:[#allocation4 + $0x7b0] sm:$0xff] }
 0x26d   :  { %2422 = vmatprep.subr.bf16.mxu0 %v1085_v63  ;;  %2668 = vmatprep.subr.bf16.mxu1 %v1087_v0  ;;  %v1180_v63 = vunpack.c.l.s8.bf16 %v364_v60  ;;  %v1182_v0 = vunpack.c.l.s8.bf16 %v366_v62 }
 0x26f   :  { %2414 = vmatmul.mubr.bf16.vlgmr.msra.gmra.mrb[4].mxu0 %v4288_v17  ;;  %2660 = vmatmul.mubr.bf16.vlgmr.msra.gmra.mrb[4].mxu1 %v4288_v17 }
 0x270   :  { %2423 = vmatpush1.bf16.msra.mxu0 %v1084_v3  ;;  %2669 = vmatpush1.bf16.msra.mxu1 %v1086_v4  ;;  %v377_v3 = vld [vmem:[#allocation4 + $0x808] sm:$0xff]  ;;  %v379_v4 = vld [vmem:[#allocation4 + $0x818] sm:$0xff] }
 0x271   :  { %2424 = vmatprep.subr.bf16.mxu0 %v1097_v6  ;;  %2670 = vmatprep.subr.bf16.mxu1 %v1099_v7  ;;  %v1192_v6 = vunpack.c.h.s8.bf16 %v364_v60  ;;  %v1194_v7 = vunpack.c.h.s8.bf16 %v366_v62  ;;  %v1205_v8 = vunpack.c.l.s8.bf16 %v377_v3  ;;  %v1207_v9 = vunpack.c.l.s8.bf16 %v379_v4 }
 0x272   :  { %2454 = vmatprep.mubr.bf16.mxu0 %v4290_v25  ;;  %2700 = vmatprep.mubr.bf16.mxu1 %v4290_v25  ;;  %v1217_v14 = vunpack.c.h.s8.bf16 %v377_v3  ;;  %v1219_v15 = vunpack.c.h.s8.bf16 %v379_v4 }
 0x274   :  { %2425 = vmatpush1.bf16.msra.mxu0 %v1096_v10  ;;  %2671 = vmatpush1.bf16.msra.mxu1 %v1098_v11  ;;  %v376_v10 = vld [vmem:[#allocation4 + $0x800] sm:$0xff]  ;;  %v378_v11 = vld [vmem:[#allocation4 + $0x810] sm:$0xff] }
 0x275   :  { %2426 = vmatprep.subr.bf16.mxu0 %v1109_v12  ;;  %2672 = vmatprep.subr.bf16.mxu1 %v1111_v13  ;;  %v1204_v12 = vunpack.c.l.s8.bf16 %v376_v10  ;;  %v1206_v13 = vunpack.c.l.s8.bf16 %v378_v11 }
 0x278   :  { %2427 = vmatpush1.bf16.msra.mxu0 %v1108_v16  ;;  %2673 = vmatpush1.bf16.msra.mxu1 %v1110_v18  ;;  %v389_v16 = vld [vmem:[#allocation4 + $0x868] sm:$0xff]  ;;  %v391_v18 = vld [vmem:[#allocation4 + $0x878] sm:$0xff] }
 0x279   :  { %2428 = vmatprep.subr.bf16.mxu0 %v1121_v19  ;;  %2674 = vmatprep.subr.bf16.mxu1 %v1123_v20  ;;  %v1216_v19 = vunpack.c.h.s8.bf16 %v376_v10  ;;  %v1218_v20 = vunpack.c.h.s8.bf16 %v378_v11  ;;  %v1229_v22 = vunpack.c.l.s8.bf16 %v389_v16  ;;  %v1231_v23 = vunpack.c.l.s8.bf16 %v391_v18 }
 0x27a   :  { %v1241_v29 = vunpack.c.h.s8.bf16 %v389_v16  ;;  %v1243_v31 = vunpack.c.h.s8.bf16 %v391_v18 }
 0x27c   :  { %2429 = vmatpush1.bf16.msra.mxu0 %v1120_v24  ;;  %2675 = vmatpush1.bf16.msra.mxu1 %v1122_v26  ;;  %v388_v24 = vld [vmem:[#allocation4 + $0x860] sm:$0xff]  ;;  %v390_v26 = vld [vmem:[#allocation4 + $0x870] sm:$0xff] }
 0x27d   :  { %2430 = vmatprep.subr.bf16.mxu0 %v1133_v27  ;;  %2676 = vmatprep.subr.bf16.mxu1 %v1135_v28  ;;  %v1228_v27 = vunpack.c.l.s8.bf16 %v388_v24  ;;  %v1230_v28 = vunpack.c.l.s8.bf16 %v390_v26 }
 0x280   :  { %2431 = vmatpush1.bf16.msra.mxu0 %v1132_v32  ;;  %2677 = vmatpush1.bf16.msra.mxu1 %v1134_v33  ;;  %v401_v32 = vld [vmem:[#allocation4 + $0x8c8] sm:$0xff]  ;;  %v403_v33 = vld [vmem:[#allocation4 + $0x8d8] sm:$0xff] }
 0x281   :  { %2432 = vmatprep.subr.bf16.mxu0 %v1145_v34  ;;  %2678 = vmatprep.subr.bf16.mxu1 %v1147_v36  ;;  %v1240_v34 = vunpack.c.h.s8.bf16 %v388_v24  ;;  %v1242_v36 = vunpack.c.h.s8.bf16 %v390_v26  ;;  %v1253_v37 = vunpack.c.l.s8.bf16 %v401_v32  ;;  %v1255_v38 = vunpack.c.l.s8.bf16 %v403_v33 }
 0x282   :  { %v1265_v46 = vunpack.c.h.s8.bf16 %v401_v32  ;;  %v1267_v47 = vunpack.c.h.s8.bf16 %v403_v33 }
 0x284   :  { %2433 = vmatpush1.bf16.msra.mxu0 %v1144_v40  ;;  %2679 = vmatpush1.bf16.msra.mxu1 %v1146_v41  ;;  %v400_v40 = vld [vmem:[#allocation4 + $0x8c0] sm:$0xff]  ;;  %v402_v41 = vld [vmem:[#allocation4 + $0x8d0] sm:$0xff] }
 0x285   :  { %2434 = vmatprep.subr.bf16.mxu0 %v1157_v43  ;;  %2680 = vmatprep.subr.bf16.mxu1 %v1159_v45  ;;  %v1252_v43 = vunpack.c.l.s8.bf16 %v400_v40  ;;  %v1254_v45 = vunpack.c.l.s8.bf16 %v402_v41 }
 0x288   :  { %2435 = vmatpush1.bf16.msra.mxu0 %v1156_v48  ;;  %2681 = vmatpush1.bf16.msra.mxu1 %v1158_v49  ;;  %v413_v48 = vld [vmem:[#allocation4 + $0x928] sm:$0xff]  ;;  %v415_v49 = vld [vmem:[#allocation4 + $0x938] sm:$0xff] }
 0x289   :  { %2436 = vmatprep.subr.bf16.mxu0 %v1169_v51  ;;  %2682 = vmatprep.subr.bf16.mxu1 %v1171_v52  ;;  %v1264_v51 = vunpack.c.h.s8.bf16 %v400_v40  ;;  %v1266_v52 = vunpack.c.h.s8.bf16 %v402_v41  ;;  %v1277_v54 = vunpack.c.l.s8.bf16 %v413_v48  ;;  %v1279_v55 = vunpack.c.l.s8.bf16 %v415_v49 }
 0x28a   :  { %v1289_v60 = vunpack.c.h.s8.bf16 %v413_v48  ;;  %v1291_v62 = vunpack.c.h.s8.bf16 %v415_v49 }
 0x28c   :  { %2437 = vmatpush1.bf16.msra.mxu0 %v1168_v56  ;;  %2683 = vmatpush1.bf16.msra.mxu1 %v1170_v57  ;;  %v412_v56 = vld [vmem:[#allocation4 + $0x920] sm:$0xff]  ;;  %v414_v57 = vld [vmem:[#allocation4 + $0x930] sm:$0xff] }
 0x28d   :  { %2438 = vmatprep.subr.bf16.mxu0 %v1181_v58  ;;  %2684 = vmatprep.subr.bf16.mxu1 %v1183_v59  ;;  %v1276_v58 = vunpack.c.l.s8.bf16 %v412_v56  ;;  %v1278_v59 = vunpack.c.l.s8.bf16 %v414_v57 }
 0x290   :  { %2439 = vmatpush1.bf16.msra.mxu0 %v1180_v63  ;;  %2685 = vmatpush1.bf16.msra.mxu1 %v1182_v0  ;;  %v425_v63 = vld [vmem:[#allocation4 + $0x988] sm:$0xff]  ;;  %v427_v0 = vld [vmem:[#allocation4 + $0x998] sm:$0xff] }
 0x291   :  { %2440 = vmatprep.subr.bf16.mxu0 %v1193_v1  ;;  %2686 = vmatprep.subr.bf16.mxu1 %v1195_v2  ;;  %v1288_v1 = vunpack.c.h.s8.bf16 %v412_v56  ;;  %v1290_v2 = vunpack.c.h.s8.bf16 %v414_v57  ;;  %v1301_v3 = vunpack.c.l.s8.bf16 %v425_v63  ;;  %v1303_v4 = vunpack.c.l.s8.bf16 %v427_v0 }
 0x292   :  { %v1313_v10 = vunpack.c.h.s8.bf16 %v425_v63  ;;  %v1315_v11 = vunpack.c.h.s8.bf16 %v427_v0 }
 0x294   :  { %2441 = vmatpush1.bf16.msra.mxu0 %v1192_v6  ;;  %2687 = vmatpush1.bf16.msra.mxu1 %v1194_v7  ;;  %v424_v6 = vld [vmem:[#allocation4 + $0x980] sm:$0xff]  ;;  %v426_v7 = vld [vmem:[#allocation4 + $0x990] sm:$0xff] }
 0x295   :  { %2442 = vmatprep.subr.bf16.mxu0 %v1205_v8  ;;  %2688 = vmatprep.subr.bf16.mxu1 %v1207_v9  ;;  %v1300_v8 = vunpack.c.l.s8.bf16 %v424_v6  ;;  %v1302_v9 = vunpack.c.l.s8.bf16 %v426_v7 }
 0x298   :  { %2443 = vmatpush1.bf16.msra.mxu0 %v1204_v12  ;;  %2689 = vmatpush1.bf16.msra.mxu1 %v1206_v13  ;;  %v437_v12 = vld [vmem:[#allocation4 + $0x9e8] sm:$0xff]  ;;  %v439_v13 = vld [vmem:[#allocation4 + $0x9f8] sm:$0xff] }
 0x299   :  { %2444 = vmatprep.subr.bf16.mxu0 %v1217_v14  ;;  %2690 = vmatprep.subr.bf16.mxu1 %v1219_v15  ;;  %v1312_v14 = vunpack.c.h.s8.bf16 %v424_v6  ;;  %v1314_v15 = vunpack.c.h.s8.bf16 %v426_v7  ;;  %v1325_v16 = vunpack.c.l.s8.bf16 %v437_v12  ;;  %v1327_v18 = vunpack.c.l.s8.bf16 %v439_v13 }
 0x29a   :  { %v1337_v24 = vunpack.c.h.s8.bf16 %v437_v12  ;;  %v1339_v26 = vunpack.c.h.s8.bf16 %v439_v13 }
 0x29c   :  { %2445 = vmatpush1.bf16.msra.mxu0 %v1216_v19  ;;  %2691 = vmatpush1.bf16.msra.mxu1 %v1218_v20  ;;  %v436_v19 = vld [vmem:[#allocation4 + $0x9e0] sm:$0xff]  ;;  %v438_v20 = vld [vmem:[#allocation4 + $0x9f0] sm:$0xff] }
 0x29d   :  { %2446 = vmatprep.subr.bf16.mxu0 %v1229_v22  ;;  %2692 = vmatprep.subr.bf16.mxu1 %v1231_v23  ;;  %v1324_v22 = vunpack.c.l.s8.bf16 %v436_v19  ;;  %v1326_v23 = vunpack.c.l.s8.bf16 %v438_v20 }
 0x2a0   :  { %2447 = vmatpush1.bf16.msra.mxu0 %v1228_v27  ;;  %2693 = vmatpush1.bf16.msra.mxu1 %v1230_v28  ;;  %v449_v27 = vld [vmem:[#allocation4 + $0xa48] sm:$0xff]  ;;  %v451_v28 = vld [vmem:[#allocation4 + $0xa58] sm:$0xff] }
 0x2a1   :  { %2448 = vmatprep.subr.bf16.mxu0 %v1241_v29  ;;  %2694 = vmatprep.subr.bf16.mxu1 %v1243_v31  ;;  %v1336_v29 = vunpack.c.h.s8.bf16 %v436_v19  ;;  %v1338_v31 = vunpack.c.h.s8.bf16 %v438_v20  ;;  %v1349_v32 = vunpack.c.l.s8.bf16 %v449_v27  ;;  %v1351_v33 = vunpack.c.l.s8.bf16 %v451_v28 }
 0x2a4   :  { %2449 = vmatpush1.bf16.msra.mxu0 %v1240_v34  ;;  %2695 = vmatpush1.bf16.msra.mxu1 %v1242_v36  ;;  %v448_v34 = vld [vmem:[#allocation4 + $0xa40] sm:$0xff]  ;;  %v450_v36 = vld [vmem:[#allocation4 + $0xa50] sm:$0xff] }
 0x2a5   :  { %2450 = vmatprep.subr.bf16.mxu0 %v1253_v37  ;;  %2696 = vmatprep.subr.bf16.mxu1 %v1255_v38  ;;  %v1360_v56 = vunpack.c.h.s8.bf16 %v448_v34  ;;  %v1362_v57 = vunpack.c.h.s8.bf16 %v450_v36 }
 0x2a8   :  { %2451 = vmatpush1.bf16.msra.mxu0 %v1252_v43  ;;  %2697 = vmatpush1.bf16.msra.mxu1 %v1254_v45 }
 0x2a9   :  { %2452 = vmatprep.subr.bf16.mxu0 %v1265_v46  ;;  %2698 = vmatprep.subr.bf16.mxu1 %v1267_v47  ;;  %v1348_v46 = vunpack.c.l.s8.bf16 %v448_v34  ;;  %v1350_v47 = vunpack.c.l.s8.bf16 %v450_v36 }
 0x2ac   :  { %2453 = vmatpush1.bf16.msra.mxu0 %v1264_v51  ;;  %2699 = vmatpush1.bf16.msra.mxu1 %v1266_v52  ;;  %v1361_v51 = vunpack.c.h.s8.bf16 %v449_v27  ;;  %v1363_v52 = vunpack.c.h.s8.bf16 %v451_v28 }
 0x2ad   :  { %2463 = vmatprep.subr.bf16.mxu0 %v1277_v54  ;;  %2709 = vmatprep.subr.bf16.mxu1 %v1279_v55  ;;  %v461_v54 = vld [vmem:[#allocation4 + $0xaa8] sm:$0xff]  ;;  %v463_v55 = vld [vmem:[#allocation4 + $0xab8] sm:$0xff] }
 0x2af   :  { %2455 = vmatmul.mubr.bf16.vlgmr.msra.gmra.mrb[4].mxu0 %v4296_v61  ;;  %2701 = vmatmul.mubr.bf16.vlgmr.msra.gmra.mrb[4].mxu1 %v4296_v61 }
 0x2b0   :  { %2464 = vmatpush1.bf16.msra.mxu0 %v1276_v58  ;;  %2710 = vmatpush1.bf16.msra.mxu1 %v1278_v59  ;;  %v1373_v58 = vunpack.c.l.s8.bf16 %v461_v54  ;;  %v1375_v59 = vunpack.c.l.s8.bf16 %v463_v55 }
 0x2b1   :  { %2465 = vmatprep.subr.bf16.mxu0 %v1289_v60  ;;  %2711 = vmatprep.subr.bf16.mxu1 %v1291_v62  ;;  %v460_v60 = vld [vmem:[#allocation4 + $0xaa0] sm:$0xff]  ;;  %v462_v62 = vld [vmem:[#allocation4 + $0xab0] sm:$0xff] }
 0x2b2   :  { %2495 = vmatprep.mubr.bf16.mxu0 %v4298_v5  ;;  %2741 = vmatprep.mubr.bf16.mxu1 %v4298_v5  ;;  %v1372_v63 = vunpack.c.l.s8.bf16 %v460_v60  ;;  %v1374_v0 = vunpack.c.l.s8.bf16 %v462_v62  ;;  %v1384_v6 = vunpack.c.h.s8.bf16 %v460_v60  ;;  %v1386_v7 = vunpack.c.h.s8.bf16 %v462_v62  ;;  %v508_v60 = vld [vmem:[#allocation4 + $0xc20] sm:$0xff]  ;;  %v510_v62 = vld [vmem:[#allocation4 + $0xc30] sm:$0xff] }
 0x2b4   :  { %2466 = vmatpush1.bf16.msra.mxu0 %v1288_v1  ;;  %2712 = vmatpush1.bf16.msra.mxu1 %v1290_v2  ;;  %v1385_v1 = vunpack.c.h.s8.bf16 %v461_v54  ;;  %v1387_v2 = vunpack.c.h.s8.bf16 %v463_v55  ;;  %v509_v54 = vld [vmem:[#allocation4 + $0xc28] sm:$0xff]  ;;  %v511_v55 = vld [vmem:[#allocation4 + $0xc38] sm:$0xff] }
 0x2b5   :  { %2467 = vmatprep.subr.bf16.mxu0 %v1301_v3  ;;  %2713 = vmatprep.subr.bf16.mxu1 %v1303_v4  ;;  %v473_v3 = vld [vmem:[#allocation4 + $0xb08] sm:$0xff]  ;;  %v475_v4 = vld [vmem:[#allocation4 + $0xb18] sm:$0xff] }
 0x2b8   :  { %2468 = vmatpush1.bf16.msra.mxu0 %v1300_v8  ;;  %2714 = vmatpush1.bf16.msra.mxu1 %v1302_v9  ;;  %v1397_v8 = vunpack.c.l.s8.bf16 %v473_v3  ;;  %v1399_v9 = vunpack.c.l.s8.bf16 %v475_v4 }
 0x2b9   :  { %2469 = vmatprep.subr.bf16.mxu0 %v1313_v10  ;;  %2715 = vmatprep.subr.bf16.mxu1 %v1315_v11  ;;  %v472_v10 = vld [vmem:[#allocation4 + $0xb00] sm:$0xff]  ;;  %v474_v11 = vld [vmem:[#allocation4 + $0xb10] sm:$0xff] }
 0x2ba   :  { %v1396_v12 = vunpack.c.l.s8.bf16 %v472_v10  ;;  %v1398_v13 = vunpack.c.l.s8.bf16 %v474_v11  ;;  %v1408_v19 = vunpack.c.h.s8.bf16 %v472_v10  ;;  %v1410_v20 = vunpack.c.h.s8.bf16 %v474_v11  ;;  %v520_v10 = vld [vmem:[#allocation4 + $0xc80] sm:$0xff]  ;;  %v522_v11 = vld [vmem:[#allocation4 + $0xc90] sm:$0xff] }
 0x2bc   :  { %2470 = vmatpush1.bf16.msra.mxu0 %v1312_v14  ;;  %2716 = vmatpush1.bf16.msra.mxu1 %v1314_v15  ;;  %v1409_v14 = vunpack.c.h.s8.bf16 %v473_v3  ;;  %v1411_v15 = vunpack.c.h.s8.bf16 %v475_v4  ;;  %v521_v3 = vld [vmem:[#allocation4 + $0xc88] sm:$0xff]  ;;  %v523_v4 = vld [vmem:[#allocation4 + $0xc98] sm:$0xff] }
 0x2bd   :  { %2471 = vmatprep.subr.bf16.mxu0 %v1325_v16  ;;  %2717 = vmatprep.subr.bf16.mxu1 %v1327_v18  ;;  %v485_v16 = vld [vmem:[#allocation4 + $0xb68] sm:$0xff]  ;;  %v487_v18 = vld [vmem:[#allocation4 + $0xb78] sm:$0xff] }
 0x2c0   :  { %2472 = vmatpush1.bf16.msra.mxu0 %v1324_v22  ;;  %2718 = vmatpush1.bf16.msra.mxu1 %v1326_v23  ;;  %v1421_v22 = vunpack.c.l.s8.bf16 %v485_v16  ;;  %v1423_v23 = vunpack.c.l.s8.bf16 %v487_v18 }
 0x2c1   :  { %2473 = vmatprep.subr.bf16.mxu0 %v1337_v24  ;;  %2719 = vmatprep.subr.bf16.mxu1 %v1339_v26  ;;  %v484_v24 = vld [vmem:[#allocation4 + $0xb60] sm:$0xff]  ;;  %v486_v26 = vld [vmem:[#allocation4 + $0xb70] sm:$0xff] }
 0x2c2   :  { %v4338_v37 = vpop.f32.mrb[0].mxu0  ;;  %v4340_v38 = vpop.f32.mrb[0].mxu1  ;;  %v1420_v27 = vunpack.c.l.s8.bf16 %v484_v24  ;;  %v1422_v28 = vunpack.c.l.s8.bf16 %v486_v26  ;;  %v1432_v34 = vunpack.c.h.s8.bf16 %v484_v24  ;;  %v1434_v36 = vunpack.c.h.s8.bf16 %v486_v26  ;;  %v532_v24 = vld [vmem:[#allocation4 + $0xce0] sm:$0xff]  ;;  %v534_v26 = vld [vmem:[#allocation4 + $0xcf0] sm:$0xff] }
 0x2c3   :  { %v4342_v40 = vpop.f32.mrb[1].mxu0  ;;  %v4344_v41 = vpop.f32.mrb[1].mxu1 }
 0x2c4   :  { %v2091_v43 = vpop.f32.mrb[2].mxu0  ;;  %v2337_v45 = vpop.f32.mrb[2].mxu1  ;;  %2474 = vmatpush1.bf16.msra.mxu0 %v1336_v29  ;;  %2720 = vmatpush1.bf16.msra.mxu1 %v1338_v31  ;;  %v1433_v29 = vunpack.c.h.s8.bf16 %v485_v16  ;;  %v1435_v31 = vunpack.c.h.s8.bf16 %v487_v18  ;;  %v533_v16 = vld [vmem:[#allocation4 + $0xce8] sm:$0xff]  ;;  %v535_v18 = vld [vmem:[#allocation4 + $0xcf8] sm:$0xff] }
 0x2c5   :  { %v2092_v48 = vpop.f32.mrb[3].mxu0  ;;  %v2338_v49 = vpop.f32.mrb[3].mxu1  ;;  %2475 = vmatprep.subr.bf16.mxu0 %v1349_v32  ;;  %2721 = vmatprep.subr.bf16.mxu1 %v1351_v33  ;;  %v497_v32 = vld [vmem:[#allocation4 + $0xbc8] sm:$0xff]  ;;  %v499_v33 = vld [vmem:[#allocation4 + $0xbd8] sm:$0xff] }
 0x2c6   :  { %v1445_v43 = vunpack.c.l.s8.bf16 %v497_v32  ;;  %v1447_v45 = vunpack.c.l.s8.bf16 %v499_v33 }
 0x2c8   :  { %2476 = vmatpush1.bf16.msra.mxu0 %v1348_v46  ;;  %2722 = vmatpush1.bf16.msra.mxu1 %v1350_v47  ;;  %v496_v46 = vld [vmem:[#allocation4 + $0xbc0] sm:$0xff]  ;;  %v498_v47 = vld [vmem:[#allocation4 + $0xbd0] sm:$0xff] }
 0x2c9   :  { %2477 = vmatprep.subr.bf16.mxu0 %v1361_v51  ;;  %2723 = vmatprep.subr.bf16.mxu1 %v1363_v52  ;;  %v1444_v48 = vunpack.c.l.s8.bf16 %v496_v46  ;;  %v1446_v49 = vunpack.c.l.s8.bf16 %v498_v47  ;;  %v1457_v51 = vunpack.c.h.s8.bf16 %v497_v32  ;;  %v1459_v52 = vunpack.c.h.s8.bf16 %v499_v33  ;;  %v545_v32 = vld [vmem:[#allocation4 + $0xd48] sm:$0xff]  ;;  %v547_v33 = vld [vmem:[#allocation4 + $0xd58] sm:$0xff] }
 0x2cc   :  { %2478 = vmatpush1.bf16.msra.mxu0 %v1360_v56  ;;  %2724 = vmatpush1.bf16.msra.mxu1 %v1362_v57  ;;  %v1456_v56 = vunpack.c.h.s8.bf16 %v496_v46  ;;  %v1458_v57 = vunpack.c.h.s8.bf16 %v498_v47  ;;  %v544_v46 = vld [vmem:[#allocation4 + $0xd40] sm:$0xff]  ;;  %v546_v47 = vld [vmem:[#allocation4 + $0xd50] sm:$0xff] }
 0x2cd   :  { %2479 = vmatprep.subr.bf16.mxu0 %v1373_v58  ;;  %2725 = vmatprep.subr.bf16.mxu1 %v1375_v59  ;;  %v1469_v58 = vunpack.c.l.s8.bf16 %v509_v54  ;;  %v1471_v59 = vunpack.c.l.s8.bf16 %v511_v55 }
 0x2d0   :  { %2480 = vmatpush1.bf16.msra.mxu0 %v1372_v63  ;;  %2726 = vmatpush1.bf16.msra.mxu1 %v1374_v0  ;;  %v1468_v63 = vunpack.c.l.s8.bf16 %v508_v60  ;;  %v1470_v0 = vunpack.c.l.s8.bf16 %v510_v62 }
 0x2d1   :  { %2481 = vmatprep.subr.bf16.mxu0 %v1385_v1  ;;  %2727 = vmatprep.subr.bf16.mxu1 %v1387_v2  ;;  %v1481_v1 = vunpack.c.h.s8.bf16 %v509_v54  ;;  %v1483_v2 = vunpack.c.h.s8.bf16 %v511_v55  ;;  %v557_v54 = vld [vmem:[#allocation4 + $0xda8] sm:$0xff]  ;;  %v559_v55 = vld [vmem:[#allocation4 + $0xdb8] sm:$0xff] }
 0x2d4   :  { %2482 = vmatpush1.bf16.msra.mxu0 %v1384_v6  ;;  %2728 = vmatpush1.bf16.msra.mxu1 %v1386_v7  ;;  %v1480_v6 = vunpack.c.h.s8.bf16 %v508_v60  ;;  %v1482_v7 = vunpack.c.h.s8.bf16 %v510_v62  ;;  %v556_v60 = vld [vmem:[#allocation4 + $0xda0] sm:$0xff]  ;;  %v558_v62 = vld [vmem:[#allocation4 + $0xdb0] sm:$0xff] }
 0x2d5   :  { %2483 = vmatprep.subr.bf16.mxu0 %v1397_v8  ;;  %2729 = vmatprep.subr.bf16.mxu1 %v1399_v9  ;;  %v1493_v8 = vunpack.c.l.s8.bf16 %v521_v3  ;;  %v1495_v9 = vunpack.c.l.s8.bf16 %v523_v4 }
 0x2d8   :  { %2484 = vmatpush1.bf16.msra.mxu0 %v1396_v12  ;;  %2730 = vmatpush1.bf16.msra.mxu1 %v1398_v13  ;;  %v1492_v12 = vunpack.c.l.s8.bf16 %v520_v10  ;;  %v1494_v13 = vunpack.c.l.s8.bf16 %v522_v11 }
 0x2d9   :  { %2485 = vmatprep.subr.bf16.mxu0 %v1409_v14  ;;  %2731 = vmatprep.subr.bf16.mxu1 %v1411_v15  ;;  %v1505_v14 = vunpack.c.h.s8.bf16 %v521_v3  ;;  %v1507_v15 = vunpack.c.h.s8.bf16 %v523_v4  ;;  %v569_v3 = vld [vmem:[#allocation4 + $0xe08] sm:$0xff]  ;;  %v571_v4 = vld [vmem:[#allocation4 + $0xe18] sm:$0xff] }
 0x2dc   :  { %2486 = vmatpush1.bf16.msra.mxu0 %v1408_v19  ;;  %2732 = vmatpush1.bf16.msra.mxu1 %v1410_v20  ;;  %v1504_v19 = vunpack.c.h.s8.bf16 %v520_v10  ;;  %v1506_v20 = vunpack.c.h.s8.bf16 %v522_v11  ;;  %v568_v10 = vld [vmem:[#allocation4 + $0xe00] sm:$0xff]  ;;  %v570_v11 = vld [vmem:[#allocation4 + $0xe10] sm:$0xff] }
 0x2dd   :  { %2487 = vmatprep.subr.bf16.mxu0 %v1421_v22  ;;  %2733 = vmatprep.subr.bf16.mxu1 %v1423_v23  ;;  %v1517_v22 = vunpack.c.l.s8.bf16 %v533_v16  ;;  %v1519_v23 = vunpack.c.l.s8.bf16 %v535_v18 }
 0x2e0   :  { %2488 = vmatpush1.bf16.msra.mxu0 %v1420_v27  ;;  %2734 = vmatpush1.bf16.msra.mxu1 %v1422_v28  ;;  %v1516_v27 = vunpack.c.l.s8.bf16 %v532_v24  ;;  %v1518_v28 = vunpack.c.l.s8.bf16 %v534_v26 }
 0x2e1   :  { %2489 = vmatprep.subr.bf16.mxu0 %v1433_v29  ;;  %2735 = vmatprep.subr.bf16.mxu1 %v1435_v31  ;;  %v1529_v29 = vunpack.c.h.s8.bf16 %v533_v16  ;;  %v1531_v31 = vunpack.c.h.s8.bf16 %v535_v18  ;;  %v581_v16 = vld [vmem:[#allocation4 + $0xe68] sm:$0xff]  ;;  %v583_v18 = vld [vmem:[#allocation4 + $0xe78] sm:$0xff] }
 0x2e4   :  { %2490 = vmatpush1.bf16.msra.mxu0 %v1432_v34  ;;  %2736 = vmatpush1.bf16.msra.mxu1 %v1434_v36  ;;  %v1528_v34 = vunpack.c.h.s8.bf16 %v532_v24  ;;  %v1530_v36 = vunpack.c.h.s8.bf16 %v534_v26  ;;  %v580_v24 = vld [vmem:[#allocation4 + $0xe60] sm:$0xff]  ;;  %v582_v26 = vld [vmem:[#allocation4 + $0xe70] sm:$0xff] }
 0x2e5   :  { %2491 = vmatprep.subr.bf16.mxu0 %v1445_v43  ;;  %2737 = vmatprep.subr.bf16.mxu1 %v1447_v45  ;;  %v1541_v43 = vunpack.c.l.s8.bf16 %v545_v32  ;;  %v1543_v45 = vunpack.c.l.s8.bf16 %v547_v33 }
 0x2e8   :  { %2492 = vmatpush1.bf16.msra.mxu0 %v1444_v48  ;;  %2738 = vmatpush1.bf16.msra.mxu1 %v1446_v49  ;;  %v1540_v48 = vunpack.c.l.s8.bf16 %v544_v46  ;;  %v1542_v49 = vunpack.c.l.s8.bf16 %v546_v47 }
 0x2e9   :  { %2493 = vmatprep.subr.bf16.mxu0 %v1457_v51  ;;  %2739 = vmatprep.subr.bf16.mxu1 %v1459_v52  ;;  %v1553_v51 = vunpack.c.h.s8.bf16 %v545_v32  ;;  %v1555_v52 = vunpack.c.h.s8.bf16 %v547_v33  ;;  %v593_v32 = vld [vmem:[#allocation4 + $0xec8] sm:$0xff]  ;;  %v595_v33 = vld [vmem:[#allocation4 + $0xed8] sm:$0xff] }
 0x2ec   :  { %2494 = vmatpush1.bf16.msra.mxu0 %v1456_v56  ;;  %2740 = vmatpush1.bf16.msra.mxu1 %v1458_v57  ;;  %v1552_v56 = vunpack.c.h.s8.bf16 %v544_v46  ;;  %v1554_v57 = vunpack.c.h.s8.bf16 %v546_v47  ;;  %v592_v46 = vld [vmem:[#allocation4 + $0xec0] sm:$0xff]  ;;  %v594_v47 = vld [vmem:[#allocation4 + $0xed0] sm:$0xff] }
 0x2ed   :  { %2504 = vmatprep.subr.bf16.mxu0 %v1469_v58  ;;  %2750 = vmatprep.subr.bf16.mxu1 %v1471_v59  ;;  %v1565_v58 = vunpack.c.l.s8.bf16 %v557_v54  ;;  %v1567_v59 = vunpack.c.l.s8.bf16 %v559_v55 }
 0x2ef   :  { %2496 = vmatmul.mubr.bf16.vlgmr.msra.gmra.mrb[4].mxu0 %v4304_v44  ;;  %2742 = vmatmul.mubr.bf16.vlgmr.msra.gmra.mrb[4].mxu1 %v4304_v44 }
 0x2f0   :  { %2505 = vmatpush1.bf16.msra.mxu0 %v1468_v63  ;;  %2751 = vmatpush1.bf16.msra.mxu1 %v1470_v0  ;;  %v1564_v63 = vunpack.c.l.s8.bf16 %v556_v60  ;;  %v1566_v0 = vunpack.c.l.s8.bf16 %v558_v62 }
 0x2f1   :  { %2506 = vmatprep.subr.bf16.mxu0 %v1481_v1  ;;  %2752 = vmatprep.subr.bf16.mxu1 %v1483_v2  ;;  %v1577_v1 = vunpack.c.h.s8.bf16 %v557_v54  ;;  %v1579_v2 = vunpack.c.h.s8.bf16 %v559_v55  ;;  %v605_v54 = vld [vmem:[#allocation4 + $0xf28] sm:$0xff]  ;;  %v607_v55 = vld [vmem:[#allocation4 + $0xf38] sm:$0xff] }
 0x2f2   :  { %2536 = vmatprep.mubr.bf16.mxu0 %v4306_v53  ;;  %2782 = vmatprep.mubr.bf16.mxu1 %v4306_v53 }
 0x2f4   :  { %2507 = vmatpush1.bf16.msra.mxu0 %v1480_v6  ;;  %2753 = vmatpush1.bf16.msra.mxu1 %v1482_v7  ;;  %v1576_v6 = vunpack.c.h.s8.bf16 %v556_v60  ;;  %v1578_v7 = vunpack.c.h.s8.bf16 %v558_v62  ;;  %v604_v60 = vld [vmem:[#allocation4 + $0xf20] sm:$0xff]  ;;  %v606_v62 = vld [vmem:[#allocation4 + $0xf30] sm:$0xff] }
 0x2f5   :  { %2508 = vmatprep.subr.bf16.mxu0 %v1493_v8  ;;  %2754 = vmatprep.subr.bf16.mxu1 %v1495_v9  ;;  %v1589_v8 = vunpack.c.l.s8.bf16 %v569_v3  ;;  %v1591_v9 = vunpack.c.l.s8.bf16 %v571_v4 }
 0x2f8   :  { %2509 = vmatpush1.bf16.msra.mxu0 %v1492_v12  ;;  %2755 = vmatpush1.bf16.msra.mxu1 %v1494_v13  ;;  %v1588_v12 = vunpack.c.l.s8.bf16 %v568_v10  ;;  %v1590_v13 = vunpack.c.l.s8.bf16 %v570_v11 }
 0x2f9   :  { %2510 = vmatprep.subr.bf16.mxu0 %v1505_v14  ;;  %2756 = vmatprep.subr.bf16.mxu1 %v1507_v15  ;;  %v1601_v14 = vunpack.c.h.s8.bf16 %v569_v3  ;;  %v1603_v15 = vunpack.c.h.s8.bf16 %v571_v4  ;;  %v617_v3 = vld [vmem:[#allocation4 + $0xf88] sm:$0xff]  ;;  %v619_v4 = vld [vmem:[#allocation4 + $0xf98] sm:$0xff] }
 0x2fc   :  { %2511 = vmatpush1.bf16.msra.mxu0 %v1504_v19  ;;  %2757 = vmatpush1.bf16.msra.mxu1 %v1506_v20  ;;  %v1600_v19 = vunpack.c.h.s8.bf16 %v568_v10  ;;  %v1602_v20 = vunpack.c.h.s8.bf16 %v570_v11  ;;  %v616_v10 = vld [vmem:[#allocation4 + $0xf80] sm:$0xff]  ;;  %v618_v11 = vld [vmem:[#allocation4 + $0xf90] sm:$0xff] }
 0x2fd   :  { %2512 = vmatprep.subr.bf16.mxu0 %v1517_v22  ;;  %2758 = vmatprep.subr.bf16.mxu1 %v1519_v23  ;;  %v1613_v22 = vunpack.c.l.s8.bf16 %v581_v16  ;;  %v1615_v23 = vunpack.c.l.s8.bf16 %v583_v18 }
 0x300   :  { %2513 = vmatpush1.bf16.msra.mxu0 %v1516_v27  ;;  %2759 = vmatpush1.bf16.msra.mxu1 %v1518_v28  ;;  %v1612_v27 = vunpack.c.l.s8.bf16 %v580_v24  ;;  %v1614_v28 = vunpack.c.l.s8.bf16 %v582_v26 }
 0x301   :  { %2514 = vmatprep.subr.bf16.mxu0 %v1529_v29  ;;  %2760 = vmatprep.subr.bf16.mxu1 %v1531_v31  ;;  %v1625_v29 = vunpack.c.h.s8.bf16 %v581_v16  ;;  %v1627_v31 = vunpack.c.h.s8.bf16 %v583_v18  ;;  %v629_v16 = vld [vmem:[#allocation4 + $0xfe8] sm:$0xff]  ;;  %v631_v18 = vld [vmem:[#allocation4 + $0xff8] sm:$0xff] }
 0x304   :  { %2515 = vmatpush1.bf16.msra.mxu0 %v1528_v34  ;;  %2761 = vmatpush1.bf16.msra.mxu1 %v1530_v36  ;;  %v1624_v34 = vunpack.c.h.s8.bf16 %v580_v24  ;;  %v1626_v36 = vunpack.c.h.s8.bf16 %v582_v26  ;;  %v628_v24 = vld [vmem:[#allocation4 + $0xfe0] sm:$0xff]  ;;  %v630_v26 = vld [vmem:[#allocation4 + $0xff0] sm:$0xff] }
 0x305   :  { %2516 = vmatprep.subr.bf16.mxu0 %v1541_v43  ;;  %2762 = vmatprep.subr.bf16.mxu1 %v1543_v45  ;;  %v1637_v43 = vunpack.c.l.s8.bf16 %v593_v32  ;;  %v1639_v45 = vunpack.c.l.s8.bf16 %v595_v33 }
 0x308   :  { %2517 = vmatpush1.bf16.msra.mxu0 %v1540_v48  ;;  %2763 = vmatpush1.bf16.msra.mxu1 %v1542_v49  ;;  %v1636_v48 = vunpack.c.l.s8.bf16 %v592_v46  ;;  %v1638_v49 = vunpack.c.l.s8.bf16 %v594_v47 }
 0x309   :  { %2518 = vmatprep.subr.bf16.mxu0 %v1553_v51  ;;  %2764 = vmatprep.subr.bf16.mxu1 %v1555_v52  ;;  %v1649_v51 = vunpack.c.h.s8.bf16 %v593_v32  ;;  %v1651_v52 = vunpack.c.h.s8.bf16 %v595_v33  ;;  %v641_v32 = vld [vmem:[#allocation4 + $0x1048] sm:$0xff]  ;;  %v643_v33 = vld [vmem:[#allocation4 + $0x1058] sm:$0xff] }
 0x30c   :  { %2519 = vmatpush1.bf16.msra.mxu0 %v1552_v56  ;;  %2765 = vmatpush1.bf16.msra.mxu1 %v1554_v57  ;;  %v1648_v56 = vunpack.c.h.s8.bf16 %v592_v46  ;;  %v1650_v57 = vunpack.c.h.s8.bf16 %v594_v47  ;;  %v640_v46 = vld [vmem:[#allocation4 + $0x1040] sm:$0xff]  ;;  %v642_v47 = vld [vmem:[#allocation4 + $0x1050] sm:$0xff] }
 0x30d   :  { %2520 = vmatprep.subr.bf16.mxu0 %v1565_v58  ;;  %2766 = vmatprep.subr.bf16.mxu1 %v1567_v59  ;;  %v1661_v58 = vunpack.c.l.s8.bf16 %v605_v54  ;;  %v1663_v59 = vunpack.c.l.s8.bf16 %v607_v55 }
 0x310   :  { %2521 = vmatpush1.bf16.msra.mxu0 %v1564_v63  ;;  %2767 = vmatpush1.bf16.msra.mxu1 %v1566_v0  ;;  %v1660_v63 = vunpack.c.l.s8.bf16 %v604_v60  ;;  %v1662_v0 = vunpack.c.l.s8.bf16 %v606_v62 }
 0x311   :  { %2522 = vmatprep.subr.bf16.mxu0 %v1577_v1  ;;  %2768 = vmatprep.subr.bf16.mxu1 %v1579_v2  ;;  %v1673_v1 = vunpack.c.h.s8.bf16 %v605_v54  ;;  %v1675_v2 = vunpack.c.h.s8.bf16 %v607_v55  ;;  %v653_v54 = vld [vmem:[#allocation4 + $0x10a8] sm:$0xff]  ;;  %v655_v55 = vld [vmem:[#allocation4 + $0x10b8] sm:$0xff] }
 0x314   :  { %2523 = vmatpush1.bf16.msra.mxu0 %v1576_v6  ;;  %2769 = vmatpush1.bf16.msra.mxu1 %v1578_v7  ;;  %v1672_v6 = vunpack.c.h.s8.bf16 %v604_v60  ;;  %v1674_v7 = vunpack.c.h.s8.bf16 %v606_v62  ;;  %v652_v60 = vld [vmem:[#allocation4 + $0x10a0] sm:$0xff]  ;;  %v654_v62 = vld [vmem:[#allocation4 + $0x10b0] sm:$0xff] }
 0x315   :  { %2524 = vmatprep.subr.bf16.mxu0 %v1589_v8  ;;  %2770 = vmatprep.subr.bf16.mxu1 %v1591_v9  ;;  %v1685_v8 = vunpack.c.l.s8.bf16 %v617_v3  ;;  %v1687_v9 = vunpack.c.l.s8.bf16 %v619_v4 }
 0x318   :  { %2525 = vmatpush1.bf16.msra.mxu0 %v1588_v12  ;;  %2771 = vmatpush1.bf16.msra.mxu1 %v1590_v13  ;;  %v1684_v12 = vunpack.c.l.s8.bf16 %v616_v10  ;;  %v1686_v13 = vunpack.c.l.s8.bf16 %v618_v11 }
 0x319   :  { %2526 = vmatprep.subr.bf16.mxu0 %v1601_v14  ;;  %2772 = vmatprep.subr.bf16.mxu1 %v1603_v15  ;;  %v1697_v14 = vunpack.c.h.s8.bf16 %v617_v3  ;;  %v1699_v15 = vunpack.c.h.s8.bf16 %v619_v4  ;;  %v665_v3 = vld [vmem:[#allocation4 + $0x1108] sm:$0xff]  ;;  %v667_v4 = vld [vmem:[#allocation4 + $0x1118] sm:$0xff] }
 0x31c   :  { %2527 = vmatpush1.bf16.msra.mxu0 %v1600_v19  ;;  %2773 = vmatpush1.bf16.msra.mxu1 %v1602_v20  ;;  %v1696_v19 = vunpack.c.h.s8.bf16 %v616_v10  ;;  %v1698_v20 = vunpack.c.h.s8.bf16 %v618_v11  ;;  %v664_v10 = vld [vmem:[#allocation4 + $0x1100] sm:$0xff]  ;;  %v666_v11 = vld [vmem:[#allocation4 + $0x1110] sm:$0xff] }
 0x31d   :  { %2528 = vmatprep.subr.bf16.mxu0 %v1613_v22  ;;  %2774 = vmatprep.subr.bf16.mxu1 %v1615_v23  ;;  %v1709_v22 = vunpack.c.l.s8.bf16 %v629_v16  ;;  %v1711_v23 = vunpack.c.l.s8.bf16 %v631_v18 }
 0x320   :  { %2529 = vmatpush1.bf16.msra.mxu0 %v1612_v27  ;;  %2775 = vmatpush1.bf16.msra.mxu1 %v1614_v28  ;;  %v1708_v27 = vunpack.c.l.s8.bf16 %v628_v24  ;;  %v1710_v28 = vunpack.c.l.s8.bf16 %v630_v26 }
 0x321   :  { %2530 = vmatprep.subr.bf16.mxu0 %v1625_v29  ;;  %2776 = vmatprep.subr.bf16.mxu1 %v1627_v31  ;;  %v1721_v29 = vunpack.c.h.s8.bf16 %v629_v16  ;;  %v1723_v31 = vunpack.c.h.s8.bf16 %v631_v18  ;;  %v677_v16 = vld [vmem:[#allocation4 + $0x1168] sm:$0xff]  ;;  %v679_v18 = vld [vmem:[#allocation4 + $0x1178] sm:$0xff] }
 0x324   :  { %2531 = vmatpush1.bf16.msra.mxu0 %v1624_v34  ;;  %2777 = vmatpush1.bf16.msra.mxu1 %v1626_v36  ;;  %v1720_v34 = vunpack.c.h.s8.bf16 %v628_v24  ;;  %v1722_v36 = vunpack.c.h.s8.bf16 %v630_v26  ;;  %v676_v24 = vld [vmem:[#allocation4 + $0x1160] sm:$0xff]  ;;  %v678_v26 = vld [vmem:[#allocation4 + $0x1170] sm:$0xff] }
 0x325   :  { %2532 = vmatprep.subr.bf16.mxu0 %v1637_v43  ;;  %2778 = vmatprep.subr.bf16.mxu1 %v1639_v45  ;;  %v1733_v43 = vunpack.c.l.s8.bf16 %v641_v32  ;;  %v1735_v45 = vunpack.c.l.s8.bf16 %v643_v33 }
 0x328   :  { %2533 = vmatpush1.bf16.msra.mxu0 %v1636_v48  ;;  %2779 = vmatpush1.bf16.msra.mxu1 %v1638_v49  ;;  %v1732_v48 = vunpack.c.l.s8.bf16 %v640_v46  ;;  %v1734_v49 = vunpack.c.l.s8.bf16 %v642_v47 }
 0x329   :  { %2534 = vmatprep.subr.bf16.mxu0 %v1649_v51  ;;  %2780 = vmatprep.subr.bf16.mxu1 %v1651_v52  ;;  %v1745_v51 = vunpack.c.h.s8.bf16 %v641_v32  ;;  %v1747_v52 = vunpack.c.h.s8.bf16 %v643_v33  ;;  %v689_v32 = vld [vmem:[#allocation4 + $0x11c8] sm:$0xff]  ;;  %v691_v33 = vld [vmem:[#allocation4 + $0x11d8] sm:$0xff] }
 0x32c   :  { %2535 = vmatpush1.bf16.msra.mxu0 %v1648_v56  ;;  %2781 = vmatpush1.bf16.msra.mxu1 %v1650_v57  ;;  %v1744_v56 = vunpack.c.h.s8.bf16 %v640_v46  ;;  %v1746_v57 = vunpack.c.h.s8.bf16 %v642_v47  ;;  %v688_v46 = vld [vmem:[#allocation4 + $0x11c0] sm:$0xff]  ;;  %v690_v47 = vld [vmem:[#allocation4 + $0x11d0] sm:$0xff] }
 0x32d   :  { %2545 = vmatprep.subr.bf16.mxu0 %v1661_v58  ;;  %2791 = vmatprep.subr.bf16.mxu1 %v1663_v59  ;;  %v1757_v58 = vunpack.c.l.s8.bf16 %v653_v54  ;;  %v1759_v59 = vunpack.c.l.s8.bf16 %v655_v55 }
 0x32f   :  { %2537 = vmatmul.mubr.bf16.vlgmr.msra.gmra.mrb[4].mxu0 %v4312_v30  ;;  %2783 = vmatmul.mubr.bf16.vlgmr.msra.gmra.mrb[4].mxu1 %v4312_v30 }
 0x330   :  { %2546 = vmatpush1.bf16.msra.mxu0 %v1660_v63  ;;  %2792 = vmatpush1.bf16.msra.mxu1 %v1662_v0  ;;  %v1756_v63 = vunpack.c.l.s8.bf16 %v652_v60  ;;  %v1758_v0 = vunpack.c.l.s8.bf16 %v654_v62 }
 0x331   :  { %2547 = vmatprep.subr.bf16.mxu0 %v1673_v1  ;;  %2793 = vmatprep.subr.bf16.mxu1 %v1675_v2  ;;  %v1769_v1 = vunpack.c.h.s8.bf16 %v653_v54  ;;  %v1771_v2 = vunpack.c.h.s8.bf16 %v655_v55  ;;  %v129_v54 = vld [vmem:[#allocation4 + $0x48] sm:$0xff]  ;;  %v131_v55 = vld [vmem:[#allocation4 + $0x58] sm:$0xff] }
 0x332   :  { %2577 = vmatprep.mubr.bf16.mxu0 %v4314_v39  ;;  %2823 = vmatprep.mubr.bf16.mxu1 %v4314_v39 }
 0x334   :  { %2548 = vmatpush1.bf16.msra.mxu0 %v1672_v6  ;;  %2794 = vmatpush1.bf16.msra.mxu1 %v1674_v7  ;;  %v1768_v6 = vunpack.c.h.s8.bf16 %v652_v60  ;;  %v1770_v7 = vunpack.c.h.s8.bf16 %v654_v62  ;;  %v128_v60 = vld [vmem:[#allocation4 + $0x40] sm:$0xff]  ;;  %v130_v62 = vld [vmem:[#allocation4 + $0x50] sm:$0xff] }
 0x335   :  { %2549 = vmatprep.subr.bf16.mxu0 %v1685_v8  ;;  %2795 = vmatprep.subr.bf16.mxu1 %v1687_v9  ;;  %v1781_v8 = vunpack.c.l.s8.bf16 %v665_v3  ;;  %v1783_v9 = vunpack.c.l.s8.bf16 %v667_v4 }
 0x338   :  { %2550 = vmatpush1.bf16.msra.mxu0 %v1684_v12  ;;  %2796 = vmatpush1.bf16.msra.mxu1 %v1686_v13  ;;  %v1780_v12 = vunpack.c.l.s8.bf16 %v664_v10  ;;  %v1782_v13 = vunpack.c.l.s8.bf16 %v666_v11 }
 0x339   :  { %2551 = vmatprep.subr.bf16.mxu0 %v1697_v14  ;;  %2797 = vmatprep.subr.bf16.mxu1 %v1699_v15  ;;  %v1793_v14 = vunpack.c.h.s8.bf16 %v665_v3  ;;  %v1795_v15 = vunpack.c.h.s8.bf16 %v667_v4  ;;  %v141_v3 = vld [vmem:[#allocation4 + $0xa8] sm:$0xff]  ;;  %v143_v4 = vld [vmem:[#allocation4 + $0xb8] sm:$0xff] }
 0x33c   :  { %2552 = vmatpush1.bf16.msra.mxu0 %v1696_v19  ;;  %2798 = vmatpush1.bf16.msra.mxu1 %v1698_v20  ;;  %v1792_v19 = vunpack.c.h.s8.bf16 %v664_v10  ;;  %v1794_v20 = vunpack.c.h.s8.bf16 %v666_v11  ;;  %v140_v10 = vld [vmem:[#allocation4 + $0xa0] sm:$0xff]  ;;  %v142_v11 = vld [vmem:[#allocation4 + $0xb0] sm:$0xff] }
 0x33d   :  { %2553 = vmatprep.subr.bf16.mxu0 %v1709_v22  ;;  %2799 = vmatprep.subr.bf16.mxu1 %v1711_v23  ;;  %v1805_v22 = vunpack.c.l.s8.bf16 %v677_v16  ;;  %v1807_v23 = vunpack.c.l.s8.bf16 %v679_v18 }
 0x340   :  { %2554 = vmatpush1.bf16.msra.mxu0 %v1708_v27  ;;  %2800 = vmatpush1.bf16.msra.mxu1 %v1710_v28  ;;  %v1804_v27 = vunpack.c.l.s8.bf16 %v676_v24  ;;  %v1806_v28 = vunpack.c.l.s8.bf16 %v678_v26 }
 0x341   :  { %2555 = vmatprep.subr.bf16.mxu0 %v1721_v29  ;;  %2801 = vmatprep.subr.bf16.mxu1 %v1723_v31  ;;  %v1817_v29 = vunpack.c.h.s8.bf16 %v677_v16  ;;  %v1819_v31 = vunpack.c.h.s8.bf16 %v679_v18  ;;  %v153_v16 = vld [vmem:[#allocation4 + $0x108] sm:$0xff]  ;;  %v155_v18 = vld [vmem:[#allocation4 + $0x118] sm:$0xff] }
 0x344   :  { %2556 = vmatpush1.bf16.msra.mxu0 %v1720_v34  ;;  %2802 = vmatpush1.bf16.msra.mxu1 %v1722_v36  ;;  %v1816_v34 = vunpack.c.h.s8.bf16 %v676_v24  ;;  %v1818_v36 = vunpack.c.h.s8.bf16 %v678_v26  ;;  %v152_v24 = vld [vmem:[#allocation4 + $0x100] sm:$0xff] }
 0x345   :  { %2557 = vmatprep.subr.bf16.mxu0 %v1733_v43  ;;  %2803 = vmatprep.subr.bf16.mxu1 %v1735_v45  ;;  %v1829_v43 = vunpack.c.l.s8.bf16 %v689_v32  ;;  %v1831_v45 = vunpack.c.l.s8.bf16 %v691_v33  ;;  %v752_v26 = vunpack.c.l.s8.bf16 %v152_v24 }
 0x348   :  { %2558 = vmatpush1.bf16.msra.mxu0 %v1732_v48  ;;  %2804 = vmatpush1.bf16.msra.mxu1 %v1734_v49  ;;  %v1828_v48 = vunpack.c.l.s8.bf16 %v688_v46  ;;  %v1830_v49 = vunpack.c.l.s8.bf16 %v690_v47 }
 0x349   :  { %2559 = vmatprep.subr.bf16.mxu0 %v1745_v51  ;;  %2805 = vmatprep.subr.bf16.mxu1 %v1747_v52  ;;  %v1841_v51 = vunpack.c.h.s8.bf16 %v689_v32  ;;  %v1843_v52 = vunpack.c.h.s8.bf16 %v691_v33  ;;  %v167_v32 = vld [vmem:[#allocation4 + $0x178] sm:$0xff]  ;;  %v764_v33 = vunpack.c.h.s8.bf16 %v152_v24  ;;  %v202_v24 = vld [vmem:[#allocation4 + $0x290] sm:$0xff] }
 0x34c   :  { %2560 = vmatpush1.bf16.msra.mxu0 %v1744_v56  ;;  %2806 = vmatpush1.bf16.msra.mxu1 %v1746_v57  ;;  %v1840_v56 = vunpack.c.h.s8.bf16 %v688_v46  ;;  %v1842_v57 = vunpack.c.h.s8.bf16 %v690_v47  ;;  %v166_v46 = vld [vmem:[#allocation4 + $0x170] sm:$0xff] }
 0x34d   :  { %2561 = vmatprep.subr.bf16.mxu0 %v1757_v58  ;;  %2807 = vmatprep.subr.bf16.mxu1 %v1759_v59  ;;  %v705_v58 = vunpack.c.l.s8.bf16 %v129_v54  ;;  %v707_v59 = vunpack.c.l.s8.bf16 %v131_v55 }
 0x350   :  { %2562 = vmatpush1.bf16.msra.mxu0 %v1756_v63  ;;  %2808 = vmatpush1.bf16.msra.mxu1 %v1758_v0  ;;  %v704_v63 = vunpack.c.l.s8.bf16 %v128_v60  ;;  %v706_v0 = vunpack.c.l.s8.bf16 %v130_v62 }
 0x351   :  { %2563 = vmatprep.subr.bf16.mxu0 %v1769_v1  ;;  %2809 = vmatprep.subr.bf16.mxu1 %v1771_v2  ;;  %v717_v1 = vunpack.c.h.s8.bf16 %v129_v54  ;;  %v719_v2 = vunpack.c.h.s8.bf16 %v131_v55  ;;  %v179_v54 = vld [vmem:[#allocation4 + $0x1d8] sm:$0xff] }
 0x354   :  { %2564 = vmatpush1.bf16.msra.mxu0 %v1768_v6  ;;  %2810 = vmatpush1.bf16.msra.mxu1 %v1770_v7  ;;  %v716_v6 = vunpack.c.h.s8.bf16 %v128_v60  ;;  %v718_v7 = vunpack.c.h.s8.bf16 %v130_v62  ;;  %v178_v60 = vld [vmem:[#allocation4 + $0x1d0] sm:$0xff] }
 0x355   :  { %2565 = vmatprep.subr.bf16.mxu0 %v1781_v8  ;;  %2811 = vmatprep.subr.bf16.mxu1 %v1783_v9  ;;  %v729_v8 = vunpack.c.l.s8.bf16 %v141_v3  ;;  %v731_v9 = vunpack.c.l.s8.bf16 %v143_v4 }
 0x358   :  { %2566 = vmatpush1.bf16.msra.mxu0 %v1780_v12  ;;  %2812 = vmatpush1.bf16.msra.mxu1 %v1782_v13  ;;  %v728_v12 = vunpack.c.l.s8.bf16 %v140_v10  ;;  %v730_v13 = vunpack.c.l.s8.bf16 %v142_v11 }
 0x359   :  { %2567 = vmatprep.subr.bf16.mxu0 %v1793_v14  ;;  %2813 = vmatprep.subr.bf16.mxu1 %v1795_v15  ;;  %v741_v14 = vunpack.c.h.s8.bf16 %v141_v3  ;;  %v743_v15 = vunpack.c.h.s8.bf16 %v143_v4  ;;  %v191_v3 = vld [vmem:[#allocation4 + $0x238] sm:$0xff] }
 0x35c   :  { %2568 = vmatpush1.bf16.msra.mxu0 %v1792_v19  ;;  %2814 = vmatpush1.bf16.msra.mxu1 %v1794_v20  ;;  %v740_v19 = vunpack.c.h.s8.bf16 %v140_v10  ;;  %v742_v20 = vunpack.c.h.s8.bf16 %v142_v11  ;;  %v190_v10 = vld [vmem:[#allocation4 + $0x230] sm:$0xff] }
 0x35d   :  { %2569 = vmatprep.subr.bf16.mxu0 %v1805_v22  ;;  %2815 = vmatprep.subr.bf16.mxu1 %v1807_v23  ;;  %v753_v22 = vunpack.c.l.s8.bf16 %v153_v16  ;;  %v755_v23 = vunpack.c.l.s8.bf16 %v155_v18 }
 0x360   :  { %2570 = vmatpush1.bf16.msra.mxu0 %v1804_v27  ;;  %2816 = vmatpush1.bf16.msra.mxu1 %v1806_v28  ;;  %v765_v28 = vunpack.c.h.s8.bf16 %v153_v16  ;;  %v203_v16 = vld [vmem:[#allocation4 + $0x298] sm:$0xff] }
 0x361   :  { %2571 = vmatprep.subr.bf16.mxu0 %v1817_v29  ;;  %2817 = vmatprep.subr.bf16.mxu1 %v1819_v31  ;;  %v767_v29 = vunpack.c.h.s8.bf16 %v155_v18  ;;  %v165_v31 = vld [vmem:[#allocation4 + $0x168] sm:$0xff] }
 0x364   :  { %2572 = vmatpush1.bf16.msra.mxu0 %v1816_v34  ;;  %2818 = vmatpush1.bf16.msra.mxu1 %v1818_v36  ;;  %v777_v36 = vunpack.c.l.s8.bf16 %v165_v31 }
 0x365   :  { %2573 = vmatprep.subr.bf16.mxu0 %v1829_v43  ;;  %2819 = vmatprep.subr.bf16.mxu1 %v1831_v45  ;;  %v779_v43 = vunpack.c.l.s8.bf16 %v167_v32  ;;  %v164_v45 = vld [vmem:[#allocation4 + $0x160] sm:$0xff] }
 0x366   :  { %v776_v47 = vunpack.c.l.s8.bf16 %v164_v45  ;;  %v788_v55 = vunpack.c.h.s8.bf16 %v164_v45  ;;  %v214_v45 = vld [vmem:[#allocation4 + $0x2f0] sm:$0xff] }
 0x368   :  { %2574 = vmatpush1.bf16.msra.mxu0 %v1828_v48  ;;  %2820 = vmatpush1.bf16.msra.mxu1 %v1830_v49  ;;  %v778_v48 = vunpack.c.l.s8.bf16 %v166_v46  ;;  %v789_v49 = vunpack.c.h.s8.bf16 %v165_v31  ;;  %v215_v31 = vld [vmem:[#allocation4 + $0x2f8] sm:$0xff] }
 0x369   :  { %2575 = vmatprep.subr.bf16.mxu0 %v1841_v51  ;;  %2821 = vmatprep.subr.bf16.mxu1 %v1843_v52  ;;  %v791_v51 = vunpack.c.h.s8.bf16 %v167_v32  ;;  %v177_v52 = vld [vmem:[#allocation4 + $0x1c8] sm:$0xff] }
 0x36c   :  { %2576 = vmatpush1.bf16.msra.mxu0 %v1840_v56  ;;  %2822 = vmatpush1.bf16.msra.mxu1 %v1842_v57  ;;  %v790_v56 = vunpack.c.h.s8.bf16 %v166_v46  ;;  %v801_v57 = vunpack.c.l.s8.bf16 %v177_v52 }
 0x36d   :  { %2832 = vmatprep.subr.bf16.mxu0 %v705_v58  ;;  %3078 = vmatprep.subr.bf16.mxu1 %v707_v59  ;;  %v803_v58 = vunpack.c.l.s8.bf16 %v179_v54  ;;  %v176_v59 = vld [vmem:[#allocation4 + $0x1c0] sm:$0xff] }
 0x36e   :  { %v800_v62 = vunpack.c.l.s8.bf16 %v176_v59  ;;  %v812_v4 = vunpack.c.h.s8.bf16 %v176_v59  ;;  %v226_v59 = vld [vmem:[#allocation4 + $0x350] sm:$0xff] }
 0x36f   :  { %2578 = vmatmul.mubr.bf16.vlgmr.msra.gmra.mrb[4].mxu0 %v4320_v21  ;;  %2824 = vmatmul.mubr.bf16.vlgmr.msra.gmra.mrb[4].mxu1 %v4320_v21 }
 0x370   :  { %2833 = vmatpush1.bf16.msra.mxu0 %v704_v63  ;;  %3079 = vmatpush1.bf16.msra.mxu1 %v706_v0  ;;  %v802_v63 = vunpack.c.l.s8.bf16 %v178_v60  ;;  %v813_v0 = vunpack.c.h.s8.bf16 %v177_v52  ;;  %v227_v52 = vld [vmem:[#allocation4 + $0x358] sm:$0xff] }
 0x371   :  { %2834 = vmatprep.subr.bf16.mxu0 %v717_v1  ;;  %3080 = vmatprep.subr.bf16.mxu1 %v719_v2  ;;  %v815_v1 = vunpack.c.h.s8.bf16 %v179_v54  ;;  %v189_v2 = vld [vmem:[#allocation4 + $0x228] sm:$0xff] }
 0x372   :  { %2864 = vmatprep.mubr.bf16.mxu0 %v4276_v35  ;;  %3110 = vmatprep.mubr.bf16.mxu1 %v4276_v35  ;;  %v154_v35 = vld [vmem:[#allocation4 + $0x110] sm:$0xff] }
 0x373   :  { %v754_v27 = vunpack.c.l.s8.bf16 %v154_v35  ;;  %v766_v34 = vunpack.c.h.s8.bf16 %v154_v35 }
 0x374   :  { %2835 = vmatpush1.bf16.msra.mxu0 %v716_v6  ;;  %3081 = vmatpush1.bf16.msra.mxu1 %v718_v7  ;;  %v814_v6 = vunpack.c.h.s8.bf16 %v178_v60  ;;  %v825_v7 = vunpack.c.l.s8.bf16 %v189_v2 }
 0x375   :  { %2836 = vmatprep.subr.bf16.mxu0 %v729_v8  ;;  %3082 = vmatprep.subr.bf16.mxu1 %v731_v9  ;;  %v827_v8 = vunpack.c.l.s8.bf16 %v191_v3  ;;  %v188_v9 = vld [vmem:[#allocation4 + $0x220] sm:$0xff] }
 0x376   :  { %v824_v11 = vunpack.c.l.s8.bf16 %v188_v9  ;;  %v836_v18 = vunpack.c.h.s8.bf16 %v188_v9  ;;  %v238_v9 = vld [vmem:[#allocation4 + $0x3b0] sm:$0xff] }
 0x378   :  { %2837 = vmatpush1.bf16.msra.mxu0 %v728_v12  ;;  %3083 = vmatpush1.bf16.msra.mxu1 %v730_v13  ;;  %v826_v12 = vunpack.c.l.s8.bf16 %v190_v10  ;;  %v837_v13 = vunpack.c.h.s8.bf16 %v189_v2  ;;  %v239_v2 = vld [vmem:[#allocation4 + $0x3b8] sm:$0xff] }
 0x379   :  { %2838 = vmatprep.subr.bf16.mxu0 %v741_v14  ;;  %3084 = vmatprep.subr.bf16.mxu1 %v743_v15  ;;  %v839_v14 = vunpack.c.h.s8.bf16 %v191_v3  ;;  %v201_v15 = vld [vmem:[#allocation4 + $0x288] sm:$0xff] }
 0x37c   :  { %2839 = vmatpush1.bf16.msra.mxu0 %v740_v19  ;;  %3085 = vmatpush1.bf16.msra.mxu1 %v742_v20  ;;  %v838_v19 = vunpack.c.h.s8.bf16 %v190_v10  ;;  %v849_v20 = vunpack.c.l.s8.bf16 %v201_v15 }
 0x37d   :  { %2840 = vmatprep.subr.bf16.mxu0 %v753_v22  ;;  %3086 = vmatprep.subr.bf16.mxu1 %v755_v23  ;;  %v851_v22 = vunpack.c.l.s8.bf16 %v203_v16  ;;  %v200_v23 = vld [vmem:[#allocation4 + $0x280] sm:$0xff] }
 0x37e   :  { %v848_v35 = vunpack.c.l.s8.bf16 %v200_v23  ;;  %v860_v32 = vunpack.c.h.s8.bf16 %v200_v23 }
 0x380   :  { %2841 = vmatpush1.bf16.msra.mxu0 %v752_v26  ;;  %3087 = vmatpush1.bf16.msra.mxu1 %v754_v27  ;;  %v850_v26 = vunpack.c.l.s8.bf16 %v202_v24  ;;  %v861_v27 = vunpack.c.h.s8.bf16 %v201_v15 }
 0x381   :  { %2842 = vmatprep.subr.bf16.mxu0 %v765_v28  ;;  %3088 = vmatprep.subr.bf16.mxu1 %v767_v29  ;;  %v863_v28 = vunpack.c.h.s8.bf16 %v203_v16  ;;  %v213_v29 = vld [vmem:[#allocation4 + $0x2e8] sm:$0xff]  ;;  %v934_v16 = vunpack.c.h.s8.bf16 %v238_v9 }
 0x384   :  { %2843 = vmatpush1.bf16.msra.mxu0 %v764_v33  ;;  %3089 = vmatpush1.bf16.msra.mxu1 %v766_v34  ;;  %v862_v33 = vunpack.c.h.s8.bf16 %v202_v24  ;;  %v873_v34 = vunpack.c.l.s8.bf16 %v213_v29 }
 0x385   :  { %2844 = vmatprep.subr.bf16.mxu0 %v777_v36  ;;  %3090 = vmatprep.subr.bf16.mxu1 %v779_v43  ;;  %v875_v36 = vunpack.c.l.s8.bf16 %v215_v31  ;;  %v212_v43 = vld [vmem:[#allocation4 + $0x2e0] sm:$0xff] }
 0x386   :  { %v872_v46 = vunpack.c.l.s8.bf16 %v212_v43  ;;  %v884_v54 = vunpack.c.h.s8.bf16 %v212_v43 }
 0x388   :  { %2845 = vmatpush1.bf16.msra.mxu0 %v776_v47  ;;  %3091 = vmatpush1.bf16.msra.mxu1 %v778_v48  ;;  %v874_v47 = vunpack.c.l.s8.bf16 %v214_v45  ;;  %v885_v48 = vunpack.c.h.s8.bf16 %v213_v29 }
 0x389   :  { %2846 = vmatprep.subr.bf16.mxu0 %v789_v49  ;;  %3092 = vmatprep.subr.bf16.mxu1 %v791_v51  ;;  %v887_v49 = vunpack.c.h.s8.bf16 %v215_v31  ;;  %v225_v51 = vld [vmem:[#allocation4 + $0x348] sm:$0xff] }
 0x38c   :  { %2847 = vmatpush1.bf16.msra.mxu0 %v788_v55  ;;  %3093 = vmatpush1.bf16.msra.mxu1 %v790_v56  ;;  %v886_v55 = vunpack.c.h.s8.bf16 %v214_v45  ;;  %v897_v56 = vunpack.c.l.s8.bf16 %v225_v51 }
 0x38d   :  { %2848 = vmatprep.subr.bf16.mxu0 %v801_v57  ;;  %3094 = vmatprep.subr.bf16.mxu1 %v803_v58  ;;  %v899_v57 = vunpack.c.l.s8.bf16 %v227_v52  ;;  %v224_v58 = vld [vmem:[#allocation4 + $0x340] sm:$0xff] }
 0x38e   :  { %v896_v60 = vunpack.c.l.s8.bf16 %v224_v58  ;;  %v908_v3 = vunpack.c.h.s8.bf16 %v224_v58 }
 0x390   :  { %2849 = vmatpush1.bf16.msra.mxu0 %v800_v62  ;;  %3095 = vmatpush1.bf16.msra.mxu1 %v802_v63  ;;  %v898_v62 = vunpack.c.l.s8.bf16 %v226_v59  ;;  %v909_v63 = vunpack.c.h.s8.bf16 %v225_v51 }
 0x391   :  { %2850 = vmatprep.subr.bf16.mxu0 %v813_v0  ;;  %3096 = vmatprep.subr.bf16.mxu1 %v815_v1  ;;  %v911_v0 = vunpack.c.h.s8.bf16 %v227_v52  ;;  %v237_v1 = vld [vmem:[#allocation4 + $0x3a8] sm:$0xff] }
 0x394   :  { %2851 = vmatpush1.bf16.msra.mxu0 %v812_v4  ;;  %3097 = vmatpush1.bf16.msra.mxu1 %v814_v6  ;;  %v910_v4 = vunpack.c.h.s8.bf16 %v226_v59  ;;  %v921_v6 = vunpack.c.l.s8.bf16 %v237_v1 }
 0x395   :  { %2852 = vmatprep.subr.bf16.mxu0 %v825_v7  ;;  %3098 = vmatprep.subr.bf16.mxu1 %v827_v8  ;;  %v923_v7 = vunpack.c.l.s8.bf16 %v239_v2  ;;  %v236_v8 = vld [vmem:[#allocation4 + $0x3a0] sm:$0xff] }
 0x396   :  { %v920_v10 = vunpack.c.l.s8.bf16 %v236_v8  ;;  %v932_v15 = vunpack.c.h.s8.bf16 %v236_v8 }
 0x398   :  { %2853 = vmatpush1.bf16.msra.mxu0 %v824_v11  ;;  %3099 = vmatpush1.bf16.msra.mxu1 %v826_v12  ;;  %v922_v11 = vunpack.c.l.s8.bf16 %v238_v9  ;;  %v935_v12 = vunpack.c.h.s8.bf16 %v239_v2 }
 0x399   :  { %2854 = vmatprep.subr.bf16.mxu0 %v837_v13  ;;  %3100 = vmatprep.subr.bf16.mxu1 %v839_v14  ;;  %v249_v13 = vld [vmem:[#allocation4 + $0x408] sm:$0xff]  ;;  %v251_v14 = vld [vmem:[#allocation4 + $0x418] sm:$0xff] }
 0x39a   :  { %v957_v24 = vunpack.c.h.s8.bf16 %v249_v13 }
 0x39c   :  { %2855 = vmatpush1.bf16.msra.mxu0 %v836_v18  ;;  %3101 = vmatpush1.bf16.msra.mxu1 %v838_v19  ;;  %v945_v18 = vunpack.c.l.s8.bf16 %v249_v13  ;;  %v947_v19 = vunpack.c.l.s8.bf16 %v251_v14 }
 0x39d   :  { %2856 = vmatprep.subr.bf16.mxu0 %v849_v20  ;;  %3102 = vmatprep.subr.bf16.mxu1 %v851_v22  ;;  %v248_v20 = vld [vmem:[#allocation4 + $0x400] sm:$0xff] }
 0x39e   :  { %v944_v22 = vunpack.c.l.s8.bf16 %v248_v20 }
 0x3a0   :  { %2857 = vmatpush1.bf16.msra.mxu0 %v848_v35  ;;  %3103 = vmatpush1.bf16.msra.mxu1 %v850_v26  ;;  %v959_v35 = vunpack.c.h.s8.bf16 %v251_v14  ;;  %v261_v26 = vld [vmem:[#allocation4 + $0x468] sm:$0xff] }
 0x3a1   :  { %2858 = vmatprep.subr.bf16.mxu0 %v861_v27  ;;  %3104 = vmatprep.subr.bf16.mxu1 %v863_v28  ;;  %v263_v27 = vld [vmem:[#allocation4 + $0x478] sm:$0xff]  ;;  %v956_v28 = vunpack.c.h.s8.bf16 %v248_v20  ;;  %v969_v31 = vunpack.c.l.s8.bf16 %v261_v26  ;;  %v981_v45 = vunpack.c.h.s8.bf16 %v261_v26 }
 0x3a4   :  { %2859 = vmatpush1.bf16.msra.mxu0 %v860_v32  ;;  %3105 = vmatpush1.bf16.msra.mxu1 %v862_v33  ;;  %v971_v32 = vunpack.c.l.s8.bf16 %v263_v27  ;;  %v260_v33 = vld [vmem:[#allocation4 + $0x460] sm:$0xff] }
 0x3a5   :  { %2860 = vmatprep.subr.bf16.mxu0 %v873_v34  ;;  %3106 = vmatprep.subr.bf16.mxu1 %v875_v36  ;;  %v262_v34 = vld [vmem:[#allocation4 + $0x470] sm:$0xff]  ;;  %v968_v36 = vunpack.c.l.s8.bf16 %v260_v33 }
 0x3a6   :  { %v970_v43 = vunpack.c.l.s8.bf16 %v262_v34  ;;  %v982_v51 = vunpack.c.h.s8.bf16 %v262_v34 }
 0x3a8   :  { %2861 = vmatpush1.bf16.msra.mxu0 %v872_v46  ;;  %3107 = vmatpush1.bf16.msra.mxu1 %v874_v47  ;;  %v983_v46 = vunpack.c.h.s8.bf16 %v263_v27  ;;  %v273_v47 = vld [vmem:[#allocation4 + $0x4c8] sm:$0xff] }
 0x3a9   :  { %2862 = vmatprep.subr.bf16.mxu0 %v885_v48  ;;  %3108 = vmatprep.subr.bf16.mxu1 %v887_v49  ;;  %v275_v48 = vld [vmem:[#allocation4 + $0x4d8] sm:$0xff]  ;;  %v980_v49 = vunpack.c.h.s8.bf16 %v260_v33  ;;  %v993_v52 = vunpack.c.l.s8.bf16 %v273_v47  ;;  %v1005_v59 = vunpack.c.h.s8.bf16 %v273_v47 }
 0x3ac   :  { %2863 = vmatpush1.bf16.msra.mxu0 %v884_v54  ;;  %3109 = vmatpush1.bf16.msra.mxu1 %v886_v55  ;;  %v995_v54 = vunpack.c.l.s8.bf16 %v275_v48  ;;  %v272_v55 = vld [vmem:[#allocation4 + $0x4c0] sm:$0xff] }
 0x3ad   :  { %2873 = vmatprep.subr.bf16.mxu0 %v897_v56  ;;  %3119 = vmatprep.subr.bf16.mxu1 %v899_v57  ;;  %v274_v56 = vld [vmem:[#allocation4 + $0x4d0] sm:$0xff]  ;;  %v992_v57 = vunpack.c.l.s8.bf16 %v272_v55 }
 0x3ae   :  { %v994_v58 = vunpack.c.l.s8.bf16 %v274_v56 }
 0x3af   :  { %2865 = vmatmul.mubr.bf16.vlgmr.msra.gmra.mrb[8].mxu0 %v4280_v42  ;;  %3111 = vmatmul.mubr.bf16.vlgmr.msra.gmra.mrb[8].mxu1 %v4280_v42  ;;  %v933_v42 = vunpack.c.h.s8.bf16 %v237_v1  ;;  %v1006_v1 = vunpack.c.h.s8.bf16 %v274_v56 }
 0x3b0   :  { %2874 = vmatpush1.bf16.msra.mxu0 %v896_v60  ;;  %3120 = vmatpush1.bf16.msra.mxu1 %v898_v62  ;;  %v1007_v60 = vunpack.c.h.s8.bf16 %v275_v48  ;;  %v285_v62 = vld [vmem:[#allocation4 + $0x528] sm:$0xff] }
 0x3b1   :  { %2875 = vmatprep.subr.bf16.mxu0 %v909_v63  ;;  %3121 = vmatprep.subr.bf16.mxu1 %v911_v0  ;;  %v287_v63 = vld [vmem:[#allocation4 + $0x538] sm:$0xff]  ;;  %v1004_v0 = vunpack.c.h.s8.bf16 %v272_v55  ;;  %v1017_v2 = vunpack.c.l.s8.bf16 %v285_v62  ;;  %v1029_v9 = vunpack.c.h.s8.bf16 %v285_v62 }
 0x3b2   :  { %2905 = vmatprep.mubr.bf16.mxu0 %v4282_v50  ;;  %3151 = vmatprep.mubr.bf16.mxu1 %v4282_v50  ;;  %v250_v50 = vld [vmem:[#allocation4 + $0x410] sm:$0xff] }
 0x3b3   :  { %v946_v23 = vunpack.c.l.s8.bf16 %v250_v50  ;;  %v958_v29 = vunpack.c.h.s8.bf16 %v250_v50 }
 0x3b4   :  { %2876 = vmatpush1.bf16.msra.mxu0 %v908_v3  ;;  %3122 = vmatpush1.bf16.msra.mxu1 %v910_v4  ;;  %v1019_v3 = vunpack.c.l.s8.bf16 %v287_v63  ;;  %v284_v4 = vld [vmem:[#allocation4 + $0x520] sm:$0xff] }
 0x3b5   :  { %2877 = vmatprep.subr.bf16.mxu0 %v921_v6  ;;  %3123 = vmatprep.subr.bf16.mxu1 %v923_v7  ;;  %v286_v6 = vld [vmem:[#allocation4 + $0x530] sm:$0xff]  ;;  %v1016_v7 = vunpack.c.l.s8.bf16 %v284_v4 }
 0x3b6   :  { %v1018_v8 = vunpack.c.l.s8.bf16 %v286_v6  ;;  %v1030_v13 = vunpack.c.h.s8.bf16 %v286_v6 }
 0x3b8   :  { %2878 = vmatpush1.bf16.msra.mxu0 %v920_v10  ;;  %3124 = vmatpush1.bf16.msra.mxu1 %v922_v11  ;;  %v1031_v10 = vunpack.c.h.s8.bf16 %v287_v63  ;;  %v297_v11 = vld [vmem:[#allocation4 + $0x588] sm:$0xff] }
 0x3b9   :  { %2879 = vmatprep.subr.bf16.mxu0 %v933_v42  ;;  %3125 = vmatprep.subr.bf16.mxu1 %v935_v12  ;;  %v299_v42 = vld [vmem:[#allocation4 + $0x598] sm:$0xff]  ;;  %v1028_v12 = vunpack.c.h.s8.bf16 %v284_v4  ;;  %v1041_v14 = vunpack.c.l.s8.bf16 %v297_v11  ;;  %v1053_v50 = vunpack.c.h.s8.bf16 %v297_v11 }
 0x3bc   :  { %2880 = vmatpush1.bf16.msra.mxu0 %v932_v15  ;;  %3126 = vmatpush1.bf16.msra.mxu1 %v934_v16  ;;  %v1043_v15 = vunpack.c.l.s8.bf16 %v299_v42  ;;  %v296_v16 = vld [vmem:[#allocation4 + $0x580] sm:$0xff] }
 0x3bd   :  { %2881 = vmatprep.subr.bf16.mxu0 %v945_v18  ;;  %3127 = vmatprep.subr.bf16.mxu1 %v947_v19  ;;  %v298_v18 = vld [vmem:[#allocation4 + $0x590] sm:$0xff]  ;;  %v1040_v19 = vunpack.c.l.s8.bf16 %v296_v16 }
 0x3be   :  { %v1042_v20 = vunpack.c.l.s8.bf16 %v298_v18  ;;  %v1054_v26 = vunpack.c.h.s8.bf16 %v298_v18  ;;  %v357_v18 = vld [vmem:[#allocation4 + $0x768] sm:$0xff] }
 0x3c0   :  { %2882 = vmatpush1.bf16.msra.mxu0 %v944_v22  ;;  %3128 = vmatpush1.bf16.msra.mxu1 %v946_v23  ;;  %v1055_v22 = vunpack.c.h.s8.bf16 %v299_v42  ;;  %v309_v23 = vld [vmem:[#allocation4 + $0x5e8] sm:$0xff] }
 0x3c1   :  { %2883 = vmatprep.subr.bf16.mxu0 %v957_v24  ;;  %3129 = vmatprep.subr.bf16.mxu1 %v959_v35  ;;  %v311_v24 = vld [vmem:[#allocation4 + $0x5f8] sm:$0xff]  ;;  %v1052_v35 = vunpack.c.h.s8.bf16 %v296_v16  ;;  %v1065_v27 = vunpack.c.l.s8.bf16 %v309_v23  ;;  %v1077_v34 = vunpack.c.h.s8.bf16 %v309_v23 }
 0x3c4   :  { %2884 = vmatpush1.bf16.msra.mxu0 %v956_v28  ;;  %3130 = vmatpush1.bf16.msra.mxu1 %v958_v29  ;;  %v1067_v28 = vunpack.c.l.s8.bf16 %v311_v24  ;;  %v308_v29 = vld [vmem:[#allocation4 + $0x5e0] sm:$0xff] }
 0x3c5   :  { %2885 = vmatprep.subr.bf16.mxu0 %v969_v31  ;;  %3131 = vmatprep.subr.bf16.mxu1 %v971_v32  ;;  %v310_v31 = vld [vmem:[#allocation4 + $0x5f0] sm:$0xff]  ;;  %v1064_v32 = vunpack.c.l.s8.bf16 %v308_v29 }
 0x3c6   :  { %v1066_v33 = vunpack.c.l.s8.bf16 %v310_v31  ;;  %v1078_v47 = vunpack.c.h.s8.bf16 %v310_v31  ;;  %v369_v31 = vld [vmem:[#allocation4 + $0x7c8] sm:$0xff] }
 0x3c8   :  { %2886 = vmatpush1.bf16.msra.mxu0 %v968_v36  ;;  %3132 = vmatpush1.bf16.msra.mxu1 %v970_v43  ;;  %v1079_v36 = vunpack.c.h.s8.bf16 %v311_v24  ;;  %v321_v43 = vld [vmem:[#allocation4 + $0x648] sm:$0xff]  ;;  %v356_v24 = vld [vmem:[#allocation4 + $0x760] sm:$0xff] }
 0x3c9   :  { %2887 = vmatprep.subr.bf16.mxu0 %v981_v45  ;;  %3133 = vmatprep.subr.bf16.mxu1 %v983_v46  ;;  %v323_v45 = vld [vmem:[#allocation4 + $0x658] sm:$0xff]  ;;  %v1076_v46 = vunpack.c.h.s8.bf16 %v308_v29  ;;  %v1089_v48 = vunpack.c.l.s8.bf16 %v321_v43  ;;  %v1101_v56 = vunpack.c.h.s8.bf16 %v321_v43 }
 0x3cc   :  { %2888 = vmatpush1.bf16.msra.mxu0 %v980_v49  ;;  %3134 = vmatpush1.bf16.msra.mxu1 %v982_v51  ;;  %v1091_v49 = vunpack.c.l.s8.bf16 %v323_v45  ;;  %v320_v51 = vld [vmem:[#allocation4 + $0x640] sm:$0xff] }
 0x3cd   :  { %2889 = vmatprep.subr.bf16.mxu0 %v993_v52  ;;  %3135 = vmatprep.subr.bf16.mxu1 %v995_v54  ;;  %v322_v52 = vld [vmem:[#allocation4 + $0x650] sm:$0xff]  ;;  %v1088_v54 = vunpack.c.l.s8.bf16 %v320_v51 }
 0x3ce   :  { %v1090_v55 = vunpack.c.l.s8.bf16 %v322_v52  ;;  %v1102_v62 = vunpack.c.h.s8.bf16 %v322_v52  ;;  %v381_v52 = vld [vmem:[#allocation4 + $0x828] sm:$0xff] }
 0x3d0   :  { %2890 = vmatpush1.bf16.msra.mxu0 %v992_v57  ;;  %3136 = vmatpush1.bf16.msra.mxu1 %v994_v58  ;;  %v1103_v57 = vunpack.c.h.s8.bf16 %v323_v45  ;;  %v333_v58 = vld [vmem:[#allocation4 + $0x6a8] sm:$0xff]  ;;  %v368_v45 = vld [vmem:[#allocation4 + $0x7c0] sm:$0xff] }
 0x3d1   :  { %2891 = vmatprep.subr.bf16.mxu0 %v1005_v59  ;;  %3137 = vmatprep.subr.bf16.mxu1 %v1007_v60  ;;  %v335_v59 = vld [vmem:[#allocation4 + $0x6b8] sm:$0xff]  ;;  %v1100_v60 = vunpack.c.h.s8.bf16 %v320_v51  ;;  %v1113_v63 = vunpack.c.l.s8.bf16 %v333_v58 }
 0x3d2   :  { %v1127_v6 = vunpack.c.h.s8.bf16 %v335_v59 }
 0x3d4   :  { %2892 = vmatpush1.bf16.msra.mxu0 %v1004_v0  ;;  %3138 = vmatpush1.bf16.msra.mxu1 %v1006_v1  ;;  %v1115_v0 = vunpack.c.l.s8.bf16 %v335_v59  ;;  %v332_v1 = vld [vmem:[#allocation4 + $0x6a0] sm:$0xff] }
 0x3d5   :  { %2893 = vmatprep.subr.bf16.mxu0 %v1017_v2  ;;  %3139 = vmatprep.subr.bf16.mxu1 %v1019_v3  ;;  %v334_v2 = vld [vmem:[#allocation4 + $0x6b0] sm:$0xff]  ;;  %v1112_v3 = vunpack.c.l.s8.bf16 %v332_v1  ;;  %v380_v59 = vld [vmem:[#allocation4 + $0x820] sm:$0xff] }
 0x3d6   :  { %v1114_v4 = vunpack.c.l.s8.bf16 %v334_v2 }
 0x3d8   :  { %2894 = vmatpush1.bf16.msra.mxu0 %v1016_v7  ;;  %3140 = vmatpush1.bf16.msra.mxu1 %v1018_v8  ;;  %v345_v7 = vld [vmem:[#allocation4 + $0x708] sm:$0xff]  ;;  %v347_v8 = vld [vmem:[#allocation4 + $0x718] sm:$0xff] }
 0x3d9   :  { %2895 = vmatprep.subr.bf16.mxu0 %v1029_v9  ;;  %3141 = vmatprep.subr.bf16.mxu1 %v1031_v10  ;;  %v1124_v9 = vunpack.c.h.s8.bf16 %v332_v1  ;;  %v1126_v10 = vunpack.c.h.s8.bf16 %v334_v2  ;;  %v1137_v11 = vunpack.c.l.s8.bf16 %v345_v7  ;;  %v1139_v42 = vunpack.c.l.s8.bf16 %v347_v8  ;;  %v393_v2 = vld [vmem:[#allocation4 + $0x888] sm:$0xff] }
 0x3da   :  { %v1151_v16 = vunpack.c.h.s8.bf16 %v347_v8  ;;  %v392_v8 = vld [vmem:[#allocation4 + $0x880] sm:$0xff] }
 0x3dc   :  { %2896 = vmatpush1.bf16.msra.mxu0 %v1028_v12  ;;  %3142 = vmatpush1.bf16.msra.mxu1 %v1030_v13  ;;  %v344_v12 = vld [vmem:[#allocation4 + $0x700] sm:$0xff] }
 0x3dd   :  { %2897 = vmatprep.subr.bf16.mxu0 %v1041_v14  ;;  %3143 = vmatprep.subr.bf16.mxu1 %v1043_v15  ;;  %v1136_v13 = vunpack.c.l.s8.bf16 %v344_v12  ;;  %v1149_v15 = vunpack.c.h.s8.bf16 %v345_v7 }
 0x3e0   :  { %2898 = vmatpush1.bf16.msra.mxu0 %v1040_v19  ;;  %3144 = vmatpush1.bf16.msra.mxu1 %v1042_v20  ;;  %v359_v19 = vld [vmem:[#allocation4 + $0x778] sm:$0xff]  ;;  %v1148_v20 = vunpack.c.h.s8.bf16 %v344_v12 }
 0x3e1   :  { %2899 = vmatprep.subr.bf16.mxu0 %v1053_v50  ;;  %3145 = vmatprep.subr.bf16.mxu1 %v1055_v22  ;;  %v1161_v22 = vunpack.c.l.s8.bf16 %v357_v18  ;;  %v1163_v23 = vunpack.c.l.s8.bf16 %v359_v19  ;;  %v1175_v29 = vunpack.c.h.s8.bf16 %v359_v19  ;;  %v404_v19 = vld [vmem:[#allocation4 + $0x8e0] sm:$0xff] }
 0x3e4   :  { %2900 = vmatpush1.bf16.msra.mxu0 %v1052_v35  ;;  %3146 = vmatpush1.bf16.msra.mxu1 %v1054_v26  ;;  %v358_v35 = vld [vmem:[#allocation4 + $0x770] sm:$0xff]  ;;  %v1160_v26 = vunpack.c.l.s8.bf16 %v356_v24 }
 0x3e5   :  { %2901 = vmatprep.subr.bf16.mxu0 %v1065_v27  ;;  %3147 = vmatprep.subr.bf16.mxu1 %v1067_v28  ;;  %v1162_v27 = vunpack.c.l.s8.bf16 %v358_v35  ;;  %v1173_v28 = vunpack.c.h.s8.bf16 %v357_v18 }
 0x3e8   :  { %2902 = vmatpush1.bf16.msra.mxu0 %v1064_v32  ;;  %3148 = vmatpush1.bf16.msra.mxu1 %v1066_v33  ;;  %v371_v32 = vld [vmem:[#allocation4 + $0x7d8] sm:$0xff]  ;;  %v1172_v33 = vunpack.c.h.s8.bf16 %v356_v24 }
 0x3e9   :  { %2903 = vmatprep.subr.bf16.mxu0 %v1077_v34  ;;  %3149 = vmatprep.subr.bf16.mxu1 %v1079_v36  ;;  %v1174_v34 = vunpack.c.h.s8.bf16 %v358_v35  ;;  %v1185_v36 = vunpack.c.l.s8.bf16 %v369_v31  ;;  %v1187_v43 = vunpack.c.l.s8.bf16 %v371_v32  ;;  %v1199_v51 = vunpack.c.h.s8.bf16 %v371_v32  ;;  %v417_v35 = vld [vmem:[#allocation4 + $0x948] sm:$0xff]  ;;  %v416_v32 = vld [vmem:[#allocation4 + $0x940] sm:$0xff] }
 0x3ec   :  { %2904 = vmatpush1.bf16.msra.mxu0 %v1076_v46  ;;  %3150 = vmatpush1.bf16.msra.mxu1 %v1078_v47  ;;  %v370_v46 = vld [vmem:[#allocation4 + $0x7d0] sm:$0xff]  ;;  %v1184_v47 = vunpack.c.l.s8.bf16 %v368_v45 }
 0x3ed   :  { %2914 = vmatprep.subr.bf16.mxu0 %v1089_v48  ;;  %3160 = vmatprep.subr.bf16.mxu1 %v1091_v49  ;;  %v1186_v48 = vunpack.c.l.s8.bf16 %v370_v46  ;;  %v1197_v49 = vunpack.c.h.s8.bf16 %v369_v31 }
 0x3ef   :  { %2906 = vmatmul.mubr.bf16.vlgmr.msra.gmra.mrb[8].mxu0 %v4288_v17  ;;  %3152 = vmatmul.mubr.bf16.vlgmr.msra.gmra.mrb[8].mxu1 %v4288_v17  ;;  %v1125_v17 = vunpack.c.h.s8.bf16 %v333_v58 }
 0x3f0   :  { %2915 = vmatpush1.bf16.msra.mxu0 %v1088_v54  ;;  %3161 = vmatpush1.bf16.msra.mxu1 %v1090_v55  ;;  %v383_v54 = vld [vmem:[#allocation4 + $0x838] sm:$0xff]  ;;  %v1196_v55 = vunpack.c.h.s8.bf16 %v368_v45 }
 0x3f1   :  { %2916 = vmatprep.subr.bf16.mxu0 %v1101_v56  ;;  %3162 = vmatprep.subr.bf16.mxu1 %v1103_v57  ;;  %v1198_v56 = vunpack.c.h.s8.bf16 %v370_v46  ;;  %v1209_v57 = vunpack.c.l.s8.bf16 %v381_v52  ;;  %v1211_v58 = vunpack.c.l.s8.bf16 %v383_v54  ;;  %v1223_v1 = vunpack.c.h.s8.bf16 %v383_v54  ;;  %v429_v46 = vld [vmem:[#allocation4 + $0x9a8] sm:$0xff]  ;;  %v428_v54 = vld [vmem:[#allocation4 + $0x9a0] sm:$0xff] }
 0x3f2   :  { %2946 = vmatprep.mubr.bf16.mxu0 %v4290_v25  ;;  %3192 = vmatprep.mubr.bf16.mxu1 %v4290_v25  ;;  %v346_v25 = vld [vmem:[#allocation4 + $0x710] sm:$0xff] }
 0x3f3   :  { %v1138_v14 = vunpack.c.l.s8.bf16 %v346_v25  ;;  %v1150_v50 = vunpack.c.h.s8.bf16 %v346_v25  ;;  %v405_v25 = vld [vmem:[#allocation4 + $0x8e8] sm:$0xff] }
 0x3f4   :  { %2917 = vmatpush1.bf16.msra.mxu0 %v1100_v60  ;;  %3163 = vmatpush1.bf16.msra.mxu1 %v1102_v62  ;;  %v382_v60 = vld [vmem:[#allocation4 + $0x830] sm:$0xff]  ;;  %v1208_v62 = vunpack.c.l.s8.bf16 %v380_v59 }
 0x3f5   :  { %2918 = vmatprep.subr.bf16.mxu0 %v1113_v63  ;;  %3164 = vmatprep.subr.bf16.mxu1 %v1115_v0  ;;  %v1210_v63 = vunpack.c.l.s8.bf16 %v382_v60  ;;  %v1221_v0 = vunpack.c.h.s8.bf16 %v381_v52 }
 0x3f8   :  { %2919 = vmatpush1.bf16.msra.mxu0 %v1112_v3  ;;  %3165 = vmatpush1.bf16.msra.mxu1 %v1114_v4  ;;  %v395_v3 = vld [vmem:[#allocation4 + $0x898] sm:$0xff]  ;;  %v1220_v4 = vunpack.c.h.s8.bf16 %v380_v59  ;;  %v441_v59 = vld [vmem:[#allocation4 + $0xa08] sm:$0xff] }
 0x3f9   :  { %2920 = vmatprep.subr.bf16.mxu0 %v1125_v17  ;;  %3166 = vmatprep.subr.bf16.mxu1 %v1127_v6  ;;  %v1222_v17 = vunpack.c.h.s8.bf16 %v382_v60  ;;  %v1233_v6 = vunpack.c.l.s8.bf16 %v393_v2  ;;  %v1235_v7 = vunpack.c.l.s8.bf16 %v395_v3  ;;  %v1247_v12 = vunpack.c.h.s8.bf16 %v395_v3  ;;  %v443_v60 = vld [vmem:[#allocation4 + $0xa18] sm:$0xff] }
 0x3fc   :  { %2921 = vmatpush1.bf16.msra.mxu0 %v1124_v9  ;;  %3167 = vmatpush1.bf16.msra.mxu1 %v1126_v10  ;;  %v394_v9 = vld [vmem:[#allocation4 + $0x890] sm:$0xff]  ;;  %v1232_v10 = vunpack.c.l.s8.bf16 %v392_v8 }
 0x3fd   :  { %2922 = vmatprep.subr.bf16.mxu0 %v1137_v11  ;;  %3168 = vmatprep.subr.bf16.mxu1 %v1139_v42  ;;  %v1234_v11 = vunpack.c.l.s8.bf16 %v394_v9  ;;  %v1245_v42 = vunpack.c.h.s8.bf16 %v393_v2  ;;  %v440_v2 = vld [vmem:[#allocation4 + $0xa00] sm:$0xff] }
 0x3fe   :  { %v1328_v3 = vunpack.c.l.s8.bf16 %v440_v2 }
 0x400   :  { %2923 = vmatpush1.bf16.msra.mxu0 %v1136_v13  ;;  %3169 = vmatpush1.bf16.msra.mxu1 %v1138_v14  ;;  %v407_v13 = vld [vmem:[#allocation4 + $0x8f8] sm:$0xff]  ;;  %v1244_v14 = vunpack.c.h.s8.bf16 %v392_v8 }
 0x401   :  { %2924 = vmatprep.subr.bf16.mxu0 %v1149_v15  ;;  %3170 = vmatprep.subr.bf16.mxu1 %v1151_v16  ;;  %v1246_v15 = vunpack.c.h.s8.bf16 %v394_v9  ;;  %v1257_v16 = vunpack.c.l.s8.bf16 %v405_v25  ;;  %v1259_v18 = vunpack.c.l.s8.bf16 %v407_v13  ;;  %v1271_v24 = vunpack.c.h.s8.bf16 %v407_v13  ;;  %v455_v8 = vld [vmem:[#allocation4 + $0xa78] sm:$0xff] }
 0x402   :  { %v1340_v9 = vunpack.c.h.s8.bf16 %v440_v2 }
 0x404   :  { %2925 = vmatpush1.bf16.msra.mxu0 %v1148_v20  ;;  %3171 = vmatpush1.bf16.msra.mxu1 %v1150_v50  ;;  %v406_v20 = vld [vmem:[#allocation4 + $0x8f0] sm:$0xff]  ;;  %v1256_v50 = vunpack.c.l.s8.bf16 %v404_v19 }
 0x405   :  { %2926 = vmatprep.subr.bf16.mxu0 %v1161_v22  ;;  %3172 = vmatprep.subr.bf16.mxu1 %v1163_v23  ;;  %v1258_v22 = vunpack.c.l.s8.bf16 %v406_v20  ;;  %v1269_v23 = vunpack.c.h.s8.bf16 %v405_v25  ;;  %v454_v25 = vld [vmem:[#allocation4 + $0xa70] sm:$0xff] }
 0x408   :  { %2927 = vmatpush1.bf16.msra.mxu0 %v1160_v26  ;;  %3173 = vmatpush1.bf16.msra.mxu1 %v1162_v27  ;;  %v419_v26 = vld [vmem:[#allocation4 + $0x958] sm:$0xff]  ;;  %v1268_v27 = vunpack.c.h.s8.bf16 %v404_v19 }
 0x409   :  { %2928 = vmatprep.subr.bf16.mxu0 %v1173_v28  ;;  %3174 = vmatprep.subr.bf16.mxu1 %v1175_v29  ;;  %v1270_v28 = vunpack.c.h.s8.bf16 %v406_v20  ;;  %v1281_v29 = vunpack.c.l.s8.bf16 %v417_v35  ;;  %v1283_v31 = vunpack.c.l.s8.bf16 %v419_v26  ;;  %v1295_v45 = vunpack.c.h.s8.bf16 %v419_v26  ;;  %v465_v26 = vld [vmem:[#allocation4 + $0xac8] sm:$0xff] }
 0x40c   :  { %2929 = vmatpush1.bf16.msra.mxu0 %v1172_v33  ;;  %3175 = vmatpush1.bf16.msra.mxu1 %v1174_v34  ;;  %v418_v33 = vld [vmem:[#allocation4 + $0x950] sm:$0xff]  ;;  %v1280_v34 = vunpack.c.l.s8.bf16 %v416_v32 }
 0x40d   :  { %2930 = vmatprep.subr.bf16.mxu0 %v1185_v36  ;;  %3176 = vmatprep.subr.bf16.mxu1 %v1187_v43  ;;  %v1282_v36 = vunpack.c.l.s8.bf16 %v418_v33  ;;  %v1293_v43 = vunpack.c.h.s8.bf16 %v417_v35  ;;  %v1367_v35 = vunpack.c.h.s8.bf16 %v455_v8 }
 0x410   :  { %2931 = vmatpush1.bf16.msra.mxu0 %v1184_v47  ;;  %3177 = vmatpush1.bf16.msra.mxu1 %v1186_v48  ;;  %v431_v47 = vld [vmem:[#allocation4 + $0x9b8] sm:$0xff]  ;;  %v1292_v48 = vunpack.c.h.s8.bf16 %v416_v32 }
 0x411   :  { %2932 = vmatprep.subr.bf16.mxu0 %v1197_v49  ;;  %3178 = vmatprep.subr.bf16.mxu1 %v1199_v51  ;;  %v1294_v49 = vunpack.c.h.s8.bf16 %v418_v33  ;;  %v1305_v51 = vunpack.c.l.s8.bf16 %v429_v46  ;;  %v1307_v52 = vunpack.c.l.s8.bf16 %v431_v47  ;;  %v464_v33 = vld [vmem:[#allocation4 + $0xac0] sm:$0xff] }
 0x414   :  { %2933 = vmatpush1.bf16.msra.mxu0 %v1196_v55  ;;  %3179 = vmatpush1.bf16.msra.mxu1 %v1198_v56  ;;  %v430_v55 = vld [vmem:[#allocation4 + $0x9b0] sm:$0xff]  ;;  %v1304_v56 = vunpack.c.l.s8.bf16 %v428_v54 }
 0x415   :  { %2934 = vmatprep.subr.bf16.mxu0 %v1209_v57  ;;  %3180 = vmatprep.subr.bf16.mxu1 %v1211_v58  ;;  %v1306_v57 = vunpack.c.l.s8.bf16 %v430_v55  ;;  %v1319_v58 = vunpack.c.h.s8.bf16 %v431_v47  ;;  %v477_v47 = vld [vmem:[#allocation4 + $0xb28] sm:$0xff] }
 0x418   :  { %2935 = vmatpush1.bf16.msra.mxu0 %v1208_v62  ;;  %3181 = vmatpush1.bf16.msra.mxu1 %v1210_v63  ;;  %v1316_v62 = vunpack.c.h.s8.bf16 %v428_v54  ;;  %v1318_v63 = vunpack.c.h.s8.bf16 %v430_v55  ;;  %v476_v55 = vld [vmem:[#allocation4 + $0xb20] sm:$0xff] }
 0x419   :  { %2936 = vmatprep.subr.bf16.mxu0 %v1221_v0  ;;  %3182 = vmatprep.subr.bf16.mxu1 %v1223_v1  ;;  %v1329_v0 = vunpack.c.l.s8.bf16 %v441_v59  ;;  %v1331_v1 = vunpack.c.l.s8.bf16 %v443_v60 }
 0x41c   :  { %2937 = vmatpush1.bf16.msra.mxu0 %v1220_v4  ;;  %3183 = vmatpush1.bf16.msra.mxu1 %v1222_v17  ;;  %v1341_v17 = vunpack.c.h.s8.bf16 %v441_v59 }
 0x41d   :  { %2938 = vmatprep.subr.bf16.mxu0 %v1233_v6  ;;  %3184 = vmatprep.subr.bf16.mxu1 %v1235_v7  ;;  %v1343_v6 = vunpack.c.h.s8.bf16 %v443_v60  ;;  %v453_v7 = vld [vmem:[#allocation4 + $0xa68] sm:$0xff] }
 0x41e   :  { %v489_v60 = vld [vmem:[#allocation4 + $0xb88] sm:$0xff] }
 0x420   :  { %2939 = vmatpush1.bf16.msra.mxu0 %v1232_v10  ;;  %3185 = vmatpush1.bf16.msra.mxu1 %v1234_v11  ;;  %v1353_v11 = vunpack.c.l.s8.bf16 %v453_v7 }
 0x421   :  { %2940 = vmatprep.subr.bf16.mxu0 %v1245_v42  ;;  %3186 = vmatprep.subr.bf16.mxu1 %v1247_v12  ;;  %v1355_v42 = vunpack.c.l.s8.bf16 %v455_v8  ;;  %v452_v12 = vld [vmem:[#allocation4 + $0xa60] sm:$0xff]  ;;  %v501_v8 = vld [vmem:[#allocation4 + $0xbe8] sm:$0xff] }
 0x422   :  { %v1352_v20 = vunpack.c.l.s8.bf16 %v452_v12 }
 0x424   :  { %2941 = vmatpush1.bf16.msra.mxu0 %v1244_v14  ;;  %3187 = vmatpush1.bf16.msra.mxu1 %v1246_v15 }
 0x425   :  { %2942 = vmatprep.subr.bf16.mxu0 %v1257_v16  ;;  %3188 = vmatprep.subr.bf16.mxu1 %v1259_v18 }
 0x428   :  { %2943 = vmatpush1.bf16.msra.mxu0 %v1256_v50  ;;  %3189 = vmatpush1.bf16.msra.mxu1 %v1258_v22  ;;  %v1354_v50 = vunpack.c.l.s8.bf16 %v454_v25 }
 0x429   :  { %2944 = vmatprep.subr.bf16.mxu0 %v1269_v23  ;;  %3190 = vmatprep.subr.bf16.mxu1 %v1271_v24  ;;  %v1365_v24 = vunpack.c.h.s8.bf16 %v453_v7 }
 0x42c   :  { %2945 = vmatpush1.bf16.msra.mxu0 %v1268_v27  ;;  %3191 = vmatpush1.bf16.msra.mxu1 %v1270_v28  ;;  %v467_v27 = vld [vmem:[#allocation4 + $0xad8] sm:$0xff]  ;;  %v1364_v28 = vunpack.c.h.s8.bf16 %v452_v12 }
 0x42d   :  { %2955 = vmatprep.subr.bf16.mxu0 %v1281_v29  ;;  %3201 = vmatprep.subr.bf16.mxu1 %v1283_v31  ;;  %v1366_v29 = vunpack.c.h.s8.bf16 %v454_v25  ;;  %v1377_v31 = vunpack.c.l.s8.bf16 %v465_v26  ;;  %v1379_v32 = vunpack.c.l.s8.bf16 %v467_v27  ;;  %v500_v25 = vld [vmem:[#allocation4 + $0xbe0] sm:$0xff] }
 0x42f   :  { %2947 = vmatmul.mubr.bf16.vlgmr.msra.gmra.mrb[8].mxu0 %v4296_v61  ;;  %3193 = vmatmul.mubr.bf16.vlgmr.msra.gmra.mrb[8].mxu1 %v4296_v61  ;;  %v1317_v61 = vunpack.c.h.s8.bf16 %v429_v46  ;;  %v1391_v46 = vunpack.c.h.s8.bf16 %v467_v27 }
 0x430   :  { %2956 = vmatpush1.bf16.msra.mxu0 %v1280_v34  ;;  %3202 = vmatpush1.bf16.msra.mxu1 %v1282_v36  ;;  %v466_v34 = vld [vmem:[#allocation4 + $0xad0] sm:$0xff]  ;;  %v1376_v36 = vunpack.c.l.s8.bf16 %v464_v33 }
 0x431   :  { %2957 = vmatprep.subr.bf16.mxu0 %v1293_v43  ;;  %3203 = vmatprep.subr.bf16.mxu1 %v1295_v45  ;;  %v1378_v43 = vunpack.c.l.s8.bf16 %v466_v34  ;;  %v1389_v45 = vunpack.c.h.s8.bf16 %v465_v26 }
 0x432   :  { %2987 = vmatprep.mubr.bf16.mxu0 %v4298_v5  ;;  %3233 = vmatprep.mubr.bf16.mxu1 %v4298_v5  ;;  %v442_v5 = vld [vmem:[#allocation4 + $0xa10] sm:$0xff] }
 0x433   :  { %v1330_v4 = vunpack.c.l.s8.bf16 %v442_v5  ;;  %v1342_v10 = vunpack.c.h.s8.bf16 %v442_v5  ;;  %v488_v5 = vld [vmem:[#allocation4 + $0xb80] sm:$0xff] }
 0x434   :  { %2958 = vmatpush1.bf16.msra.mxu0 %v1292_v48  ;;  %3204 = vmatpush1.bf16.msra.mxu1 %v1294_v49  ;;  %v479_v48 = vld [vmem:[#allocation4 + $0xb38] sm:$0xff]  ;;  %v1388_v49 = vunpack.c.h.s8.bf16 %v464_v33 }
 0x435   :  { %2959 = vmatprep.subr.bf16.mxu0 %v1305_v51  ;;  %3205 = vmatprep.subr.bf16.mxu1 %v1307_v52  ;;  %v1390_v51 = vunpack.c.h.s8.bf16 %v466_v34  ;;  %v1401_v52 = vunpack.c.l.s8.bf16 %v477_v47  ;;  %v1403_v54 = vunpack.c.l.s8.bf16 %v479_v48  ;;  %v1415_v59 = vunpack.c.h.s8.bf16 %v479_v48 }
 0x438   :  { %2960 = vmatpush1.bf16.msra.mxu0 %v1304_v56  ;;  %3206 = vmatpush1.bf16.msra.mxu1 %v1306_v57  ;;  %v478_v56 = vld [vmem:[#allocation4 + $0xb30] sm:$0xff]  ;;  %v1400_v57 = vunpack.c.l.s8.bf16 %v476_v55 }
 0x439   :  { %2961 = vmatprep.subr.bf16.mxu0 %v1317_v61  ;;  %3207 = vmatprep.subr.bf16.mxu1 %v1319_v58  ;;  %v1402_v61 = vunpack.c.l.s8.bf16 %v478_v56  ;;  %v1413_v58 = vunpack.c.h.s8.bf16 %v477_v47 }
 0x43c   :  { %2962 = vmatpush1.bf16.msra.mxu0 %v1316_v62  ;;  %3208 = vmatpush1.bf16.msra.mxu1 %v1318_v63  ;;  %v491_v62 = vld [vmem:[#allocation4 + $0xb98] sm:$0xff]  ;;  %v1412_v63 = vunpack.c.h.s8.bf16 %v476_v55 }
 0x43d   :  { %2963 = vmatprep.subr.bf16.mxu0 %v1329_v0  ;;  %3209 = vmatprep.subr.bf16.mxu1 %v1331_v1  ;;  %v1414_v0 = vunpack.c.h.s8.bf16 %v478_v56  ;;  %v1425_v1 = vunpack.c.l.s8.bf16 %v489_v60  ;;  %v1427_v2 = vunpack.c.l.s8.bf16 %v491_v62  ;;  %v1439_v7 = vunpack.c.h.s8.bf16 %v491_v62 }
 0x440   :  { %2964 = vmatpush1.bf16.msra.mxu0 %v1328_v3  ;;  %3210 = vmatpush1.bf16.msra.mxu1 %v1330_v4  ;;  %v490_v3 = vld [vmem:[#allocation4 + $0xb90] sm:$0xff]  ;;  %v1424_v4 = vunpack.c.l.s8.bf16 %v488_v5 }
 0x441   :  { %2965 = vmatprep.subr.bf16.mxu0 %v1341_v17  ;;  %3211 = vmatprep.subr.bf16.mxu1 %v1343_v6  ;;  %v1426_v17 = vunpack.c.l.s8.bf16 %v490_v3  ;;  %v1437_v6 = vunpack.c.h.s8.bf16 %v489_v60 }
 0x442   :  { %v4370_v13 = vpop.f32.mrb[4].mxu0  ;;  %v4372_v14 = vpop.f32.mrb[4].mxu1 }
 0x443   :  { %v4374_v15 = vpop.f32.mrb[5].mxu0  ;;  %v4376_v16 = vpop.f32.mrb[5].mxu1 }
 0x444   :  { %v2583_v18 = vpop.f32.mrb[6].mxu0  ;;  %v2829_v19 = vpop.f32.mrb[6].mxu1  ;;  %2966 = vmatpush1.bf16.msra.mxu0 %v1340_v9  ;;  %3212 = vmatpush1.bf16.msra.mxu1 %v1342_v10  ;;  %v503_v9 = vld [vmem:[#allocation4 + $0xbf8] sm:$0xff]  ;;  %v1436_v10 = vunpack.c.h.s8.bf16 %v488_v5 }
 0x445   :  { %v2584_v22 = vpop.f32.mrb[7].mxu0  ;;  %v2830_v23 = vpop.f32.mrb[7].mxu1  ;;  %2967 = vmatprep.subr.bf16.mxu0 %v1353_v11  ;;  %3213 = vmatprep.subr.bf16.mxu1 %v1355_v42  ;;  %v1438_v11 = vunpack.c.h.s8.bf16 %v490_v3  ;;  %v1449_v42 = vunpack.c.l.s8.bf16 %v501_v8  ;;  %v1451_v12 = vunpack.c.l.s8.bf16 %v503_v9  ;;  %v502_v18 = vld [vmem:[#allocation4 + $0xbf0] sm:$0xff]  ;;  %v1448_v19 = vunpack.c.l.s8.bf16 %v500_v25  ;;  %v549_v3 = vld [vmem:[#allocation4 + $0xd68] sm:$0xff] }
 0x446   :  { %v1463_v22 = vunpack.c.h.s8.bf16 %v503_v9  ;;  %v513_v23 = vld [vmem:[#allocation4 + $0xc48] sm:$0xff]  ;;  %v1462_v26 = vunpack.c.h.s8.bf16 %v502_v18  ;;  %v548_v9 = vld [vmem:[#allocation4 + $0xd60] sm:$0xff] }
 0x447   :  { %v1473_v27 = vunpack.c.l.s8.bf16 %v513_v23  ;;  %v1485_v34 = vunpack.c.h.s8.bf16 %v513_v23 }
 0x448   :  { %2968 = vmatpush1.bf16.msra.mxu0 %v1352_v20  ;;  %3214 = vmatpush1.bf16.msra.mxu1 %v1354_v50  ;;  %v1450_v20 = vunpack.c.l.s8.bf16 %v502_v18  ;;  %v1461_v50 = vunpack.c.h.s8.bf16 %v501_v8  ;;  %v561_v18 = vld [vmem:[#allocation4 + $0xdc8] sm:$0xff] }
 0x449   :  { %2969 = vmatprep.subr.bf16.mxu0 %v1365_v24  ;;  %3215 = vmatprep.subr.bf16.mxu1 %v1367_v35  ;;  %v515_v24 = vld [vmem:[#allocation4 + $0xc58] sm:$0xff]  ;;  %v1460_v35 = vunpack.c.h.s8.bf16 %v500_v25 }
 0x44c   :  { %2970 = vmatpush1.bf16.msra.mxu0 %v1364_v28  ;;  %3216 = vmatpush1.bf16.msra.mxu1 %v1366_v29  ;;  %v1475_v28 = vunpack.c.l.s8.bf16 %v515_v24  ;;  %v512_v29 = vld [vmem:[#allocation4 + $0xc40] sm:$0xff] }
 0x44d   :  { %2971 = vmatprep.subr.bf16.mxu0 %v1377_v31  ;;  %3217 = vmatprep.subr.bf16.mxu1 %v1379_v32  ;;  %v514_v31 = vld [vmem:[#allocation4 + $0xc50] sm:$0xff]  ;;  %v1472_v32 = vunpack.c.l.s8.bf16 %v512_v29 }
 0x44e   :  { %v1474_v33 = vunpack.c.l.s8.bf16 %v514_v31  ;;  %v1486_v47 = vunpack.c.h.s8.bf16 %v514_v31  ;;  %v573_v31 = vld [vmem:[#allocation4 + $0xe28] sm:$0xff] }
 0x450   :  { %2972 = vmatpush1.bf16.msra.mxu0 %v1376_v36  ;;  %3218 = vmatpush1.bf16.msra.mxu1 %v1378_v43  ;;  %v1487_v36 = vunpack.c.h.s8.bf16 %v515_v24  ;;  %v525_v43 = vld [vmem:[#allocation4 + $0xca8] sm:$0xff]  ;;  %v560_v24 = vld [vmem:[#allocation4 + $0xdc0] sm:$0xff] }
 0x451   :  { %2973 = vmatprep.subr.bf16.mxu0 %v1389_v45  ;;  %3219 = vmatprep.subr.bf16.mxu1 %v1391_v46  ;;  %v527_v45 = vld [vmem:[#allocation4 + $0xcb8] sm:$0xff]  ;;  %v1484_v46 = vunpack.c.h.s8.bf16 %v512_v29  ;;  %v1497_v48 = vunpack.c.l.s8.bf16 %v525_v43 }
 0x452   :  { %v1511_v56 = vunpack.c.h.s8.bf16 %v527_v45 }
 0x454   :  { %2974 = vmatpush1.bf16.msra.mxu0 %v1388_v49  ;;  %3220 = vmatpush1.bf16.msra.mxu1 %v1390_v51  ;;  %v1499_v49 = vunpack.c.l.s8.bf16 %v527_v45  ;;  %v524_v51 = vld [vmem:[#allocation4 + $0xca0] sm:$0xff] }
 0x455   :  { %2975 = vmatprep.subr.bf16.mxu0 %v1401_v52  ;;  %3221 = vmatprep.subr.bf16.mxu1 %v1403_v54  ;;  %v526_v52 = vld [vmem:[#allocation4 + $0xcb0] sm:$0xff]  ;;  %v1496_v54 = vunpack.c.l.s8.bf16 %v524_v51  ;;  %v572_v45 = vld [vmem:[#allocation4 + $0xe20] sm:$0xff] }
 0x456   :  { %v1498_v55 = vunpack.c.l.s8.bf16 %v526_v52 }
 0x458   :  { %2976 = vmatpush1.bf16.msra.mxu0 %v1400_v57  ;;  %3222 = vmatpush1.bf16.msra.mxu1 %v1402_v61  ;;  %v537_v57 = vld [vmem:[#allocation4 + $0xd08] sm:$0xff]  ;;  %v539_v61 = vld [vmem:[#allocation4 + $0xd18] sm:$0xff] }
 0x459   :  { %2977 = vmatprep.subr.bf16.mxu0 %v1413_v58  ;;  %3223 = vmatprep.subr.bf16.mxu1 %v1415_v59  ;;  %v1508_v58 = vunpack.c.h.s8.bf16 %v524_v51  ;;  %v1510_v59 = vunpack.c.h.s8.bf16 %v526_v52  ;;  %v1521_v60 = vunpack.c.l.s8.bf16 %v537_v57  ;;  %v1523_v62 = vunpack.c.l.s8.bf16 %v539_v61  ;;  %v585_v52 = vld [vmem:[#allocation4 + $0xe88] sm:$0xff] }
 0x45a   :  { %v1535_v5 = vunpack.c.h.s8.bf16 %v539_v61  ;;  %v584_v61 = vld [vmem:[#allocation4 + $0xe80] sm:$0xff] }
 0x45c   :  { %2978 = vmatpush1.bf16.msra.mxu0 %v1412_v63  ;;  %3224 = vmatpush1.bf16.msra.mxu1 %v1414_v0  ;;  %v536_v63 = vld [vmem:[#allocation4 + $0xd00] sm:$0xff] }
 0x45d   :  { %2979 = vmatprep.subr.bf16.mxu0 %v1425_v1  ;;  %3225 = vmatprep.subr.bf16.mxu1 %v1427_v2  ;;  %v1520_v0 = vunpack.c.l.s8.bf16 %v536_v63  ;;  %v1533_v2 = vunpack.c.h.s8.bf16 %v537_v57 }
 0x460   :  { %2980 = vmatpush1.bf16.msra.mxu0 %v1424_v4  ;;  %3226 = vmatpush1.bf16.msra.mxu1 %v1426_v17  ;;  %v551_v4 = vld [vmem:[#allocation4 + $0xd78] sm:$0xff]  ;;  %v1532_v17 = vunpack.c.h.s8.bf16 %v536_v63 }
 0x461   :  { %2981 = vmatprep.subr.bf16.mxu0 %v1437_v6  ;;  %3227 = vmatprep.subr.bf16.mxu1 %v1439_v7  ;;  %v1545_v7 = vunpack.c.l.s8.bf16 %v549_v3  ;;  %v1547_v8 = vunpack.c.l.s8.bf16 %v551_v4  ;;  %v1559_v25 = vunpack.c.h.s8.bf16 %v551_v4  ;;  %v596_v4 = vld [vmem:[#allocation4 + $0xee0] sm:$0xff] }
 0x464   :  { %2982 = vmatpush1.bf16.msra.mxu0 %v1436_v10  ;;  %3228 = vmatpush1.bf16.msra.mxu1 %v1438_v11  ;;  %v550_v10 = vld [vmem:[#allocation4 + $0xd70] sm:$0xff]  ;;  %v1544_v11 = vunpack.c.l.s8.bf16 %v548_v9 }
 0x465   :  { %2983 = vmatprep.subr.bf16.mxu0 %v1449_v42  ;;  %3229 = vmatprep.subr.bf16.mxu1 %v1451_v12  ;;  %v1546_v42 = vunpack.c.l.s8.bf16 %v550_v10  ;;  %v1557_v12 = vunpack.c.h.s8.bf16 %v549_v3 }
 0x468   :  { %2984 = vmatpush1.bf16.msra.mxu0 %v1448_v19  ;;  %3230 = vmatpush1.bf16.msra.mxu1 %v1450_v20  ;;  %v563_v19 = vld [vmem:[#allocation4 + $0xdd8] sm:$0xff]  ;;  %v1556_v20 = vunpack.c.h.s8.bf16 %v548_v9 }
 0x469   :  { %2985 = vmatprep.subr.bf16.mxu0 %v1461_v50  ;;  %3231 = vmatprep.subr.bf16.mxu1 %v1463_v22  ;;  %v1558_v50 = vunpack.c.h.s8.bf16 %v550_v10  ;;  %v1569_v22 = vunpack.c.l.s8.bf16 %v561_v18  ;;  %v1571_v23 = vunpack.c.l.s8.bf16 %v563_v19  ;;  %v1583_v29 = vunpack.c.h.s8.bf16 %v563_v19  ;;  %v609_v10 = vld [vmem:[#allocation4 + $0xf48] sm:$0xff]  ;;  %v608_v19 = vld [vmem:[#allocation4 + $0xf40] sm:$0xff] }
 0x46c   :  { %2986 = vmatpush1.bf16.msra.mxu0 %v1460_v35  ;;  %3232 = vmatpush1.bf16.msra.mxu1 %v1462_v26  ;;  %v562_v35 = vld [vmem:[#allocation4 + $0xdd0] sm:$0xff]  ;;  %v1568_v26 = vunpack.c.l.s8.bf16 %v560_v24 }
 0x46d   :  { %2996 = vmatprep.subr.bf16.mxu0 %v1473_v27  ;;  %3242 = vmatprep.subr.bf16.mxu1 %v1475_v28  ;;  %v1570_v27 = vunpack.c.l.s8.bf16 %v562_v35  ;;  %v1581_v28 = vunpack.c.h.s8.bf16 %v561_v18 }
 0x46f   :  { %2988 = vmatmul.mubr.bf16.vlgmr.msra.gmra.mrb[8].mxu0 %v4304_v44  ;;  %3234 = vmatmul.mubr.bf16.vlgmr.msra.gmra.mrb[8].mxu1 %v4304_v44  ;;  %v1509_v44 = vunpack.c.h.s8.bf16 %v525_v43 }
 0x470   :  { %2997 = vmatpush1.bf16.msra.mxu0 %v1472_v32  ;;  %3243 = vmatpush1.bf16.msra.mxu1 %v1474_v33  ;;  %v575_v32 = vld [vmem:[#allocation4 + $0xe38] sm:$0xff]  ;;  %v1580_v33 = vunpack.c.h.s8.bf16 %v560_v24 }
 0x471   :  { %2998 = vmatprep.subr.bf16.mxu0 %v1485_v34  ;;  %3244 = vmatprep.subr.bf16.mxu1 %v1487_v36  ;;  %v1582_v34 = vunpack.c.h.s8.bf16 %v562_v35  ;;  %v1593_v36 = vunpack.c.l.s8.bf16 %v573_v31  ;;  %v1595_v43 = vunpack.c.l.s8.bf16 %v575_v32  ;;  %v1607_v51 = vunpack.c.h.s8.bf16 %v575_v32  ;;  %v621_v35 = vld [vmem:[#allocation4 + $0xfa8] sm:$0xff]  ;;  %v620_v32 = vld [vmem:[#allocation4 + $0xfa0] sm:$0xff] }
 0x472   :  { %3028 = vmatprep.mubr.bf16.mxu0 %v4306_v53  ;;  %3274 = vmatprep.mubr.bf16.mxu1 %v4306_v53  ;;  %v538_v53 = vld [vmem:[#allocation4 + $0xd10] sm:$0xff] }
 0x473   :  { %v1522_v1 = vunpack.c.l.s8.bf16 %v538_v53  ;;  %v1534_v6 = vunpack.c.h.s8.bf16 %v538_v53  ;;  %v597_v53 = vld [vmem:[#allocation4 + $0xee8] sm:$0xff] }
 0x474   :  { %2999 = vmatpush1.bf16.msra.mxu0 %v1484_v46  ;;  %3245 = vmatpush1.bf16.msra.mxu1 %v1486_v47  ;;  %v574_v46 = vld [vmem:[#allocation4 + $0xe30] sm:$0xff]  ;;  %v1592_v47 = vunpack.c.l.s8.bf16 %v572_v45 }
 0x475   :  { %3000 = vmatprep.subr.bf16.mxu0 %v1497_v48  ;;  %3246 = vmatprep.subr.bf16.mxu1 %v1499_v49  ;;  %v1594_v48 = vunpack.c.l.s8.bf16 %v574_v46  ;;  %v1605_v49 = vunpack.c.h.s8.bf16 %v573_v31 }
 0x478   :  { %3001 = vmatpush1.bf16.msra.mxu0 %v1496_v54  ;;  %3247 = vmatpush1.bf16.msra.mxu1 %v1498_v55  ;;  %v587_v54 = vld [vmem:[#allocation4 + $0xe98] sm:$0xff]  ;;  %v1604_v55 = vunpack.c.h.s8.bf16 %v572_v45  ;;  %v633_v45 = vld [vmem:[#allocation4 + $0x1008] sm:$0xff] }
 0x479   :  { %3002 = vmatprep.subr.bf16.mxu0 %v1509_v44  ;;  %3248 = vmatprep.subr.bf16.mxu1 %v1511_v56  ;;  %v1606_v44 = vunpack.c.h.s8.bf16 %v574_v46  ;;  %v1617_v56 = vunpack.c.l.s8.bf16 %v585_v52  ;;  %v1619_v57 = vunpack.c.l.s8.bf16 %v587_v54  ;;  %v1631_v63 = vunpack.c.h.s8.bf16 %v587_v54  ;;  %v635_v46 = vld [vmem:[#allocation4 + $0x1018] sm:$0xff] }
 0x47c   :  { %3003 = vmatpush1.bf16.msra.mxu0 %v1508_v58  ;;  %3249 = vmatpush1.bf16.msra.mxu1 %v1510_v59  ;;  %v586_v58 = vld [vmem:[#allocation4 + $0xe90] sm:$0xff]  ;;  %v1616_v59 = vunpack.c.l.s8.bf16 %v584_v61 }
 0x47d   :  { %3004 = vmatprep.subr.bf16.mxu0 %v1521_v60  ;;  %3250 = vmatprep.subr.bf16.mxu1 %v1523_v62  ;;  %v1618_v60 = vunpack.c.l.s8.bf16 %v586_v58  ;;  %v1629_v62 = vunpack.c.h.s8.bf16 %v585_v52  ;;  %v632_v52 = vld [vmem:[#allocation4 + $0x1000] sm:$0xff] }
 0x47e   :  { %v1712_v54 = vunpack.c.l.s8.bf16 %v632_v52 }
 0x480   :  { %3005 = vmatpush1.bf16.msra.mxu0 %v1520_v0  ;;  %3251 = vmatpush1.bf16.msra.mxu1 %v1522_v1  ;;  %v599_v0 = vld [vmem:[#allocation4 + $0xef8] sm:$0xff]  ;;  %v1628_v1 = vunpack.c.h.s8.bf16 %v584_v61 }
 0x481   :  { %3006 = vmatprep.subr.bf16.mxu0 %v1533_v2  ;;  %3252 = vmatprep.subr.bf16.mxu1 %v1535_v5  ;;  %v1630_v2 = vunpack.c.h.s8.bf16 %v586_v58  ;;  %v1641_v5 = vunpack.c.l.s8.bf16 %v597_v53  ;;  %v1643_v3 = vunpack.c.l.s8.bf16 %v599_v0  ;;  %v1655_v9 = vunpack.c.h.s8.bf16 %v599_v0  ;;  %v647_v61 = vld [vmem:[#allocation4 + $0x1078] sm:$0xff] }
 0x482   :  { %v1724_v58 = vunpack.c.h.s8.bf16 %v632_v52  ;;  %v3500_v52 = vld [vmem:[#allocation9] sm:$0xff] }
 0x484   :  { %3007 = vmatpush1.bf16.msra.mxu0 %v1532_v17  ;;  %3253 = vmatpush1.bf16.msra.mxu1 %v1534_v6  ;;  %v598_v17 = vld [vmem:[#allocation4 + $0xef0] sm:$0xff]  ;;  %v1640_v6 = vunpack.c.l.s8.bf16 %v596_v4 }
 0x485   :  { %3008 = vmatprep.subr.bf16.mxu0 %v1545_v7  ;;  %3254 = vmatprep.subr.bf16.mxu1 %v1547_v8  ;;  %v1642_v7 = vunpack.c.l.s8.bf16 %v598_v17  ;;  %v1653_v8 = vunpack.c.h.s8.bf16 %v597_v53  ;;  %v646_v53 = vld [vmem:[#allocation4 + $0x1070] sm:$0xff] }
 0x488   :  { %3009 = vmatpush1.bf16.msra.mxu0 %v1544_v11  ;;  %3255 = vmatpush1.bf16.msra.mxu1 %v1546_v42  ;;  %v611_v11 = vld [vmem:[#allocation4 + $0xf58] sm:$0xff]  ;;  %v1652_v42 = vunpack.c.h.s8.bf16 %v596_v4 }
 0x489   :  { %3010 = vmatprep.subr.bf16.mxu0 %v1557_v12  ;;  %3256 = vmatprep.subr.bf16.mxu1 %v1559_v25  ;;  %v1654_v12 = vunpack.c.h.s8.bf16 %v598_v17  ;;  %v1665_v25 = vunpack.c.l.s8.bf16 %v609_v10  ;;  %v1667_v18 = vunpack.c.l.s8.bf16 %v611_v11  ;;  %v1679_v24 = vunpack.c.h.s8.bf16 %v611_v11  ;;  %v659_v4 = vld [vmem:[#allocation4 + $0x10d8] sm:$0xff]  ;;  %v658_v11 = vld [vmem:[#allocation4 + $0x10d0] sm:$0xff] }
 0x48a   :  { %v3328_v17 = vlaneseq }
 0x48c   :  { %3011 = vmatpush1.bf16.msra.mxu0 %v1556_v20  ;;  %3257 = vmatpush1.bf16.msra.mxu1 %v1558_v50  ;;  %v610_v20 = vld [vmem:[#allocation4 + $0xf50] sm:$0xff]  ;;  %v1664_v50 = vunpack.c.l.s8.bf16 %v608_v19 }
 0x48d   :  { %3012 = vmatprep.subr.bf16.mxu0 %v1569_v22  ;;  %3258 = vmatprep.subr.bf16.mxu1 %v1571_v23  ;;  %v1666_v22 = vunpack.c.l.s8.bf16 %v610_v20  ;;  %v1677_v23 = vunpack.c.h.s8.bf16 %v609_v10  ;;  %v656_v10 = vld [vmem:[#allocation4 + $0x10c0] sm:$0xff] }
 0x490   :  { %3013 = vmatpush1.bf16.msra.mxu0 %v1568_v26  ;;  %3259 = vmatpush1.bf16.msra.mxu1 %v1570_v27  ;;  %v623_v26 = vld [vmem:[#allocation4 + $0xfb8] sm:$0xff]  ;;  %v1676_v27 = vunpack.c.h.s8.bf16 %v608_v19  ;;  %v1775_v19 = vunpack.c.h.s8.bf16 %v659_v4 }
 0x491   :  { %3014 = vmatprep.subr.bf16.mxu0 %v1581_v28  ;;  %3260 = vmatprep.subr.bf16.mxu1 %v1583_v29  ;;  %v1678_v28 = vunpack.c.h.s8.bf16 %v610_v20  ;;  %v1689_v29 = vunpack.c.l.s8.bf16 %v621_v35  ;;  %v1691_v31 = vunpack.c.l.s8.bf16 %v623_v26  ;;  %v669_v20 = vld [vmem:[#allocation4 + $0x1128] sm:$0xff] }
 0x494   :  { %3015 = vmatpush1.bf16.msra.mxu0 %v1580_v33  ;;  %3261 = vmatpush1.bf16.msra.mxu1 %v1582_v34  ;;  %v622_v33 = vld [vmem:[#allocation4 + $0xfb0] sm:$0xff]  ;;  %v1688_v34 = vunpack.c.l.s8.bf16 %v620_v32 }
 0x495   :  { %3016 = vmatprep.subr.bf16.mxu0 %v1593_v36  ;;  %3262 = vmatprep.subr.bf16.mxu1 %v1595_v43  ;;  %v1690_v36 = vunpack.c.l.s8.bf16 %v622_v33  ;;  %v1703_v43 = vunpack.c.h.s8.bf16 %v623_v26  ;;  %v1774_v26 = vunpack.c.h.s8.bf16 %v658_v11 }
 0x498   :  { %3017 = vmatpush1.bf16.msra.mxu0 %v1592_v47  ;;  %3263 = vmatpush1.bf16.msra.mxu1 %v1594_v48  ;;  %v1700_v47 = vunpack.c.h.s8.bf16 %v620_v32  ;;  %v1702_v48 = vunpack.c.h.s8.bf16 %v622_v33  ;;  %v4168_v32 = vmov 1966171168  }
 0x499   :  { %3018 = vmatprep.subr.bf16.mxu0 %v1605_v49  ;;  %3264 = vmatprep.subr.bf16.mxu1 %v1607_v51  ;;  %v1713_v49 = vunpack.c.l.s8.bf16 %v633_v45  ;;  %v1715_v51 = vunpack.c.l.s8.bf16 %v635_v46  ;;  %v3513_v33 = vunpack.c.l.s4 %v4168_v32 }
 0x49c   :  { %3019 = vmatpush1.bf16.msra.mxu0 %v1604_v55  ;;  %3265 = vmatpush1.bf16.msra.mxu1 %v1606_v44  ;;  %v1725_v44 = vunpack.c.h.s8.bf16 %v633_v45 }
 0x49d   :  { %3020 = vmatprep.subr.bf16.mxu0 %v1617_v56  ;;  %3266 = vmatprep.subr.bf16.mxu1 %v1619_v57  ;;  %v1727_v56 = vunpack.c.h.s8.bf16 %v635_v46  ;;  %v645_v57 = vld [vmem:[#allocation4 + $0x1068] sm:$0xff]  ;;  %v1797_v46 = vunpack.c.h.s8.bf16 %v669_v20 }
 0x4a0   :  { %3021 = vmatpush1.bf16.msra.mxu0 %v1616_v59  ;;  %3267 = vmatpush1.bf16.msra.mxu1 %v1618_v60  ;;  %v1737_v60 = vunpack.c.l.s8.bf16 %v645_v57 }
 0x4a1   :  { %3022 = vmatprep.subr.bf16.mxu0 %v1629_v62  ;;  %3268 = vmatprep.subr.bf16.mxu1 %v1631_v63  ;;  %v1739_v62 = vunpack.c.l.s8.bf16 %v647_v61  ;;  %v644_v63 = vld [vmem:[#allocation4 + $0x1060] sm:$0xff] }
 0x4a2   :  { %v1736_v0 = vunpack.c.l.s8.bf16 %v644_v63 }
 0x4a4   :  { %3023 = vmatpush1.bf16.msra.mxu0 %v1628_v1  ;;  %3269 = vmatpush1.bf16.msra.mxu1 %v1630_v2  ;;  %v1738_v1 = vunpack.c.l.s8.bf16 %v646_v53  ;;  %v1749_v2 = vunpack.c.h.s8.bf16 %v645_v57 }
 0x4a5   :  { %3024 = vmatprep.subr.bf16.mxu0 %v1641_v5  ;;  %3270 = vmatprep.subr.bf16.mxu1 %v1643_v3  ;;  %v1751_v5 = vunpack.c.h.s8.bf16 %v647_v61  ;;  %v657_v3 = vld [vmem:[#allocation4 + $0x10c8] sm:$0xff] }
 0x4a8   :  { %3025 = vmatpush1.bf16.msra.mxu0 %v1640_v6  ;;  %3271 = vmatpush1.bf16.msra.mxu1 %v1642_v7  ;;  %v1748_v6 = vunpack.c.h.s8.bf16 %v644_v63  ;;  %v1750_v7 = vunpack.c.h.s8.bf16 %v646_v53 }
 0x4a9   :  { %3026 = vmatprep.subr.bf16.mxu0 %v1653_v8  ;;  %3272 = vmatprep.subr.bf16.mxu1 %v1655_v9  ;;  %v1761_v8 = vunpack.c.l.s8.bf16 %v657_v3  ;;  %v1763_v9 = vunpack.c.l.s8.bf16 %v659_v4 }
 0x4ac   :  { %3027 = vmatpush1.bf16.msra.mxu0 %v1652_v42  ;;  %3273 = vmatpush1.bf16.msra.mxu1 %v1654_v12  ;;  %v4386_v42 = vshrl.u32 %v3328_v17, 7  ;;  %v1760_v12 = vunpack.c.l.s8.bf16 %v656_v10 }
 0x4ad   :  { %3037 = vmatprep.subr.bf16.mxu0 %v1665_v25  ;;  %3283 = vmatprep.subr.bf16.mxu1 %v1667_v18  ;;  %v1762_v25 = vunpack.c.l.s8.bf16 %v658_v11  ;;  %v1773_v18 = vunpack.c.h.s8.bf16 %v657_v3 }
 0x4ae   :  { %v4408_v63 = vsub.s32 0, %v4386_v42  ;;  %v3354_v53 = vsub.s32 6, %v4386_v42  ;;  %v4413_v17 = vsub.s32 3, %v4386_v42 }
 0x4af   :  { %3029 = vmatmul.mubr.bf16.vlgmr.msra.gmra.mrb[8].mxu0 %v4312_v30  ;;  %3275 = vmatmul.mubr.bf16.vlgmr.msra.gmra.mrb[8].mxu1 %v4312_v30  ;;  %v1701_v30 = vunpack.c.h.s8.bf16 %v621_v35  ;;  %v1772_v35 = vunpack.c.h.s8.bf16 %v656_v10 }
 0x4b0   :  { %3038 = vmatpush1.bf16.msra.mxu0 %v1664_v50  ;;  %3284 = vmatpush1.bf16.msra.mxu1 %v1666_v22  ;;  %v671_v50 = vld [vmem:[#allocation4 + $0x1138] sm:$0xff]  ;;  %v4389_v22 = vsub.s32 1, %v4386_v42 }
 0x4b1   :  { %3039 = vmatprep.subr.bf16.mxu0 %v1677_v23  ;;  %3285 = vmatprep.subr.bf16.mxu1 %v1679_v24  ;;  %v4391_v23 = vld [vmem:[#allocation6] sm:$0xff]  ;;  %v3358_v24 = vsub.s32 7, %v4386_v42 }
 0x4b2   :  { %3069 = vmatprep.mubr.bf16.mxu0 %v4314_v39  ;;  %3315 = vmatprep.mubr.bf16.mxu1 %v4314_v39  ;;  %v634_v39 = vld [vmem:[#allocation4 + $0x1010] sm:$0xff] }
 0x4b3   :  { %v1714_v55 = vunpack.c.l.s8.bf16 %v634_v39  ;;  %v1726_v59 = vunpack.c.h.s8.bf16 %v634_v39 }
 0x4b4   :  { %3040 = vmatpush1.bf16.msra.mxu0 %v1676_v27  ;;  %3286 = vmatpush1.bf16.msra.mxu1 %v1678_v28  ;;  %v1785_v27 = vunpack.c.l.s8.bf16 %v669_v20  ;;  %v1787_v28 = vunpack.c.l.s8.bf16 %v671_v50 }
 0x4b5   :  { %3041 = vmatprep.subr.bf16.mxu0 %v1689_v29  ;;  %3287 = vmatprep.subr.bf16.mxu1 %v1691_v31  ;;  %v668_v29 = vld [vmem:[#allocation4 + $0x1120] sm:$0xff]  ;;  %v670_v31 = vld [vmem:[#allocation4 + $0x1130] sm:$0xff] }
 0x4b6   :  { %v1786_v45 = vunpack.c.l.s8.bf16 %v670_v31  ;;  %v1798_v57 = vunpack.c.h.s8.bf16 %v670_v31 }
 0x4b8   :  { %3042 = vmatpush1.bf16.msra.mxu0 %v1688_v34  ;;  %3288 = vmatpush1.bf16.msra.mxu1 %v1690_v36  ;;  %v3335_v34 = vrot.slane %v4391_v23, %v4389_v22  ;;  %v4396_v36 = vld [vmem:[#allocation7] sm:$0xff] }
 0x4b9   :  { %3043 = vmatprep.subr.bf16.mxu0 %v1701_v30  ;;  %3289 = vmatprep.subr.bf16.mxu1 %v1703_v43  ;;  %v3359_v30 = vrot.slane %v4391_v23, %v3358_v24  ;;  %v1784_v43 = vunpack.c.l.s8.bf16 %v668_v29 }
 0x4ba   :  { %v3389_v39 = vmul.f32 %v3335_v34, %v4342_v40 }
 0x4bc   :  { %3044 = vmatpush1.bf16.msra.mxu0 %v1700_v47  ;;  %3290 = vmatpush1.bf16.msra.mxu1 %v1702_v48  ;;  %v1799_v47 = vunpack.c.h.s8.bf16 %v671_v50  ;;  %v3514_v48 = vunpack.c.0.s8 %v3513_v33 }
 0x4bd   :  { %3045 = vmatprep.subr.bf16.mxu0 %v1713_v49  ;;  %3291 = vmatprep.subr.bf16.mxu1 %v1715_v51  ;;  %v681_v49 = vld [vmem:[#allocation4 + $0x1188] sm:$0xff]  ;;  %v683_v51 = vld [vmem:[#allocation4 + $0x1198] sm:$0xff] }
 0x4be   :  { %v1809_v61 = vunpack.c.l.s8.bf16 %v681_v49  ;;  %v4405_v40 = vsub.s32 %v3514_v48, %v4386_v42  ;;  %v1823_v3 = vunpack.c.h.s8.bf16 %v683_v51  ;;  %v4431_v48 = vsub.s32 2, %v4386_v42 }
 0x4c0   :  { %3046 = vmatpush1.bf16.msra.mxu0 %v1712_v54  ;;  %3292 = vmatpush1.bf16.msra.mxu1 %v1714_v55  ;;  %v3411_v54 = vrot.slane %v4396_v36, %v4389_v22  ;;  %v3395_v55 = vmul.f32 %v3359_v30, %v4376_v16  ;;  %v3518_v20 = vrot.slane %v3500_v52, %v4405_v40 }
 0x4c1   :  { %3047 = vmatprep.subr.bf16.mxu0 %v1725_v44  ;;  %3293 = vmatprep.subr.bf16.mxu1 %v1727_v56  ;;  %v3435_v44 = vrot.slane %v4396_v36, %v3358_v24  ;;  %v1796_v56 = vunpack.c.h.s8.bf16 %v668_v29  ;;  %v3343_v24 = vrot.slane %v4391_v23, %v4413_v17 }
 0x4c2   :  { %v3465_v16 = vadd.f32 %v3411_v54, %v3389_v39  ;;  %v3526_v34 = vcombine.high %v3518_v20, %v3518_v20  ;;  %v3350_v54 = vsub.s32 5, %v4386_v42 }
 0x4c4   :  { %3048 = vmatpush1.bf16.msra.mxu0 %v1724_v58  ;;  %3294 = vmatpush1.bf16.msra.mxu1 %v1726_v59  ;;  %v1811_v58 = vunpack.c.l.s8.bf16 %v683_v51  ;;  %v680_v59 = vld [vmem:[#allocation4 + $0x1180] sm:$0xff]  ;;  %3996 = vtanh.f32 %v3465_v16  ;;  %v3548_v51 = vrot.slane %v3526_v34, %v4405_v40 }
 0x4c5   :  { %3049 = vmatprep.subr.bf16.mxu0 %v1737_v60  ;;  %3295 = vmatprep.subr.bf16.mxu1 %v1739_v62  ;;  %v682_v60 = vld [vmem:[#allocation4 + $0x1190] sm:$0xff]  ;;  %v3511_v62 = vcombine.high %v3500_v52, %v3500_v52  ;;  %v1820_v10 = vunpack.c.h.s8.bf16 %v680_v59 }
 0x4c6   :  { %v1822_v11 = vunpack.c.h.s8.bf16 %v682_v60 }
 0x4c7   :  { %v3525_v4 = vrot.slane %v3511_v62, %v4405_v40 }
 0x4c8   :  { %3050 = vmatpush1.bf16.msra.mxu0 %v1736_v0  ;;  %3296 = vmatpush1.bf16.msra.mxu1 %v1738_v1  ;;  %v3471_v0 = vadd.f32 %v3435_v44, %v3395_v55  ;;  %v1808_v1 = vunpack.c.l.s8.bf16 %v680_v59  ;;  %v3339_v55 = vrot.slane %v4391_v23, %v4431_v48  ;;  %v3415_v59 = vrot.slane %v4396_v36, %v4431_v48 }
 0x4c9   :  { %3051 = vmatprep.subr.bf16.mxu0 %v1749_v2  ;;  %3297 = vmatprep.subr.bf16.mxu1 %v1751_v5  ;;  %v1810_v2 = vunpack.c.l.s8.bf16 %v682_v60  ;;  %v1821_v5 = vunpack.c.h.s8.bf16 %v681_v49  ;;  %v3527_v50 = vcombine.high %v3525_v4, %v3525_v4  ;;  %v3541_v44 = vrot.slane %v3525_v4, %v4405_v40 }
 0x4ca   :  { %3998 = vtanh.f32 %v3471_v0  ;;  %v3534_v60 = vrot.slane %v3518_v20, %v4405_v40  ;;  %v3558_v0 = vcombine.high %v3548_v51, %v3548_v51  ;;  %v3847_v20 = vld.sshfl [vmem:[#allocation9 + $0x8] sm:$0x33 pattern:$0x75316420] }
 0x4cb   :  { %v3555_v30 = vrot.slane %v3527_v50, %v4405_v40  ;;  %v3557_v62 = vcombine.high %v3541_v44, %v3541_v44  ;;  %v3567_v50 = vcombine.high %v3847_v20, %v3847_v20 }
 0x4cc   :  { %3052 = vmatpush1.bf16.msra.mxu0 %v1748_v6  ;;  %3298 = vmatpush1.bf16.msra.mxu1 %v1750_v7  ;;  %v693_v6 = vld [vmem:[#allocation4 + $0x11e8] sm:$0xff]  ;;  %v695_v7 = vld [vmem:[#allocation4 + $0x11f8] sm:$0xff] }
 0x4cd   :  { %3053 = vmatprep.subr.bf16.mxu0 %v1761_v8  ;;  %3299 = vmatprep.subr.bf16.mxu1 %v1763_v9  ;;  %v3331_v8 = vrot.slane %v4391_v23, %v4408_v63  ;;  %v3355_v9 = vrot.slane %v4391_v23, %v3354_v53  ;;  %v1845_v32 = vunpack.c.h.s8.bf16 %v693_v6  ;;  %v1847_v33 = vunpack.c.h.s8.bf16 %v695_v7 }
 0x4ce   :  { %v3559_v52 = vcombine.high %v3555_v30, %v3555_v30 }
 0x4d0   :  { %3054 = vmatpush1.bf16.msra.mxu0 %v1760_v12  ;;  %3300 = vmatpush1.bf16.msra.mxu1 %v1762_v25  ;;  %v1833_v12 = vunpack.c.l.s8.bf16 %v693_v6  ;;  %v1835_v25 = vunpack.c.l.s8.bf16 %v695_v7  ;;  %v3556_v6 = vcombine.high %v3534_v60, %v3534_v60 }
 0x4d1   :  { %3055 = vmatprep.subr.bf16.mxu0 %v1773_v18  ;;  %3301 = vmatprep.subr.bf16.mxu1 %v1775_v19  ;;  %v692_v18 = vld [vmem:[#allocation4 + $0x11e0] sm:$0xff]  ;;  %v694_v19 = vld [vmem:[#allocation4 + $0x11f0] sm:$0xff] }
 0x4d2   :  { %v1832_v29 = vunpack.c.l.s8.bf16 %v692_v18  ;;  %v1834_v31 = vunpack.c.l.s8.bf16 %v694_v19 }
 0x4d4   :  { %3056 = vmatpush1.bf16.msra.mxu0 %v1772_v35  ;;  %3302 = vmatpush1.bf16.msra.mxu1 %v1774_v26  ;;  %v3388_v35 = vmul.f32 %v3331_v8, %v4338_v37  ;;  %v3407_v26 = vrot.slane %v4396_v36, %v4408_v63  ;;  %v3391_v37 = vmul.f32 %v3343_v24, %v4344_v41 }
 0x4d5   :  { %3057 = vmatprep.subr.bf16.mxu0 %v1785_v27  ;;  %3303 = vmatprep.subr.bf16.mxu1 %v1787_v28  ;;  %v3394_v27 = vmul.f32 %v3355_v9, %v4372_v14  ;;  %v3431_v28 = vrot.slane %v4396_v36, %v3354_v53  ;;  %v1844_v14 = vunpack.c.h.s8.bf16 %v692_v18  ;;  %v3427_v53 = vrot.slane %v4396_v36, %v3350_v54 }
 0x4d7   :  { %v3470_v49 = vadd.f32 %v3431_v28, %v3394_v27 }
 0x4d8   :  { %3058 = vmatpush1.bf16.msra.mxu0 %v1784_v43  ;;  %3304 = vmatpush1.bf16.msra.mxu1 %v1786_v45  ;;  %v3419_v43 = vrot.slane %v4396_v36, %v4413_v17  ;;  %v3464_v45 = vadd.f32 %v3407_v26, %v3388_v35  ;;  %v3325_v35 = vld [vmem:[#allocation6 + $0x8] sm:$0xf]  ;;  %v3401_v26 = vld [vmem:[#allocation7 + $0x8] sm:$0xf] }
 0x4d9   :  { %3059 = vmatprep.subr.bf16.mxu0 %v1797_v46  ;;  %3305 = vmatprep.subr.bf16.mxu1 %v1799_v47  ;;  %v1846_v46 = vunpack.c.h.s8.bf16 %v694_v19  ;;  %v3997_v47 = vpop.eup %3996  ;;  %v3363_v27 = vrot.slane %v3325_v35, %v4408_v63  ;;  %v3367_v28 = vrot.slane %v3325_v35, %v4389_v22  ;;  %v3443_v34 = vrot.slane %v3401_v26, %v4389_v22 }
 0x4da   :  { %v3999_v39 = vpop.eup %3998  ;;  %v3467_v41 = vadd.f32 %v3419_v43, %v3391_v37  ;;  %4000 = vtanh.f32 %v3464_v45 }
 0x4db   :  { %4002 = vtanh.f32 %v3470_v49 }
 0x4dc   :  { %3060 = vmatpush1.bf16.msra.mxu0 %v1796_v56  ;;  %3306 = vmatpush1.bf16.msra.mxu1 %v1798_v57  ;;  %4004 = vtanh.f32 %v3467_v41  ;;  %v3351_v56 = vrot.slane %v4391_v23, %v3350_v54  ;;  %v3489_v57 = vpack.c.bf16 %v3997_v47, %v3997_v47 }
 0x4dd   :  { %3061 = vmatprep.subr.bf16.mxu0 %v1809_v61  ;;  %3307 = vmatprep.subr.bf16.mxu1 %v1811_v58  ;;  %v3495_v61 = vpack.c.bf16 %v3999_v39, %v3999_v39  ;;  %v3390_v58 = vmul.f32 %v3339_v55, %v4340_v38 }
 0x4de   :  { %v3393_v16 = vmul.f32 %v3351_v56, %v4374_v15 }
 0x4e0   :  { %3062 = vmatpush1.bf16.msra.mxu0 %v1808_v1  ;;  %3308 = vmatpush1.bf16.msra.mxu1 %v1810_v2  ;;  %v3466_v1 = vadd.f32 %v3415_v59, %v3390_v58  ;;  %v3346_v2 = vsub.s32 4, %v4386_v42 }
 0x4e1   :  { %3063 = vmatprep.subr.bf16.mxu0 %v1821_v5  ;;  %3309 = vmatprep.subr.bf16.mxu1 %v1823_v3  ;;  %v3469_v5 = vadd.f32 %v3427_v53, %v3393_v16 }
 0x4e2   :  { %4006 = vtanh.f32 %v3466_v1  ;;  %v3347_v4 = vrot.slane %v4391_v23, %v3346_v2  ;;  %v3423_v42 = vrot.slane %v4396_v36, %v3346_v2  ;;  %v3574_v36 = vrot.slane %v3847_v20, %v4405_v40  ;;  %v3846_v1 = vld [vmem:[#allocation10] ss:$0 sm:$0xff] }
 0x4e3   :  { %4008 = vtanh.f32 %v3469_v5 }
 0x4e4   :  { %3064 = vmatpush1.bf16.msra.mxu0 %v1820_v10  ;;  %3310 = vmatpush1.bf16.msra.mxu1 %v1822_v11  ;;  %v3392_v9 = vmul.f32 %v3347_v4, %v4370_v13  ;;  %v3581_v13 = vrot.slane %v3567_v50, %v4405_v40  ;;  %v3451_v40 = vrot.slane %v3401_v26, %v4413_v17 }
 0x4e5   :  { %3065 = vmatprep.subr.bf16.mxu0 %v1833_v12  ;;  %3311 = vmatprep.subr.bf16.mxu1 %v1835_v25 }
 0x4e6   :  { %v3468_v10 = vadd.f32 %v3423_v42, %v3392_v9  ;;  %v3583_v24 = vcombine.high %v3581_v13, %v3581_v13 }
 0x4e8   :  { %3066 = vmatpush1.bf16.msra.mxu0 %v1832_v29  ;;  %3312 = vmatpush1.bf16.msra.mxu1 %v1834_v31  ;;  %4010 = vtanh.f32 %v3468_v10  ;;  %v3375_v29 = vrot.slane %v3325_v35, %v4413_v17  ;;  %v3439_v31 = vrot.slane %v3401_v26, %v4408_v63  ;;  %v3371_v63 = vrot.slane %v3325_v35, %v4431_v48 }
 0x4e9   :  { %3067 = vmatprep.subr.bf16.mxu0 %v1845_v32  ;;  %3313 = vmatprep.subr.bf16.mxu1 %v1847_v33  ;;  %v3447_v17 = vrot.slane %v3401_v26, %v4431_v48 }
 0x4ec   :  { %3068 = vmatpush1.bf16.msra.mxu0 %v1844_v14  ;;  %3314 = vmatpush1.bf16.msra.mxu1 %v1846_v46 }
 0x4ed   :  { %3596 = vmatprep.subr.bf16.mxu1 %v3548_v51  ;;  %3716 = vmatprep.subr.bf16.mxu0 %v3559_v52 }
 0x4ef   :  { %3070 = vmatmul.mubr.bf16.vlgmr.msra.gmra.mrb[8].mxu0 %v4320_v21  ;;  %3316 = vmatmul.mubr.bf16.vlgmr.msra.gmra.mrb[8].mxu1 %v4320_v21  ;;  %v4001_v21 = vpop.eup %4000 }
 0x4f0   :  { %3628 = vmatprep.mubr.bf16.mxu1 %v3489_v57  ;;  %3748 = vmatprep.mubr.bf16.mxu0 %v3495_v61  ;;  %v4003_v38 = vpop.eup %4002  ;;  %v3488_v7 = vpack.c.bf16 %v4001_v21, %v4001_v21  ;;  %v3582_v61 = vcombine.high %v3574_v36, %v3574_v36 }
 0x4f1   :  { %v4005_v3 = vpop.eup %4004  ;;  %v3494_v8 = vpack.c.bf16 %v4003_v38, %v4003_v38 }
 0x4f2   :  { %v3491_v15 = vpack.c.bf16 %v4005_v3, %v4005_v3  ;;  %v4007_v11 = vpop.eup %4006 }
 0x4f3   :  { %v4009_v12 = vpop.eup %4008  ;;  %v3490_v25 = vpack.c.bf16 %v4007_v11, %v4007_v11 }
 0x4f4   :  { %v3493_v23 = vpack.c.bf16 %v4009_v12, %v4009_v12  ;;  %v4011_v18 = vpop.eup %4010 }
 0x4f5   :  { %3597 = vmatpush1.bf16.xpose.msra.mxu1 %v3534_v60  ;;  %3717 = vmatpush1.bf16.xpose.msra.mxu0 %v3557_v62  ;;  %v3492_v19 = vpack.c.bf16 %v4011_v18, %v4011_v18 }
 0x4f6   :  { %3636 = vmatprep.subr.bf16.mxu1 %v3558_v0  ;;  %3756 = vmatprep.subr.bf16.mxu0 %v3581_v13 }
 0x4fc   :  { %3629 = vmatmul.mubr.bf16.vlgmr.msra.gmra.mrb[12].mxu1 %v3488_v7  ;;  %3749 = vmatmul.mubr.bf16.vlgmr.msra.gmra.mrb[12].mxu0 %v3494_v8 }
 0x4fd   :  { %3668 = vmatprep.mubr.bf16.mxu1 %v3491_v15  ;;  %3637 = vmatpush1.bf16.xpose.msra.mxu1 %v3556_v6 }
 0x4fe   :  { %3676 = vmatprep.subr.bf16.mxu1 %v3555_v30  ;;  %3757 = vmatpush1.bf16.xpose.msra.mxu0 %v3574_v36 }
 0x4ff   :  { %3796 = vmatprep.subr.bf16.mxu0 %v3583_v24 }
 0x508   :  { %3669 = vmatmul.mubr.bf16.vlgmr.msra.gmra.mrb[12].mxu1 %v3490_v25 }
 0x509   :  { %3708 = vmatprep.mubr.bf16.mxu1 %v3493_v23  ;;  %3677 = vmatpush1.bf16.xpose.msra.mxu1 %v3541_v44 }
 0x514   :  { %3709 = vmatmul.mubr.bf16.vlgmr.msra.gmra.mrb[12].mxu1 %v3492_v19 }
 0x5c2   :  { %v3071_v32 = vpop.f32.mrb[8].mxu0  ;;  %v3317_v33 = vpop.f32.mrb[8].mxu1 }
 0x5c3   :  { %v3396_v30 = vmul.f32 %v3363_v27, %v3071_v32  ;;  %v3073_v37 = vpop.f32.mrb[9].mxu0  ;;  %v3319_v43 = vpop.f32.mrb[9].mxu1  ;;  %v3398_v22 = vmul.f32 %v3371_v63, %v3317_v33 }
 0x5c4   :  { %v3397_v45 = vmul.f32 %v3367_v28, %v3073_v37  ;;  %v3399_v14 = vmul.f32 %v3375_v29, %v3319_v43  ;;  %v3075_v46 = vpop.f32.mrb[10].mxu0  ;;  %v3321_v47 = vpop.f32.mrb[10].mxu1 }
 0x5c5   :  { %v3472_v49 = vadd.f32 %v3439_v31, %v3396_v30  ;;  %v3076_v51 = vpop.f32.mrb[11].mxu0  ;;  %v3322_v52 = vpop.f32.mrb[11].mxu1  ;;  %v3474_v54 = vadd.f32 %v3447_v17, %v3398_v22 }
 0x5c6   :  { %v3473_v39 = vadd.f32 %v3443_v34, %v3397_v45  ;;  %v3475_v41 = vadd.f32 %v3451_v40, %v3399_v14 }
 0x5c7   :  { %4012 = vtanh.f32 %v3472_v49 }
 0x5c8   :  { %4014 = vtanh.f32 %v3473_v39 }
 0x5c9   :  { %4016 = vtanh.f32 %v3475_v41 }
 0x5ca   :  { %4018 = vtanh.f32 %v3474_v54 }
 0x5d1   :  { %v4013_v55 = vpop.eup %4012 }
 0x5d2   :  { %v4015_v44 = vpop.eup %4014  ;;  %v3496_v58 = vpack.c.bf16 %v4013_v55, %v4013_v55 }
 0x5d3   :  { %v4017_v56 = vpop.eup %4016  ;;  %v3497_v57 = vpack.c.bf16 %v4015_v44, %v4015_v44 }
 0x5d4   :  { %v3499_v59 = vpack.c.bf16 %v4017_v56, %v4017_v56  ;;  %v4019_v60 = vpop.eup %4018 }
 0x5d5   :  { %3788 = vmatprep.mubr.bf16.mxu0 %v3497_v57  ;;  %v3498_v62 = vpack.c.bf16 %v4019_v60, %v4019_v60 }
 0x5d6   :  { %3789 = vmatmul.mubr.bf16.vlgmr.msra.gmra.mrb[12].mxu0 %v3496_v58 }
 0x5d7   :  { %3797 = vmatpush1.bf16.xpose.msra.mxu0 %v3582_v61  ;;  %3828 = vmatprep.mubr.bf16.mxu0 %v3499_v59 }
 0x5e2   :  { %3829 = vmatmul.mubr.bf16.vlgmr.msra.gmra.mrb[12].mxu0 %v3498_v62 }
 0x5e7   :  { %v3710_v16 = vpop.f32.mrb[12].mxu1 }
 0x5e8   :  { %v3712_v53 = vpop.f32.mrb[13].mxu1  ;;  %v3848_v2 = vadd.f32 %v3846_v1, %v3710_v16 }
 0x5e9   :  { %v3713_v0 = vpop.f32.mrb[14].mxu1 }
 0x5ea   :  { %v3714_v48 = vpop.f32.mrb[15].mxu1 }
 0x6b5   :  { %v3830_v21 = vpop.f32.mrb[12].mxu0 }
 0x6b6   :  { %v3849_v5 = vadd.f32 %v3848_v2, %v3830_v21  ;;  %v3832_v38 = vpop.f32.mrb[13].mxu0 }
 0x6b7   :  { %v3833_v3 = vpop.f32.mrb[14].mxu0 }
 0x6b8   :  { %3837 = vst.msk [vmem:[%s4470_s6] sm:$0xff] %vm3836_vm0, %v3849_v5  ;;  %v3834_v4 = vpop.f32.mrb[15].mxu0 }
 0x6b9   :  { %3842 = vsyncpa [#allocation3], 1 }
 0x6ba   :  { %3843 = vsyncpa [#allocation5], 1 }
 0x6bb   :  { %3844 = vsyncpa [#allocation8], 1 }
 0x6bc   :  { %3845 = vsyncpa [#allocation11], 1 }

</bundles_post_ra>
